<compile_context>
chip_gen: v7x
topology: tpu7x:2x2x1
jax: 0.10.0
libtpu: 0.0.40
codegen_flags: <defaults>
</compile_context>

<pallas_src>
import functools
import numpy as np
import jax
import jax.numpy as jnp
from jax import lax
from jax.experimental import pallas as pl
from jax.experimental.pallas import tpu as pltpu

# ----------------------- model hyper-params -----------------------
SEQ_LEN = 16
PRED_LEN = 8
LABEL_LEN = 4
DEC_LEN = LABEL_LEN + PRED_LEN          # 12
ENC_IN = 4
DEC_IN = 4
C_OUT = 4
D_MODEL = 32
N_HEADS = 4
HEAD_DIM = D_MODEL // N_HEADS           # 8
D_FF = 64
D_LAYERS = 1
MARK_DIM = 4                            # freq='h', embed='timeF'
MA_KERNEL = 25                          # DLinear series_decomp kernel size
LN_EPS = 1e-5


# ----------------------- deterministic constants -----------------------
def moving_avg_matrix(seq_len, kernel):
    """W[t, s] s.t. moving_mean = W @ x replicates series_decomp's edge-replicated AvgPool1d."""
    pad = (kernel - 1) // 2
    W = np.zeros((seq_len, seq_len), np.float32)
    for t in range(seq_len):
        for j in range(kernel):
            s = min(max(t + j - pad, 0), seq_len - 1)
            W[t, s] += 1.0 / kernel
    return jnp.asarray(W)


def positional_embedding(L, d_model):
    pe = np.zeros((L, d_model), np.float32)
    position = np.arange(L, dtype=np.float32)[:, None]
    div_term = np.exp(np.arange(0, d_model, 2, dtype=np.float32) * -(np.log(10000.0) / d_model))
    pe[:, 0::2] = np.sin(position * div_term)
    pe[:, 1::2] = np.cos(position * div_term)
    return jnp.asarray(pe)


# ----------------------- the single fused Pallas kernel -----------------------
def _fused_forward_kernel(*refs, batch, n_layers):
    f32 = jnp.float32
    it = iter(refs)
    # runtime inputs (all pre-flattened to 2-D slabs wrapper-side)
    x_ref = next(it)          # [B*SEQ_LEN, ENC_IN]
    yenc_ref = next(it)       # [B*PRED_LEN, MARK_DIM]
    xdec_ref = next(it)       # [B*DEC_LEN, DEC_IN]
    ydec_ref = next(it)       # [B*DEC_LEN, MARK_DIM]
    # DLinear (folded)
    dlwT_ref = next(it)       # [PRED_LEN, SEQ_LEN]
    dlb_ref = next(it)        # [PRED_LEN, 1]
    # embeddings
    eembw_ref = next(it)      # [3*ENC_IN + MARK_DIM, D_MODEL]
    pe_enc_ref = next(it)     # [PRED_LEN, D_MODEL]
    dembw_ref = next(it)      # [3*DEC_IN + MARK_DIM, D_MODEL]
    pe_dec_ref = next(it)     # [DEC_LEN, D_MODEL]
    # decoder layers
    layer_refs = [tuple(next(it) for _ in range(13)) for _ in range(n_layers)]
    fln_ref = next(it)        # [2, D_MODEL]
    projw_ref = next(it)      # [D_MODEL, C_OUT]
    projb_ref = next(it)      # [1, C_OUT]
    out_ref = next(it)        # [B*DEC_LEN, C_OUT]

    def matmul(a, b):
        return jnp.dot(a, b, preferred_element_type=f32)

    def layernorm(xx, gamma, beta):
        mean = jnp.mean(xx, axis=-1, keepdims=True)
        xc = xx - mean
        var = jnp.mean(xc * xc, axis=-1, keepdims=True)
        return xc * lax.rsqrt(var + LN_EPS) * gamma + beta

    def roll_time(m, shift):
        """Circular roll along axis 0 (time) of a small 2-D block."""
        n = m.shape[0]
        s = shift % n
        if s == 0:
            return m
        return jnp.concatenate([m[n - s:, :], m[:n - s, :]], axis=0)

    def data_embedding(blocks, marks, W, pe, length):
        """Fused DataEmbedding: circular Conv1d(k=3, no bias) taps + timeF linear + positional."""
        outs = []
        for b in range(batch):
            cur = blocks[b]                       # [length, c_in]
            prev = roll_time(cur, 1)              # x[(t-1) mod L]
            nxt = roll_time(cur, -1)              # x[(t+1) mod L]
            mk = marks[b * length:(b + 1) * length, :]
            feats = jnp.concatenate([prev, cur, nxt, mk], axis=1)   # [length, 3*c_in + mark]
            outs.append(matmul(feats, W) + pe)                      # dropout = identity
        return jnp.concatenate(outs, axis=0)      # [batch*length, D_MODEL]

    # ---------------- DLinear encoder (folded to one matmul per batch) ----------------
    x = x_ref[...]                                # [B*T, C]
    dlwT = dlwT_ref[...]                          # [P, T]
    dlb = dlb_ref[...]                            # [P, 1]
    enc_blocks = [matmul(dlwT, x[b * SEQ_LEN:(b + 1) * SEQ_LEN, :]) + dlb
                  for b in range(batch)]          # each [P, C]

    # ---------------- DataEmbedding for encoder output and decoder input ----------------
    cross = data_embedding(enc_blocks, yenc_ref[...], eembw_ref[...],
                           pe_enc_ref[...], PRED_LEN)               # [B*P, D]

    xd = xdec_ref[...]
    dec_blocks = [xd[b * DEC_LEN:(b + 1) * DEC_LEN, :] for b in range(batch)]
    h = data_embedding(dec_blocks, ydec_ref[...], dembw_ref[...],
                       pe_dec_ref[...], DEC_LEN)                    # [B*Ld, D]

    # ---------------- Transformer decoder ----------------
    scale = 1.0 / float(np.sqrt(HEAD_DIM))
    row = lax.broadcasted_iota(jnp.int32, (DEC_LEN, DEC_LEN), 0)
    col = lax.broadcasted_iota(jnp.int32, (DEC_LEN, DEC_LEN), 1)
    causal_mask = col > row                       # True where attention is forbidden

    def mha(xq, xkv, wqkv, bqkv, wo, bo, lq, lkv, causal, fused_qkv):
        if fused_qkv:                             # self-attention: one [D, 3D] matmul
            qkv = matmul(xq, wqkv) + bqkv
            q = qkv[:, :D_MODEL]
            k = qkv[:, D_MODEL:2 * D_MODEL]
            v = qkv[:, 2 * D_MODEL:]
        else:                                     # cross-attention: Q from xq, KV from xkv
            q = matmul(xq, wqkv[:, :D_MODEL]) + bqkv[:, :D_MODEL]
            kv = matmul(xkv, wqkv[:, D_MODEL:]) + bqkv[:, D_MODEL:]
            k = kv[:, :D_MODEL]
            v = kv[:, D_MODEL:]
        out_rows = []
        for b in range(batch):
            qb = q[b * lq:(b + 1) * lq, :]
            kb = k[b * lkv:(b + 1) * lkv, :]
            vb = v[b * lkv:(b + 1) * lkv, :]
            heads = []
            for hh in range(N_HEADS):
                sl = slice(hh * HEAD_DIM, (hh + 1) * HEAD_DIM)
                s = lax.dot_general(qb[:, sl], kb[:, sl], (((1,), (1,)), ((), ())),
                                    preferred_element_type=f32)     # [lq, lkv]
                if causal:
                    s = jnp.where(causal_mask, -jnp.inf, s)
                s = s * scale
                m = jnp.max(s, axis=-1, keepdims=True)
                p = jnp.exp(s - m)
                a = p / jnp.sum(p, axis=-1, keepdims=True)
                heads.append(matmul(a, vb[:, sl]))                  # [lq, HEAD_DIM]
            out_rows.append(jnp.concatenate(heads, axis=1))         # [lq, D]
        o = jnp.concatenate(out_rows, axis=0)                       # [B*lq, D]
        return matmul(o, wo) + bo

    for lp in layer_refs:
        (sa_wqkv, sa_bqkv, sa_wo, sa_bo,
         ca_wqkv, ca_bqkv, ca_wo, ca_bo,
         w1, b1, w2, b2, ln) = [r[...] for r in lp]
        h = h + mha(h, h, sa_wqkv, sa_bqkv, sa_wo, sa_bo,
                    DEC_LEN, DEC_LEN, causal=True, fused_qkv=True)
        h = layernorm(h, ln[0:1, :], ln[1:2, :])
        h = h + mha(h, cross, ca_wqkv, ca_bqkv, ca_wo, ca_bo,
                    DEC_LEN, PRED_LEN, causal=False, fused_qkv=False)
        h = layernorm(h, ln[2:3, :], ln[3:4, :])
        ff = jnp.maximum(matmul(h, w1) + b1, 0.0)                   # activation='relu'
        ff = matmul(ff, w2) + b2
        h = layernorm(h + ff, ln[4:5, :], ln[5:6, :])

    fln = fln_ref[...]
    h = layernorm(h, fln[0:1, :], fln[1:2, :])
    out = matmul(h, projw_ref[...]) + projb_ref[...]
    out_ref[...] = out.astype(out_ref.dtype)


# ----------------------- parameter init (deterministic) -----------------------
def init_params(key):
    keys = iter(jax.random.split(key, 64))

    def nrm(shape, scale=0.05):
        return jax.random.normal(next(keys), shape, jnp.float32) * scale

    # DLinear, folded: out = x_time @ (w_s + W_ma^T (w_t - w_s)) + (b_s + b_t)
    ma_w = moving_avg_matrix(SEQ_LEN, MA_KERNEL)                     # [L, L]
    w_seasonal = nrm((SEQ_LEN, PRED_LEN))
    b_seasonal = nrm((PRED_LEN,))
    w_trend = nrm((SEQ_LEN, PRED_LEN))
    b_trend = nrm((PRED_LEN,))
    w_eff = w_seasonal + ma_w.T @ (w_trend - w_seasonal)             # [L, P]
    dl_wT = jnp.transpose(w_eff)                                     # [P, L]
    dl_b = (b_seasonal + b_trend).reshape(PRED_LEN, 1)

    def emb_w(c_in):
        # rows: [tap(-1) channels | tap(0) channels | tap(+1) channels | time-mark features]
        token_w = nrm((3 * c_in, D_MODEL))
        temp_w = nrm((MARK_DIM, D_MODEL))
        return jnp.concatenate([token_w, temp_w], axis=0)            # [3*c_in + mark, D]

    ones = jnp.ones((D_MODEL,), jnp.float32)
    zeros = jnp.zeros((D_MODEL,), jnp.float32)

    layers = []
    for _ in range(D_LAYERS):
        layers.append(dict(
            sa_wqkv=nrm((D_MODEL, 3 * D_MODEL)), sa_bqkv=nrm((1, 3 * D_MODEL)),
            sa_wo=nrm((D_MODEL, D_MODEL)), sa_bo=nrm((1, D_MODEL)),
            ca_wqkv=nrm((D_MODEL, 3 * D_MODEL)), ca_bqkv=nrm((1, 3 * D_MODEL)),
            ca_wo=nrm((D_MODEL, D_MODEL)), ca_bo=nrm((1, D_MODEL)),
            w1=nrm((D_MODEL, D_FF)), b1=nrm((1, D_FF)),
            w2=nrm((D_FF, D_MODEL)), b2=nrm((1, D_MODEL)),
            ln=jnp.stack([ones, zeros, ones, zeros, ones, zeros], axis=0),   # [6, D]
        ))

    params = dict(
        dl_wT=dl_wT, dl_b=dl_b,
        enc_emb_w=emb_w(ENC_IN), pe_enc=positional_embedding(PRED_LEN, D_MODEL),
        dec_emb_w=emb_w(DEC_IN), pe_dec=positional_embedding(DEC_LEN, D_MODEL),
        layers=layers,
        final_ln=jnp.stack([ones, zeros], axis=0),                   # [2, D]
        proj_w=nrm((D_MODEL, C_OUT)), proj_b=nrm((1, C_OUT)),
    )
    return params


# ----------------------- wrapper -----------------------
def model_forward(params, x, y, x_dec, y_dec):
    """Matches Model.forward: Encoder(x) -> enc_embedding(.,y); dec_embedding(x_dec,y_dec) -> decoder."""
    B = x.shape[0]
    args = [
        x.reshape(B * SEQ_LEN, ENC_IN).astype(jnp.float32),
        y.reshape(B * PRED_LEN, MARK_DIM).astype(jnp.float32),
        x_dec.reshape(B * DEC_LEN, DEC_IN).astype(jnp.float32),
        y_dec.reshape(B * DEC_LEN, MARK_DIM).astype(jnp.float32),
        params['dl_wT'], params['dl_b'],
        params['enc_emb_w'], params['pe_enc'],
        params['dec_emb_w'], params['pe_dec'],
    ]
    for lp in params['layers']:
        args += [lp['sa_wqkv'], lp['sa_bqkv'], lp['sa_wo'], lp['sa_bo'],
                 lp['ca_wqkv'], lp['ca_bqkv'], lp['ca_wo'], lp['ca_bo'],
                 lp['w1'], lp['b1'], lp['w2'], lp['b2'], lp['ln']]
    args += [params['final_ln'], params['proj_w'], params['proj_b']]

    kern = functools.partial(_fused_forward_kernel, batch=B, n_layers=len(params['layers']))
    out2d = pl.pallas_call(
        kern,
        out_shape=jax.ShapeDtypeStruct((B * DEC_LEN, C_OUT), jnp.float32),
        grid=(1,),
        in_specs=[pl.BlockSpec(a.shape, lambda i: (0, 0)) for a in args],
        out_specs=pl.BlockSpec((B * DEC_LEN, C_OUT), lambda i: (0, 0)),
        compiler_params=pltpu.CompilerParams(dimension_semantics=("arbitrary",)),
    )(*args)
    return out2d.reshape(B, DEC_LEN, C_OUT)


# ----------------------- main -----------------------
if __name__ == "__main__":
    key = jax.random.PRNGKey(0)
    kp, k1, k2, k3, k4 = jax.random.split(key, 5)

    params = init_params(kp)

    B = 2
    x = jax.random.normal(k1, (B, SEQ_LEN, ENC_IN), jnp.float32)      # encoder input
    y = jax.random.normal(k2, (B, PRED_LEN, MARK_DIM), jnp.float32)   # time marks for encoder window
    x_dec = jax.random.normal(k3, (B, DEC_LEN, DEC_IN), jnp.float32)
    y_dec = jax.random.normal(k4, (B, DEC_LEN, MARK_DIM), jnp.float32)

    out = jax.jit(model_forward)(params, x, y, x_dec, y_dec)
    out = jax.block_until_ready(out)
    assert out.shape == (B, DEC_LEN, C_OUT), out.shape
    assert bool(jnp.all(jnp.isfinite(out)))
    print("KERNEL_OK")
</pallas_src>

<mosaic_0001>
module attributes {stable_mosaic.version = 11 : i64} {
  func.func @_fused_forward_kernel(%arg0: i32, %arg1: memref<32x4xf32, #tpu.memory_space<vmem>>, %arg2: memref<16x4xf32, #tpu.memory_space<vmem>>, %arg3: memref<24x4xf32, #tpu.memory_space<vmem>>, %arg4: memref<24x4xf32, #tpu.memory_space<vmem>>, %arg5: memref<8x16xf32, #tpu.memory_space<vmem>>, %arg6: memref<8x1xf32, #tpu.memory_space<vmem>>, %arg7: memref<16x32xf32, #tpu.memory_space<vmem>>, %arg8: memref<8x32xf32, #tpu.memory_space<vmem>>, %arg9: memref<16x32xf32, #tpu.memory_space<vmem>>, %arg10: memref<12x32xf32, #tpu.memory_space<vmem>>, %arg11: memref<32x96xf32, #tpu.memory_space<vmem>>, %arg12: memref<1x96xf32, #tpu.memory_space<vmem>>, %arg13: memref<32x32xf32, #tpu.memory_space<vmem>>, %arg14: memref<1x32xf32, #tpu.memory_space<vmem>>, %arg15: memref<32x96xf32, #tpu.memory_space<vmem>>, %arg16: memref<1x96xf32, #tpu.memory_space<vmem>>, %arg17: memref<32x32xf32, #tpu.memory_space<vmem>>, %arg18: memref<1x32xf32, #tpu.memory_space<vmem>>, %arg19: memref<32x64xf32, #tpu.memory_space<vmem>>, %arg20: memref<1x64xf32, #tpu.memory_space<vmem>>, %arg21: memref<64x32xf32, #tpu.memory_space<vmem>>, %arg22: memref<1x32xf32, #tpu.memory_space<vmem>>, %arg23: memref<6x32xf32, #tpu.memory_space<vmem>>, %arg24: memref<2x32xf32, #tpu.memory_space<vmem>>, %arg25: memref<32x4xf32, #tpu.memory_space<vmem>>, %arg26: memref<1x4xf32, #tpu.memory_space<vmem>>, %arg27: memref<24x4xf32, #tpu.memory_space<vmem>>) attributes {dimension_semantics = [#tpu.dimension_semantics<arbitrary>], iteration_bounds = array<i64: 1>, scalar_prefetch = 0 : i64, scratch_operands = 0 : i64, tpu.core_type = #tpu.core_type<tc>, window_params = [{pipeline_mode = #tpu.pipeline_mode<synchronous>, transform_indices = @transform_0, window_bounds = array<i64: 32, 4>}, {pipeline_mode = #tpu.pipeline_mode<synchronous>, transform_indices = @transform_1, window_bounds = array<i64: 16, 4>}, {pipeline_mode = #tpu.pipeline_mode<synchronous>, transform_indices = @transform_2, window_bounds = array<i64: 24, 4>}, {pipeline_mode = #tpu.pipeline_mode<synchronous>, transform_indices = @transform_3, window_bounds = array<i64: 24, 4>}, {pipeline_mode = #tpu.pipeline_mode<synchronous>, transform_indices = @transform_4, window_bounds = array<i64: 8, 16>}, {pipeline_mode = #tpu.pipeline_mode<synchronous>, transform_indices = @transform_5, window_bounds = array<i64: 8, 1>}, {pipeline_mode = #tpu.pipeline_mode<synchronous>, transform_indices = @transform_6, window_bounds = array<i64: 16, 32>}, {pipeline_mode = #tpu.pipeline_mode<synchronous>, transform_indices = @transform_7, window_bounds = array<i64: 8, 32>}, {pipeline_mode = #tpu.pipeline_mode<synchronous>, transform_indices = @transform_8, window_bounds = array<i64: 16, 32>}, {pipeline_mode = #tpu.pipeline_mode<synchronous>, transform_indices = @transform_9, window_bounds = array<i64: 12, 32>}, {pipeline_mode = #tpu.pipeline_mode<synchronous>, transform_indices = @transform_10, window_bounds = array<i64: 32, 96>}, {pipeline_mode = #tpu.pipeline_mode<synchronous>, transform_indices = @transform_11, window_bounds = array<i64: 1, 96>}, {pipeline_mode = #tpu.pipeline_mode<synchronous>, transform_indices = @transform_12, window_bounds = array<i64: 32, 32>}, {pipeline_mode = #tpu.pipeline_mode<synchronous>, transform_indices = @transform_13, window_bounds = array<i64: 1, 32>}, {pipeline_mode = #tpu.pipeline_mode<synchronous>, transform_indices = @transform_14, window_bounds = array<i64: 32, 96>}, {pipeline_mode = #tpu.pipeline_mode<synchronous>, transform_indices = @transform_15, window_bounds = array<i64: 1, 96>}, {pipeline_mode = #tpu.pipeline_mode<synchronous>, transform_indices = @transform_16, window_bounds = array<i64: 32, 32>}, {pipeline_mode = #tpu.pipeline_mode<synchronous>, transform_indices = @transform_17, window_bounds = array<i64: 1, 32>}, {pipeline_mode = #tpu.pipeline_mode<synchronous>, transform_indices = @transform_18, window_bounds = array<i64: 32, 64>}, {pipeline_mode = #tpu.pipeline_mode<synchronous>, transform_indices = @transform_19, window_bounds = array<i64: 1, 64>}, {pipeline_mode = #tpu.pipeline_mode<synchronous>, transform_indices = @transform_20, window_bounds = array<i64: 64, 32>}, {pipeline_mode = #tpu.pipeline_mode<synchronous>, transform_indices = @transform_21, window_bounds = array<i64: 1, 32>}, {pipeline_mode = #tpu.pipeline_mode<synchronous>, transform_indices = @transform_22, window_bounds = array<i64: 6, 32>}, {pipeline_mode = #tpu.pipeline_mode<synchronous>, transform_indices = @transform_23, window_bounds = array<i64: 2, 32>}, {pipeline_mode = #tpu.pipeline_mode<synchronous>, transform_indices = @transform_24, window_bounds = array<i64: 32, 4>}, {pipeline_mode = #tpu.pipeline_mode<synchronous>, transform_indices = @transform_25, window_bounds = array<i64: 1, 4>}, {pipeline_mode = #tpu.pipeline_mode<synchronous>, transform_indices = @transform_26, window_bounds = array<i64: 24, 4>}]} {
    %c0 = arith.constant 0 : index
    %c0_0 = arith.constant 0 : index
    %0 = vector.load %arg1[%c0, %c0_0] : memref<32x4xf32, #tpu.memory_space<vmem>>, vector<32x4xf32>
    %c0_1 = arith.constant 0 : index
    %c0_2 = arith.constant 0 : index
    %1 = vector.load %arg5[%c0_1, %c0_2] : memref<8x16xf32, #tpu.memory_space<vmem>>, vector<8x16xf32>
    %c0_3 = arith.constant 0 : index
    %c0_4 = arith.constant 0 : index
    %2 = vector.load %arg6[%c0_3, %c0_4] : memref<8x1xf32, #tpu.memory_space<vmem>>, vector<8x1xf32>
    %3 = vector.extract_strided_slice %0 {offsets = [0, 0], sizes = [16, 4], strides = [1, 1]} : vector<32x4xf32> to vector<16x4xf32>
    %cst = arith.constant dense<0.000000e+00> : vector<8x4xf32>
    %4 = tpu.matmul %1, %3, %cst {dimension_numbers = #tpu.dot_dimension_numbers<[1], [0], [0], [1], [0, 0, 1, 1], [], []>} : vector<8x16xf32>, vector<16x4xf32>, vector<8x4xf32> -> vector<8x4xf32>
    %5 = vector.broadcast %2 : vector<8x1xf32> to vector<8x4xf32>
    %6 = arith.addf %4, %5 : vector<8x4xf32>
    %7 = vector.extract_strided_slice %0 {offsets = [16, 0], sizes = [16, 4], strides = [1, 1]} : vector<32x4xf32> to vector<16x4xf32>
    %cst_5 = arith.constant dense<0.000000e+00> : vector<8x4xf32>
    %8 = tpu.matmul %1, %7, %cst_5 {dimension_numbers = #tpu.dot_dimension_numbers<[1], [0], [0], [1], [0, 0, 1, 1], [], []>} : vector<8x16xf32>, vector<16x4xf32>, vector<8x4xf32> -> vector<8x4xf32>
    %9 = vector.broadcast %2 : vector<8x1xf32> to vector<8x4xf32>
    %10 = arith.addf %8, %9 : vector<8x4xf32>
    %c0_6 = arith.constant 0 : index
    %c0_7 = arith.constant 0 : index
    %11 = vector.load %arg2[%c0_6, %c0_7] : memref<16x4xf32, #tpu.memory_space<vmem>>, vector<16x4xf32>
    %c0_8 = arith.constant 0 : index
    %c0_9 = arith.constant 0 : index
    %12 = vector.load %arg7[%c0_8, %c0_9] : memref<16x32xf32, #tpu.memory_space<vmem>>, vector<16x32xf32>
    %c0_10 = arith.constant 0 : index
    %c0_11 = arith.constant 0 : index
    %13 = vector.load %arg8[%c0_10, %c0_11] : memref<8x32xf32, #tpu.memory_space<vmem>>, vector<8x32xf32>
    %14 = vector.extract_strided_slice %6 {offsets = [7, 0], sizes = [1, 4], strides = [1, 1]} : vector<8x4xf32> to vector<1x4xf32>
    %15 = vector.extract_strided_slice %6 {offsets = [0, 0], sizes = [7, 4], strides = [1, 1]} : vector<8x4xf32> to vector<7x4xf32>
    %16 = tpu.concatenate %14, %15 in 0 : vector<1x4xf32>, vector<7x4xf32> -> vector<8x4xf32>
    %17 = vector.extract_strided_slice %6 {offsets = [1, 0], sizes = [7, 4], strides = [1, 1]} : vector<8x4xf32> to vector<7x4xf32>
    %18 = vector.extract_strided_slice %6 {offsets = [0, 0], sizes = [1, 4], strides = [1, 1]} : vector<8x4xf32> to vector<1x4xf32>
    %19 = tpu.concatenate %17, %18 in 0 : vector<7x4xf32>, vector<1x4xf32> -> vector<8x4xf32>
    %20 = vector.extract_strided_slice %11 {offsets = [0, 0], sizes = [8, 4], strides = [1, 1]} : vector<16x4xf32> to vector<8x4xf32>
    %21 = tpu.concatenate %16, %6, %19, %20 in 1 : vector<8x4xf32>, vector<8x4xf32>, vector<8x4xf32>, vector<8x4xf32> -> vector<8x16xf32>
    %cst_12 = arith.constant dense<0.000000e+00> : vector<8x32xf32>
    %22 = tpu.matmul %21, %12, %cst_12 {dimension_numbers = #tpu.dot_dimension_numbers<[1], [0], [0], [1], [0, 0, 1, 1], [], []>} : vector<8x16xf32>, vector<16x32xf32>, vector<8x32xf32> -> vector<8x32xf32>
    %23 = arith.addf %22, %13 : vector<8x32xf32>
    %24 = vector.extract_strided_slice %10 {offsets = [7, 0], sizes = [1, 4], strides = [1, 1]} : vector<8x4xf32> to vector<1x4xf32>
    %25 = vector.extract_strided_slice %10 {offsets = [0, 0], sizes = [7, 4], strides = [1, 1]} : vector<8x4xf32> to vector<7x4xf32>
    %26 = tpu.concatenate %24, %25 in 0 : vector<1x4xf32>, vector<7x4xf32> -> vector<8x4xf32>
    %27 = vector.extract_strided_slice %10 {offsets = [1, 0], sizes = [7, 4], strides = [1, 1]} : vector<8x4xf32> to vector<7x4xf32>
    %28 = vector.extract_strided_slice %10 {offsets = [0, 0], sizes = [1, 4], strides = [1, 1]} : vector<8x4xf32> to vector<1x4xf32>
    %29 = tpu.concatenate %27, %28 in 0 : vector<7x4xf32>, vector<1x4xf32> -> vector<8x4xf32>
    %30 = vector.extract_strided_slice %11 {offsets = [8, 0], sizes = [8, 4], strides = [1, 1]} : vector<16x4xf32> to vector<8x4xf32>
    %31 = tpu.concatenate %26, %10, %29, %30 in 1 : vector<8x4xf32>, vector<8x4xf32>, vector<8x4xf32>, vector<8x4xf32> -> vector<8x16xf32>
    %cst_13 = arith.constant dense<0.000000e+00> : vector<8x32xf32>
    %32 = tpu.matmul %31, %12, %cst_13 {dimension_numbers = #tpu.dot_dimension_numbers<[1], [0], [0], [1], [0, 0, 1, 1], [], []>} : vector<8x16xf32>, vector<16x32xf32>, vector<8x32xf32> -> vector<8x32xf32>
    %33 = arith.addf %32, %13 : vector<8x32xf32>
    %34 = tpu.concatenate %23, %33 in 0 : vector<8x32xf32>, vector<8x32xf32> -> vector<16x32xf32>
    %c0_14 = arith.constant 0 : index
    %c0_15 = arith.constant 0 : index
    %35 = vector.load %arg3[%c0_14, %c0_15] : memref<24x4xf32, #tpu.memory_space<vmem>>, vector<24x4xf32>
    %36 = vector.extract_strided_slice %35 {offsets = [0, 0], sizes = [12, 4], strides = [1, 1]} : vector<24x4xf32> to vector<12x4xf32>
    %37 = vector.extract_strided_slice %35 {offsets = [12, 0], sizes = [12, 4], strides = [1, 1]} : vector<24x4xf32> to vector<12x4xf32>
    %c0_16 = arith.constant 0 : index
    %c0_17 = arith.constant 0 : index
    %38 = vector.load %arg4[%c0_16, %c0_17] : memref<24x4xf32, #tpu.memory_space<vmem>>, vector<24x4xf32>
    %c0_18 = arith.constant 0 : index
    %c0_19 = arith.constant 0 : index
    %39 = vector.load %arg9[%c0_18, %c0_19] : memref<16x32xf32, #tpu.memory_space<vmem>>, vector<16x32xf32>
    %c0_20 = arith.constant 0 : index
    %c0_21 = arith.constant 0 : index
    %40 = vector.load %arg10[%c0_20, %c0_21] : memref<12x32xf32, #tpu.memory_space<vmem>>, vector<12x32xf32>
    %41 = vector.extract_strided_slice %36 {offsets = [11, 0], sizes = [1, 4], strides = [1, 1]} : vector<12x4xf32> to vector<1x4xf32>
    %42 = vector.extract_strided_slice %36 {offsets = [0, 0], sizes = [11, 4], strides = [1, 1]} : vector<12x4xf32> to vector<11x4xf32>
    %43 = tpu.concatenate %41, %42 in 0 : vector<1x4xf32>, vector<11x4xf32> -> vector<12x4xf32>
    %44 = vector.extract_strided_slice %36 {offsets = [1, 0], sizes = [11, 4], strides = [1, 1]} : vector<12x4xf32> to vector<11x4xf32>
    %45 = vector.extract_strided_slice %36 {offsets = [0, 0], sizes = [1, 4], strides = [1, 1]} : vector<12x4xf32> to vector<1x4xf32>
    %46 = tpu.concatenate %44, %45 in 0 : vector<11x4xf32>, vector<1x4xf32> -> vector<12x4xf32>
    %47 = vector.extract_strided_slice %38 {offsets = [0, 0], sizes = [12, 4], strides = [1, 1]} : vector<24x4xf32> to vector<12x4xf32>
    %48 = tpu.concatenate %43, %36, %46, %47 in 1 : vector<12x4xf32>, vector<12x4xf32>, vector<12x4xf32>, vector<12x4xf32> -> vector<12x16xf32>
    %cst_22 = arith.constant dense<0.000000e+00> : vector<12x32xf32>
    %49 = tpu.matmul %48, %39, %cst_22 {dimension_numbers = #tpu.dot_dimension_numbers<[1], [0], [0], [1], [0, 0, 1, 1], [], []>} : vector<12x16xf32>, vector<16x32xf32>, vector<12x32xf32> -> vector<12x32xf32>
    %50 = arith.addf %49, %40 : vector<12x32xf32>
    %51 = vector.extract_strided_slice %37 {offsets = [11, 0], sizes = [1, 4], strides = [1, 1]} : vector<12x4xf32> to vector<1x4xf32>
    %52 = vector.extract_strided_slice %37 {offsets = [0, 0], sizes = [11, 4], strides = [1, 1]} : vector<12x4xf32> to vector<11x4xf32>
    %53 = tpu.concatenate %51, %52 in 0 : vector<1x4xf32>, vector<11x4xf32> -> vector<12x4xf32>
    %54 = vector.extract_strided_slice %37 {offsets = [1, 0], sizes = [11, 4], strides = [1, 1]} : vector<12x4xf32> to vector<11x4xf32>
    %55 = vector.extract_strided_slice %37 {offsets = [0, 0], sizes = [1, 4], strides = [1, 1]} : vector<12x4xf32> to vector<1x4xf32>
    %56 = tpu.concatenate %54, %55 in 0 : vector<11x4xf32>, vector<1x4xf32> -> vector<12x4xf32>
    %57 = vector.extract_strided_slice %38 {offsets = [12, 0], sizes = [12, 4], strides = [1, 1]} : vector<24x4xf32> to vector<12x4xf32>
    %58 = tpu.concatenate %53, %37, %56, %57 in 1 : vector<12x4xf32>, vector<12x4xf32>, vector<12x4xf32>, vector<12x4xf32> -> vector<12x16xf32>
    %cst_23 = arith.constant dense<0.000000e+00> : vector<12x32xf32>
    %59 = tpu.matmul %58, %39, %cst_23 {dimension_numbers = #tpu.dot_dimension_numbers<[1], [0], [0], [1], [0, 0, 1, 1], [], []>} : vector<12x16xf32>, vector<16x32xf32>, vector<12x32xf32> -> vector<12x32xf32>
    %60 = arith.addf %59, %40 : vector<12x32xf32>
    %61 = tpu.concatenate %50, %60 in 0 : vector<12x32xf32>, vector<12x32xf32> -> vector<24x32xf32>
    %62 = tpu.iota {dimensions = array<i32: 0>} : vector<12x12xi32>
    %63 = tpu.iota {dimensions = array<i32: 1>} : vector<12x12xi32>
    %64 = arith.cmpi sgt, %63, %62 : vector<12x12xi32>
    %c0_24 = arith.constant 0 : index
    %c0_25 = arith.constant 0 : index
    %65 = vector.load %arg11[%c0_24, %c0_25] : memref<32x96xf32, #tpu.memory_space<vmem>>, vector<32x96xf32>
    %c0_26 = arith.constant 0 : index
    %c0_27 = arith.constant 0 : index
    %66 = vector.load %arg12[%c0_26, %c0_27] : memref<1x96xf32, #tpu.memory_space<vmem>>, vector<1x96xf32>
    %c0_28 = arith.constant 0 : index
    %c0_29 = arith.constant 0 : index
    %67 = vector.load %arg13[%c0_28, %c0_29] : memref<32x32xf32, #tpu.memory_space<vmem>>, vector<32x32xf32>
    %c0_30 = arith.constant 0 : index
    %c0_31 = arith.constant 0 : index
    %68 = vector.load %arg14[%c0_30, %c0_31] : memref<1x32xf32, #tpu.memory_space<vmem>>, vector<1x32xf32>
    %c0_32 = arith.constant 0 : index
    %c0_33 = arith.constant 0 : index
    %69 = vector.load %arg15[%c0_32, %c0_33] : memref<32x96xf32, #tpu.memory_space<vmem>>, vector<32x96xf32>
    %c0_34 = arith.constant 0 : index
    %c0_35 = arith.constant 0 : index
    %70 = vector.load %arg16[%c0_34, %c0_35] : memref<1x96xf32, #tpu.memory_space<vmem>>, vector<1x96xf32>
    %c0_36 = arith.constant 0 : index
    %c0_37 = arith.constant 0 : index
    %71 = vector.load %arg17[%c0_36, %c0_37] : memref<32x32xf32, #tpu.memory_space<vmem>>, vector<32x32xf32>
    %c0_38 = arith.constant 0 : index
    %c0_39 = arith.constant 0 : index
    %72 = vector.load %arg18[%c0_38, %c0_39] : memref<1x32xf32, #tpu.memory_space<vmem>>, vector<1x32xf32>
    %c0_40 = arith.constant 0 : index
    %c0_41 = arith.constant 0 : index
    %73 = vector.load %arg19[%c0_40, %c0_41] : memref<32x64xf32, #tpu.memory_space<vmem>>, vector<32x64xf32>
    %c0_42 = arith.constant 0 : index
    %c0_43 = arith.constant 0 : index
    %74 = vector.load %arg20[%c0_42, %c0_43] : memref<1x64xf32, #tpu.memory_space<vmem>>, vector<1x64xf32>
    %c0_44 = arith.constant 0 : index
    %c0_45 = arith.constant 0 : index
    %75 = vector.load %arg21[%c0_44, %c0_45] : memref<64x32xf32, #tpu.memory_space<vmem>>, vector<64x32xf32>
    %c0_46 = arith.constant 0 : index
    %c0_47 = arith.constant 0 : index
    %76 = vector.load %arg22[%c0_46, %c0_47] : memref<1x32xf32, #tpu.memory_space<vmem>>, vector<1x32xf32>
    %c0_48 = arith.constant 0 : index
    %c0_49 = arith.constant 0 : index
    %77 = vector.load %arg23[%c0_48, %c0_49] : memref<6x32xf32, #tpu.memory_space<vmem>>, vector<6x32xf32>
    %cst_50 = arith.constant dense<0.000000e+00> : vector<24x96xf32>
    %78 = tpu.matmul %61, %65, %cst_50 {dimension_numbers = #tpu.dot_dimension_numbers<[1], [0], [0], [1], [0, 0, 1, 1], [], []>} : vector<24x32xf32>, vector<32x96xf32>, vector<24x96xf32> -> vector<24x96xf32>
    %79 = vector.broadcast %66 : vector<1x96xf32> to vector<24x96xf32>
    %80 = arith.addf %78, %79 : vector<24x96xf32>
    %81 = vector.extract_strided_slice %80 {offsets = [0, 0], sizes = [24, 32], strides = [1, 1]} : vector<24x96xf32> to vector<24x32xf32>
    %82 = vector.extract_strided_slice %80 {offsets = [0, 32], sizes = [24, 32], strides = [1, 1]} : vector<24x96xf32> to vector<24x32xf32>
    %83 = vector.extract_strided_slice %80 {offsets = [0, 64], sizes = [24, 32], strides = [1, 1]} : vector<24x96xf32> to vector<24x32xf32>
    %84 = vector.extract_strided_slice %81 {offsets = [0, 0], sizes = [12, 32], strides = [1, 1]} : vector<24x32xf32> to vector<12x32xf32>
    %85 = vector.extract_strided_slice %82 {offsets = [0, 0], sizes = [12, 32], strides = [1, 1]} : vector<24x32xf32> to vector<12x32xf32>
    %86 = vector.extract_strided_slice %83 {offsets = [0, 0], sizes = [12, 32], strides = [1, 1]} : vector<24x32xf32> to vector<12x32xf32>
    %87 = vector.extract_strided_slice %84 {offsets = [0, 0], sizes = [12, 8], strides = [1, 1]} : vector<12x32xf32> to vector<12x8xf32>
    %88 = vector.extract_strided_slice %85 {offsets = [0, 0], sizes = [12, 8], strides = [1, 1]} : vector<12x32xf32> to vector<12x8xf32>
    %cst_51 = arith.constant dense<0.000000e+00> : vector<12x12xf32>
    %89 = tpu.matmul %87, %88, %cst_51 {dimension_numbers = #tpu.dot_dimension_numbers<[1], [1], [0], [0], [0, 0, 1, 0], [], []>} : vector<12x8xf32>, vector<12x8xf32>, vector<12x12xf32> -> vector<12x12xf32>
    %cst_52 = arith.constant 0xFF800000 : f32
    %90 = vector.broadcast %cst_52 : f32 to vector<12x12xf32>
    %91 = arith.select %64, %90, %89 : vector<12x12xi1>, vector<12x12xf32>
    %cst_53 = arith.constant 0.353553385 : f32
    %92 = vector.broadcast %cst_53 : f32 to vector<12x12xf32>
    %93 = arith.mulf %91, %92 : vector<12x12xf32>
    %cst_54 = arith.constant dense<0xFF800000> : vector<12xf32>
    %94 = vector.multi_reduction <maximumf>, %93, %cst_54 [1] : vector<12x12xf32> to vector<12xf32>
    %95 = vector.shape_cast %94 : vector<12xf32> to vector<12x1xf32>
    %96 = vector.broadcast %95 : vector<12x1xf32> to vector<12x12xf32>
    %97 = arith.subf %93, %96 : vector<12x12xf32>
    %98 = math.exp %97 : vector<12x12xf32>
    %cst_55 = arith.constant dense<0.000000e+00> : vector<12xf32>
    %99 = vector.multi_reduction <add>, %98, %cst_55 [1] : vector<12x12xf32> to vector<12xf32>
    %100 = vector.shape_cast %99 : vector<12xf32> to vector<12x1xf32>
    %101 = vector.broadcast %100 : vector<12x1xf32> to vector<12x12xf32>
    %102 = arith.divf %98, %101 : vector<12x12xf32>
    %103 = vector.extract_strided_slice %86 {offsets = [0, 0], sizes = [12, 8], strides = [1, 1]} : vector<12x32xf32> to vector<12x8xf32>
    %cst_56 = arith.constant dense<0.000000e+00> : vector<12x8xf32>
    %104 = tpu.matmul %102, %103, %cst_56 {dimension_numbers = #tpu.dot_dimension_numbers<[1], [0], [0], [1], [0, 0, 1, 1], [], []>} : vector<12x12xf32>, vector<12x8xf32>, vector<12x8xf32> -> vector<12x8xf32>
    %105 = vector.extract_strided_slice %84 {offsets = [0, 8], sizes = [12, 8], strides = [1, 1]} : vector<12x32xf32> to vector<12x8xf32>
    %106 = vector.extract_strided_slice %85 {offsets = [0, 8], sizes = [12, 8], strides = [1, 1]} : vector<12x32xf32> to vector<12x8xf32>
    %cst_57 = arith.constant dense<0.000000e+00> : vector<12x12xf32>
    %107 = tpu.matmul %105, %106, %cst_57 {dimension_numbers = #tpu.dot_dimension_numbers<[1], [1], [0], [0], [0, 0, 1, 0], [], []>} : vector<12x8xf32>, vector<12x8xf32>, vector<12x12xf32> -> vector<12x12xf32>
    %cst_58 = arith.constant 0xFF800000 : f32
    %108 = vector.broadcast %cst_58 : f32 to vector<12x12xf32>
    %109 = arith.select %64, %108, %107 : vector<12x12xi1>, vector<12x12xf32>
    %cst_59 = arith.constant 0.353553385 : f32
    %110 = vector.broadcast %cst_59 : f32 to vector<12x12xf32>
    %111 = arith.mulf %109, %110 : vector<12x12xf32>
    %cst_60 = arith.constant dense<0xFF800000> : vector<12xf32>
    %112 = vector.multi_reduction <maximumf>, %111, %cst_60 [1] : vector<12x12xf32> to vector<12xf32>
    %113 = vector.shape_cast %112 : vector<12xf32> to vector<12x1xf32>
    %114 = vector.broadcast %113 : vector<12x1xf32> to vector<12x12xf32>
    %115 = arith.subf %111, %114 : vector<12x12xf32>
    %116 = math.exp %115 : vector<12x12xf32>
    %cst_61 = arith.constant dense<0.000000e+00> : vector<12xf32>
    %117 = vector.multi_reduction <add>, %116, %cst_61 [1] : vector<12x12xf32> to vector<12xf32>
    %118 = vector.shape_cast %117 : vector<12xf32> to vector<12x1xf32>
    %119 = vector.broadcast %118 : vector<12x1xf32> to vector<12x12xf32>
    %120 = arith.divf %116, %119 : vector<12x12xf32>
    %121 = vector.extract_strided_slice %86 {offsets = [0, 8], sizes = [12, 8], strides = [1, 1]} : vector<12x32xf32> to vector<12x8xf32>
    %cst_62 = arith.constant dense<0.000000e+00> : vector<12x8xf32>
    %122 = tpu.matmul %120, %121, %cst_62 {dimension_numbers = #tpu.dot_dimension_numbers<[1], [0], [0], [1], [0, 0, 1, 1], [], []>} : vector<12x12xf32>, vector<12x8xf32>, vector<12x8xf32> -> vector<12x8xf32>
    %123 = vector.extract_strided_slice %84 {offsets = [0, 16], sizes = [12, 8], strides = [1, 1]} : vector<12x32xf32> to vector<12x8xf32>
    %124 = vector.extract_strided_slice %85 {offsets = [0, 16], sizes = [12, 8], strides = [1, 1]} : vector<12x32xf32> to vector<12x8xf32>
    %cst_63 = arith.constant dense<0.000000e+00> : vector<12x12xf32>
    %125 = tpu.matmul %123, %124, %cst_63 {dimension_numbers = #tpu.dot_dimension_numbers<[1], [1], [0], [0], [0, 0, 1, 0], [], []>} : vector<12x8xf32>, vector<12x8xf32>, vector<12x12xf32> -> vector<12x12xf32>
    %cst_64 = arith.constant 0xFF800000 : f32
    %126 = vector.broadcast %cst_64 : f32 to vector<12x12xf32>
    %127 = arith.select %64, %126, %125 : vector<12x12xi1>, vector<12x12xf32>
    %cst_65 = arith.constant 0.353553385 : f32
    %128 = vector.broadcast %cst_65 : f32 to vector<12x12xf32>
    %129 = arith.mulf %127, %128 : vector<12x12xf32>
    %cst_66 = arith.constant dense<0xFF800000> : vector<12xf32>
    %130 = vector.multi_reduction <maximumf>, %129, %cst_66 [1] : vector<12x12xf32> to vector<12xf32>
    %131 = vector.shape_cast %130 : vector<12xf32> to vector<12x1xf32>
    %132 = vector.broadcast %131 : vector<12x1xf32> to vector<12x12xf32>
    %133 = arith.subf %129, %132 : vector<12x12xf32>
    %134 = math.exp %133 : vector<12x12xf32>
    %cst_67 = arith.constant dense<0.000000e+00> : vector<12xf32>
    %135 = vector.multi_reduction <add>, %134, %cst_67 [1] : vector<12x12xf32> to vector<12xf32>
    %136 = vector.shape_cast %135 : vector<12xf32> to vector<12x1xf32>
    %137 = vector.broadcast %136 : vector<12x1xf32> to vector<12x12xf32>
    %138 = arith.divf %134, %137 : vector<12x12xf32>
    %139 = vector.extract_strided_slice %86 {offsets = [0, 16], sizes = [12, 8], strides = [1, 1]} : vector<12x32xf32> to vector<12x8xf32>
    %cst_68 = arith.constant dense<0.000000e+00> : vector<12x8xf32>
    %140 = tpu.matmul %138, %139, %cst_68 {dimension_numbers = #tpu.dot_dimension_numbers<[1], [0], [0], [1], [0, 0, 1, 1], [], []>} : vector<12x12xf32>, vector<12x8xf32>, vector<12x8xf32> -> vector<12x8xf32>
    %141 = vector.extract_strided_slice %84 {offsets = [0, 24], sizes = [12, 8], strides = [1, 1]} : vector<12x32xf32> to vector<12x8xf32>
    %142 = vector.extract_strided_slice %85 {offsets = [0, 24], sizes = [12, 8], strides = [1, 1]} : vector<12x32xf32> to vector<12x8xf32>
    %cst_69 = arith.constant dense<0.000000e+00> : vector<12x12xf32>
    %143 = tpu.matmul %141, %142, %cst_69 {dimension_numbers = #tpu.dot_dimension_numbers<[1], [1], [0], [0], [0, 0, 1, 0], [], []>} : vector<12x8xf32>, vector<12x8xf32>, vector<12x12xf32> -> vector<12x12xf32>
    %cst_70 = arith.constant 0xFF800000 : f32
    %144 = vector.broadcast %cst_70 : f32 to vector<12x12xf32>
    %145 = arith.select %64, %144, %143 : vector<12x12xi1>, vector<12x12xf32>
    %cst_71 = arith.constant 0.353553385 : f32
    %146 = vector.broadcast %cst_71 : f32 to vector<12x12xf32>
    %147 = arith.mulf %145, %146 : vector<12x12xf32>
    %cst_72 = arith.constant dense<0xFF800000> : vector<12xf32>
    %148 = vector.multi_reduction <maximumf>, %147, %cst_72 [1] : vector<12x12xf32> to vector<12xf32>
    %149 = vector.shape_cast %148 : vector<12xf32> to vector<12x1xf32>
    %150 = vector.broadcast %149 : vector<12x1xf32> to vector<12x12xf32>
    %151 = arith.subf %147, %150 : vector<12x12xf32>
    %152 = math.exp %151 : vector<12x12xf32>
    %cst_73 = arith.constant dense<0.000000e+00> : vector<12xf32>
    %153 = vector.multi_reduction <add>, %152, %cst_73 [1] : vector<12x12xf32> to vector<12xf32>
    %154 = vector.shape_cast %153 : vector<12xf32> to vector<12x1xf32>
    %155 = vector.broadcast %154 : vector<12x1xf32> to vector<12x12xf32>
    %156 = arith.divf %152, %155 : vector<12x12xf32>
    %157 = vector.extract_strided_slice %86 {offsets = [0, 24], sizes = [12, 8], strides = [1, 1]} : vector<12x32xf32> to vector<12x8xf32>
    %cst_74 = arith.constant dense<0.000000e+00> : vector<12x8xf32>
    %158 = tpu.matmul %156, %157, %cst_74 {dimension_numbers = #tpu.dot_dimension_numbers<[1], [0], [0], [1], [0, 0, 1, 1], [], []>} : vector<12x12xf32>, vector<12x8xf32>, vector<12x8xf32> -> vector<12x8xf32>
    %159 = tpu.concatenate %104, %122, %140, %158 in 1 : vector<12x8xf32>, vector<12x8xf32>, vector<12x8xf32>, vector<12x8xf32> -> vector<12x32xf32>
    %160 = vector.extract_strided_slice %81 {offsets = [12, 0], sizes = [12, 32], strides = [1, 1]} : vector<24x32xf32> to vector<12x32xf32>
    %161 = vector.extract_strided_slice %82 {offsets = [12, 0], sizes = [12, 32], strides = [1, 1]} : vector<24x32xf32> to vector<12x32xf32>
    %162 = vector.extract_strided_slice %83 {offsets = [12, 0], sizes = [12, 32], strides = [1, 1]} : vector<24x32xf32> to vector<12x32xf32>
    %163 = vector.extract_strided_slice %160 {offsets = [0, 0], sizes = [12, 8], strides = [1, 1]} : vector<12x32xf32> to vector<12x8xf32>
    %164 = vector.extract_strided_slice %161 {offsets = [0, 0], sizes = [12, 8], strides = [1, 1]} : vector<12x32xf32> to vector<12x8xf32>
    %cst_75 = arith.constant dense<0.000000e+00> : vector<12x12xf32>
    %165 = tpu.matmul %163, %164, %cst_75 {dimension_numbers = #tpu.dot_dimension_numbers<[1], [1], [0], [0], [0, 0, 1, 0], [], []>} : vector<12x8xf32>, vector<12x8xf32>, vector<12x12xf32> -> vector<12x12xf32>
    %cst_76 = arith.constant 0xFF800000 : f32
    %166 = vector.broadcast %cst_76 : f32 to vector<12x12xf32>
    %167 = arith.select %64, %166, %165 : vector<12x12xi1>, vector<12x12xf32>
    %cst_77 = arith.constant 0.353553385 : f32
    %168 = vector.broadcast %cst_77 : f32 to vector<12x12xf32>
    %169 = arith.mulf %167, %168 : vector<12x12xf32>
    %cst_78 = arith.constant dense<0xFF800000> : vector<12xf32>
    %170 = vector.multi_reduction <maximumf>, %169, %cst_78 [1] : vector<12x12xf32> to vector<12xf32>
    %171 = vector.shape_cast %170 : vector<12xf32> to vector<12x1xf32>
    %172 = vector.broadcast %171 : vector<12x1xf32> to vector<12x12xf32>
    %173 = arith.subf %169, %172 : vector<12x12xf32>
    %174 = math.exp %173 : vector<12x12xf32>
    %cst_79 = arith.constant dense<0.000000e+00> : vector<12xf32>
    %175 = vector.multi_reduction <add>, %174, %cst_79 [1] : vector<12x12xf32> to vector<12xf32>
    %176 = vector.shape_cast %175 : vector<12xf32> to vector<12x1xf32>
    %177 = vector.broadcast %176 : vector<12x1xf32> to vector<12x12xf32>
    %178 = arith.divf %174, %177 : vector<12x12xf32>
    %179 = vector.extract_strided_slice %162 {offsets = [0, 0], sizes = [12, 8], strides = [1, 1]} : vector<12x32xf32> to vector<12x8xf32>
    %cst_80 = arith.constant dense<0.000000e+00> : vector<12x8xf32>
    %180 = tpu.matmul %178, %179, %cst_80 {dimension_numbers = #tpu.dot_dimension_numbers<[1], [0], [0], [1], [0, 0, 1, 1], [], []>} : vector<12x12xf32>, vector<12x8xf32>, vector<12x8xf32> -> vector<12x8xf32>
    %181 = vector.extract_strided_slice %160 {offsets = [0, 8], sizes = [12, 8], strides = [1, 1]} : vector<12x32xf32> to vector<12x8xf32>
    %182 = vector.extract_strided_slice %161 {offsets = [0, 8], sizes = [12, 8], strides = [1, 1]} : vector<12x32xf32> to vector<12x8xf32>
    %cst_81 = arith.constant dense<0.000000e+00> : vector<12x12xf32>
    %183 = tpu.matmul %181, %182, %cst_81 {dimension_numbers = #tpu.dot_dimension_numbers<[1], [1], [0], [0], [0, 0, 1, 0], [], []>} : vector<12x8xf32>, vector<12x8xf32>, vector<12x12xf32> -> vector<12x12xf32>
    %cst_82 = arith.constant 0xFF800000 : f32
    %184 = vector.broadcast %cst_82 : f32 to vector<12x12xf32>
    %185 = arith.select %64, %184, %183 : vector<12x12xi1>, vector<12x12xf32>
    %cst_83 = arith.constant 0.353553385 : f32
    %186 = vector.broadcast %cst_83 : f32 to vector<12x12xf32>
    %187 = arith.mulf %185, %186 : vector<12x12xf32>
    %cst_84 = arith.constant dense<0xFF800000> : vector<12xf32>
    %188 = vector.multi_reduction <maximumf>, %187, %cst_84 [1] : vector<12x12xf32> to vector<12xf32>
    %189 = vector.shape_cast %188 : vector<12xf32> to vector<12x1xf32>
    %190 = vector.broadcast %189 : vector<12x1xf32> to vector<12x12xf32>
    %191 = arith.subf %187, %190 : vector<12x12xf32>
    %192 = math.exp %191 : vector<12x12xf32>
    %cst_85 = arith.constant dense<0.000000e+00> : vector<12xf32>
    %193 = vector.multi_reduction <add>, %192, %cst_85 [1] : vector<12x12xf32> to vector<12xf32>
    %194 = vector.shape_cast %193 : vector<12xf32> to vector<12x1xf32>
    %195 = vector.broadcast %194 : vector<12x1xf32> to vector<12x12xf32>
    %196 = arith.divf %192, %195 : vector<12x12xf32>
    %197 = vector.extract_strided_slice %162 {offsets = [0, 8], sizes = [12, 8], strides = [1, 1]} : vector<12x32xf32> to vector<12x8xf32>
    %cst_86 = arith.constant dense<0.000000e+00> : vector<12x8xf32>
    %198 = tpu.matmul %196, %197, %cst_86 {dimension_numbers = #tpu.dot_dimension_numbers<[1], [0], [0], [1], [0, 0, 1, 1], [], []>} : vector<12x12xf32>, vector<12x8xf32>, vector<12x8xf32> -> vector<12x8xf32>
    %199 = vector.extract_strided_slice %160 {offsets = [0, 16], sizes = [12, 8], strides = [1, 1]} : vector<12x32xf32> to vector<12x8xf32>
    %200 = vector.extract_strided_slice %161 {offsets = [0, 16], sizes = [12, 8], strides = [1, 1]} : vector<12x32xf32> to vector<12x8xf32>
    %cst_87 = arith.constant dense<0.000000e+00> : vector<12x12xf32>
    %201 = tpu.matmul %199, %200, %cst_87 {dimension_numbers = #tpu.dot_dimension_numbers<[1], [1], [0], [0], [0, 0, 1, 0], [], []>} : vector<12x8xf32>, vector<12x8xf32>, vector<12x12xf32> -> vector<12x12xf32>
    %cst_88 = arith.constant 0xFF800000 : f32
    %202 = vector.broadcast %cst_88 : f32 to vector<12x12xf32>
    %203 = arith.select %64, %202, %201 : vector<12x12xi1>, vector<12x12xf32>
    %cst_89 = arith.constant 0.353553385 : f32
    %204 = vector.broadcast %cst_89 : f32 to vector<12x12xf32>
    %205 = arith.mulf %203, %204 : vector<12x12xf32>
    %cst_90 = arith.constant dense<0xFF800000> : vector<12xf32>
    %206 = vector.multi_reduction <maximumf>, %205, %cst_90 [1] : vector<12x12xf32> to vector<12xf32>
    %207 = vector.shape_cast %206 : vector<12xf32> to vector<12x1xf32>
    %208 = vector.broadcast %207 : vector<12x1xf32> to vector<12x12xf32>
    %209 = arith.subf %205, %208 : vector<12x12xf32>
    %210 = math.exp %209 : vector<12x12xf32>
    %cst_91 = arith.constant dense<0.000000e+00> : vector<12xf32>
    %211 = vector.multi_reduction <add>, %210, %cst_91 [1] : vector<12x12xf32> to vector<12xf32>
    %212 = vector.shape_cast %211 : vector<12xf32> to vector<12x1xf32>
    %213 = vector.broadcast %212 : vector<12x1xf32> to vector<12x12xf32>
    %214 = arith.divf %210, %213 : vector<12x12xf32>
    %215 = vector.extract_strided_slice %162 {offsets = [0, 16], sizes = [12, 8], strides = [1, 1]} : vector<12x32xf32> to vector<12x8xf32>
    %cst_92 = arith.constant dense<0.000000e+00> : vector<12x8xf32>
    %216 = tpu.matmul %214, %215, %cst_92 {dimension_numbers = #tpu.dot_dimension_numbers<[1], [0], [0], [1], [0, 0, 1, 1], [], []>} : vector<12x12xf32>, vector<12x8xf32>, vector<12x8xf32> -> vector<12x8xf32>
    %217 = vector.extract_strided_slice %160 {offsets = [0, 24], sizes = [12, 8], strides = [1, 1]} : vector<12x32xf32> to vector<12x8xf32>
    %218 = vector.extract_strided_slice %161 {offsets = [0, 24], sizes = [12, 8], strides = [1, 1]} : vector<12x32xf32> to vector<12x8xf32>
    %cst_93 = arith.constant dense<0.000000e+00> : vector<12x12xf32>
    %219 = tpu.matmul %217, %218, %cst_93 {dimension_numbers = #tpu.dot_dimension_numbers<[1], [1], [0], [0], [0, 0, 1, 0], [], []>} : vector<12x8xf32>, vector<12x8xf32>, vector<12x12xf32> -> vector<12x12xf32>
    %cst_94 = arith.constant 0xFF800000 : f32
    %220 = vector.broadcast %cst_94 : f32 to vector<12x12xf32>
    %221 = arith.select %64, %220, %219 : vector<12x12xi1>, vector<12x12xf32>
    %cst_95 = arith.constant 0.353553385 : f32
    %222 = vector.broadcast %cst_95 : f32 to vector<12x12xf32>
    %223 = arith.mulf %221, %222 : vector<12x12xf32>
    %cst_96 = arith.constant dense<0xFF800000> : vector<12xf32>
    %224 = vector.multi_reduction <maximumf>, %223, %cst_96 [1] : vector<12x12xf32> to vector<12xf32>
    %225 = vector.shape_cast %224 : vector<12xf32> to vector<12x1xf32>
    %226 = vector.broadcast %225 : vector<12x1xf32> to vector<12x12xf32>
    %227 = arith.subf %223, %226 : vector<12x12xf32>
    %228 = math.exp %227 : vector<12x12xf32>
    %cst_97 = arith.constant dense<0.000000e+00> : vector<12xf32>
    %229 = vector.multi_reduction <add>, %228, %cst_97 [1] : vector<12x12xf32> to vector<12xf32>
    %230 = vector.shape_cast %229 : vector<12xf32> to vector<12x1xf32>
    %231 = vector.broadcast %230 : vector<12x1xf32> to vector<12x12xf32>
    %232 = arith.divf %228, %231 : vector<12x12xf32>
    %233 = vector.extract_strided_slice %162 {offsets = [0, 24], sizes = [12, 8], strides = [1, 1]} : vector<12x32xf32> to vector<12x8xf32>
    %cst_98 = arith.constant dense<0.000000e+00> : vector<12x8xf32>
    %234 = tpu.matmul %232, %233, %cst_98 {dimension_numbers = #tpu.dot_dimension_numbers<[1], [0], [0], [1], [0, 0, 1, 1], [], []>} : vector<12x12xf32>, vector<12x8xf32>, vector<12x8xf32> -> vector<12x8xf32>
    %235 = tpu.concatenate %180, %198, %216, %234 in 1 : vector<12x8xf32>, vector<12x8xf32>, vector<12x8xf32>, vector<12x8xf32> -> vector<12x32xf32>
    %236 = tpu.concatenate %159, %235 in 0 : vector<12x32xf32>, vector<12x32xf32> -> vector<24x32xf32>
    %cst_99 = arith.constant dense<0.000000e+00> : vector<24x32xf32>
    %237 = tpu.matmul %236, %67, %cst_99 {dimension_numbers = #tpu.dot_dimension_numbers<[1], [0], [0], [1], [0, 0, 1, 1], [], []>} : vector<24x32xf32>, vector<32x32xf32>, vector<24x32xf32> -> vector<24x32xf32>
    %238 = vector.broadcast %68 : vector<1x32xf32> to vector<24x32xf32>
    %239 = arith.addf %237, %238 : vector<24x32xf32>
    %240 = arith.addf %61, %239 : vector<24x32xf32>
    %241 = vector.extract_strided_slice %77 {offsets = [0, 0], sizes = [1, 32], strides = [1, 1]} : vector<6x32xf32> to vector<1x32xf32>
    %242 = vector.extract_strided_slice %77 {offsets = [1, 0], sizes = [1, 32], strides = [1, 1]} : vector<6x32xf32> to vector<1x32xf32>
    %cst_100 = arith.constant dense<0.000000e+00> : vector<24xf32>
    %243 = vector.multi_reduction <add>, %240, %cst_100 [1] : vector<24x32xf32> to vector<24xf32>
    %244 = vector.shape_cast %243 : vector<24xf32> to vector<24x1xf32>
    %cst_101 = arith.constant 3.200000e+01 : f32
    %245 = vector.broadcast %cst_101 : f32 to vector<24x1xf32>
    %246 = arith.divf %244, %245 : vector<24x1xf32>
    %247 = vector.broadcast %246 : vector<24x1xf32> to vector<24x32xf32>
    %248 = arith.subf %240, %247 : vector<24x32xf32>
    %249 = arith.mulf %248, %248 : vector<24x32xf32>
    %cst_102 = arith.constant dense<0.000000e+00> : vector<24xf32>
    %250 = vector.multi_reduction <add>, %249, %cst_102 [1] : vector<24x32xf32> to vector<24xf32>
    %251 = vector.shape_cast %250 : vector<24xf32> to vector<24x1xf32>
    %cst_103 = arith.constant 3.200000e+01 : f32
    %252 = vector.broadcast %cst_103 : f32 to vector<24x1xf32>
    %253 = arith.divf %251, %252 : vector<24x1xf32>
    %cst_104 = arith.constant 9.99999974E-6 : f32
    %254 = vector.broadcast %cst_104 : f32 to vector<24x1xf32>
    %255 = arith.addf %253, %254 : vector<24x1xf32>
    %256 = math.rsqrt %255 : vector<24x1xf32>
    %257 = vector.broadcast %256 : vector<24x1xf32> to vector<24x32xf32>
    %258 = arith.mulf %248, %257 : vector<24x32xf32>
    %259 = vector.broadcast %241 : vector<1x32xf32> to vector<24x32xf32>
    %260 = arith.mulf %258, %259 : vector<24x32xf32>
    %261 = vector.broadcast %242 : vector<1x32xf32> to vector<24x32xf32>
    %262 = arith.addf %260, %261 : vector<24x32xf32>
    %263 = vector.extract_strided_slice %69 {offsets = [0, 0], sizes = [32, 32], strides = [1, 1]} : vector<32x96xf32> to vector<32x32xf32>
    %cst_105 = arith.constant dense<0.000000e+00> : vector<24x32xf32>
    %264 = tpu.matmul %262, %263, %cst_105 {dimension_numbers = #tpu.dot_dimension_numbers<[1], [0], [0], [1], [0, 0, 1, 1], [], []>} : vector<24x32xf32>, vector<32x32xf32>, vector<24x32xf32> -> vector<24x32xf32>
    %265 = vector.extract_strided_slice %70 {offsets = [0, 0], sizes = [1, 32], strides = [1, 1]} : vector<1x96xf32> to vector<1x32xf32>
    %266 = vector.broadcast %265 : vector<1x32xf32> to vector<24x32xf32>
    %267 = arith.addf %264, %266 : vector<24x32xf32>
    %268 = vector.extract_strided_slice %69 {offsets = [0, 32], sizes = [32, 64], strides = [1, 1]} : vector<32x96xf32> to vector<32x64xf32>
    %cst_106 = arith.constant dense<0.000000e+00> : vector<16x64xf32>
    %269 = tpu.matmul %34, %268, %cst_106 {dimension_numbers = #tpu.dot_dimension_numbers<[1], [0], [0], [1], [0, 0, 1, 1], [], []>} : vector<16x32xf32>, vector<32x64xf32>, vector<16x64xf32> -> vector<16x64xf32>
    %270 = vector.extract_strided_slice %70 {offsets = [0, 32], sizes = [1, 64], strides = [1, 1]} : vector<1x96xf32> to vector<1x64xf32>
    %271 = vector.broadcast %270 : vector<1x64xf32> to vector<16x64xf32>
    %272 = arith.addf %269, %271 : vector<16x64xf32>
    %273 = vector.extract_strided_slice %272 {offsets = [0, 0], sizes = [16, 32], strides = [1, 1]} : vector<16x64xf32> to vector<16x32xf32>
    %274 = vector.extract_strided_slice %272 {offsets = [0, 32], sizes = [16, 32], strides = [1, 1]} : vector<16x64xf32> to vector<16x32xf32>
    %275 = vector.extract_strided_slice %267 {offsets = [0, 0], sizes = [12, 32], strides = [1, 1]} : vector<24x32xf32> to vector<12x32xf32>
    %276 = vector.extract_strided_slice %273 {offsets = [0, 0], sizes = [8, 32], strides = [1, 1]} : vector<16x32xf32> to vector<8x32xf32>
    %277 = vector.extract_strided_slice %274 {offsets = [0, 0], sizes = [8, 32], strides = [1, 1]} : vector<16x32xf32> to vector<8x32xf32>
    %278 = vector.extract_strided_slice %275 {offsets = [0, 0], sizes = [12, 8], strides = [1, 1]} : vector<12x32xf32> to vector<12x8xf32>
    %279 = vector.extract_strided_slice %276 {offsets = [0, 0], sizes = [8, 8], strides = [1, 1]} : vector<8x32xf32> to vector<8x8xf32>
    %cst_107 = arith.constant dense<0.000000e+00> : vector<12x8xf32>
    %280 = tpu.matmul %278, %279, %cst_107 {dimension_numbers = #tpu.dot_dimension_numbers<[1], [1], [0], [0], [0, 0, 1, 0], [], []>} : vector<12x8xf32>, vector<8x8xf32>, vector<12x8xf32> -> vector<12x8xf32>
    %cst_108 = arith.constant 0.353553385 : f32
    %281 = vector.broadcast %cst_108 : f32 to vector<12x8xf32>
    %282 = arith.mulf %280, %281 : vector<12x8xf32>
    %cst_109 = arith.constant dense<0xFF800000> : vector<12xf32>
    %283 = vector.multi_reduction <maximumf>, %282, %cst_109 [1] : vector<12x8xf32> to vector<12xf32>
    %284 = vector.shape_cast %283 : vector<12xf32> to vector<12x1xf32>
    %285 = vector.broadcast %284 : vector<12x1xf32> to vector<12x8xf32>
    %286 = arith.subf %282, %285 : vector<12x8xf32>
    %287 = math.exp %286 : vector<12x8xf32>
    %cst_110 = arith.constant dense<0.000000e+00> : vector<12xf32>
    %288 = vector.multi_reduction <add>, %287, %cst_110 [1] : vector<12x8xf32> to vector<12xf32>
    %289 = vector.shape_cast %288 : vector<12xf32> to vector<12x1xf32>
    %290 = vector.broadcast %289 : vector<12x1xf32> to vector<12x8xf32>
    %291 = arith.divf %287, %290 : vector<12x8xf32>
    %292 = vector.extract_strided_slice %277 {offsets = [0, 0], sizes = [8, 8], strides = [1, 1]} : vector<8x32xf32> to vector<8x8xf32>
    %cst_111 = arith.constant dense<0.000000e+00> : vector<12x8xf32>
    %293 = tpu.matmul %291, %292, %cst_111 {dimension_numbers = #tpu.dot_dimension_numbers<[1], [0], [0], [1], [0, 0, 1, 1], [], []>} : vector<12x8xf32>, vector<8x8xf32>, vector<12x8xf32> -> vector<12x8xf32>
    %294 = vector.extract_strided_slice %275 {offsets = [0, 8], sizes = [12, 8], strides = [1, 1]} : vector<12x32xf32> to vector<12x8xf32>
    %295 = vector.extract_strided_slice %276 {offsets = [0, 8], sizes = [8, 8], strides = [1, 1]} : vector<8x32xf32> to vector<8x8xf32>
    %cst_112 = arith.constant dense<0.000000e+00> : vector<12x8xf32>
    %296 = tpu.matmul %294, %295, %cst_112 {dimension_numbers = #tpu.dot_dimension_numbers<[1], [1], [0], [0], [0, 0, 1, 0], [], []>} : vector<12x8xf32>, vector<8x8xf32>, vector<12x8xf32> -> vector<12x8xf32>
    %cst_113 = arith.constant 0.353553385 : f32
    %297 = vector.broadcast %cst_113 : f32 to vector<12x8xf32>
    %298 = arith.mulf %296, %297 : vector<12x8xf32>
    %cst_114 = arith.constant dense<0xFF800000> : vector<12xf32>
    %299 = vector.multi_reduction <maximumf>, %298, %cst_114 [1] : vector<12x8xf32> to vector<12xf32>
    %300 = vector.shape_cast %299 : vector<12xf32> to vector<12x1xf32>
    %301 = vector.broadcast %300 : vector<12x1xf32> to vector<12x8xf32>
    %302 = arith.subf %298, %301 : vector<12x8xf32>
    %303 = math.exp %302 : vector<12x8xf32>
    %cst_115 = arith.constant dense<0.000000e+00> : vector<12xf32>
    %304 = vector.multi_reduction <add>, %303, %cst_115 [1] : vector<12x8xf32> to vector<12xf32>
    %305 = vector.shape_cast %304 : vector<12xf32> to vector<12x1xf32>
    %306 = vector.broadcast %305 : vector<12x1xf32> to vector<12x8xf32>
    %307 = arith.divf %303, %306 : vector<12x8xf32>
    %308 = vector.extract_strided_slice %277 {offsets = [0, 8], sizes = [8, 8], strides = [1, 1]} : vector<8x32xf32> to vector<8x8xf32>
    %cst_116 = arith.constant dense<0.000000e+00> : vector<12x8xf32>
    %309 = tpu.matmul %307, %308, %cst_116 {dimension_numbers = #tpu.dot_dimension_numbers<[1], [0], [0], [1], [0, 0, 1, 1], [], []>} : vector<12x8xf32>, vector<8x8xf32>, vector<12x8xf32> -> vector<12x8xf32>
    %310 = vector.extract_strided_slice %275 {offsets = [0, 16], sizes = [12, 8], strides = [1, 1]} : vector<12x32xf32> to vector<12x8xf32>
    %311 = vector.extract_strided_slice %276 {offsets = [0, 16], sizes = [8, 8], strides = [1, 1]} : vector<8x32xf32> to vector<8x8xf32>
    %cst_117 = arith.constant dense<0.000000e+00> : vector<12x8xf32>
    %312 = tpu.matmul %310, %311, %cst_117 {dimension_numbers = #tpu.dot_dimension_numbers<[1], [1], [0], [0], [0, 0, 1, 0], [], []>} : vector<12x8xf32>, vector<8x8xf32>, vector<12x8xf32> -> vector<12x8xf32>
    %cst_118 = arith.constant 0.353553385 : f32
    %313 = vector.broadcast %cst_118 : f32 to vector<12x8xf32>
    %314 = arith.mulf %312, %313 : vector<12x8xf32>
    %cst_119 = arith.constant dense<0xFF800000> : vector<12xf32>
    %315 = vector.multi_reduction <maximumf>, %314, %cst_119 [1] : vector<12x8xf32> to vector<12xf32>
    %316 = vector.shape_cast %315 : vector<12xf32> to vector<12x1xf32>
    %317 = vector.broadcast %316 : vector<12x1xf32> to vector<12x8xf32>
    %318 = arith.subf %314, %317 : vector<12x8xf32>
    %319 = math.exp %318 : vector<12x8xf32>
    %cst_120 = arith.constant dense<0.000000e+00> : vector<12xf32>
    %320 = vector.multi_reduction <add>, %319, %cst_120 [1] : vector<12x8xf32> to vector<12xf32>
    %321 = vector.shape_cast %320 : vector<12xf32> to vector<12x1xf32>
    %322 = vector.broadcast %321 : vector<12x1xf32> to vector<12x8xf32>
    %323 = arith.divf %319, %322 : vector<12x8xf32>
    %324 = vector.extract_strided_slice %277 {offsets = [0, 16], sizes = [8, 8], strides = [1, 1]} : vector<8x32xf32> to vector<8x8xf32>
    %cst_121 = arith.constant dense<0.000000e+00> : vector<12x8xf32>
    %325 = tpu.matmul %323, %324, %cst_121 {dimension_numbers = #tpu.dot_dimension_numbers<[1], [0], [0], [1], [0, 0, 1, 1], [], []>} : vector<12x8xf32>, vector<8x8xf32>, vector<12x8xf32> -> vector<12x8xf32>
    %326 = vector.extract_strided_slice %275 {offsets = [0, 24], sizes = [12, 8], strides = [1, 1]} : vector<12x32xf32> to vector<12x8xf32>
    %327 = vector.extract_strided_slice %276 {offsets = [0, 24], sizes = [8, 8], strides = [1, 1]} : vector<8x32xf32> to vector<8x8xf32>
    %cst_122 = arith.constant dense<0.000000e+00> : vector<12x8xf32>
    %328 = tpu.matmul %326, %327, %cst_122 {dimension_numbers = #tpu.dot_dimension_numbers<[1], [1], [0], [0], [0, 0, 1, 0], [], []>} : vector<12x8xf32>, vector<8x8xf32>, vector<12x8xf32> -> vector<12x8xf32>
    %cst_123 = arith.constant 0.353553385 : f32
    %329 = vector.broadcast %cst_123 : f32 to vector<12x8xf32>
    %330 = arith.mulf %328, %329 : vector<12x8xf32>
    %cst_124 = arith.constant dense<0xFF800000> : vector<12xf32>
    %331 = vector.multi_reduction <maximumf>, %330, %cst_124 [1] : vector<12x8xf32> to vector<12xf32>
    %332 = vector.shape_cast %331 : vector<12xf32> to vector<12x1xf32>
    %333 = vector.broadcast %332 : vector<12x1xf32> to vector<12x8xf32>
    %334 = arith.subf %330, %333 : vector<12x8xf32>
    %335 = math.exp %334 : vector<12x8xf32>
    %cst_125 = arith.constant dense<0.000000e+00> : vector<12xf32>
    %336 = vector.multi_reduction <add>, %335, %cst_125 [1] : vector<12x8xf32> to vector<12xf32>
    %337 = vector.shape_cast %336 : vector<12xf32> to vector<12x1xf32>
    %338 = vector.broadcast %337 : vector<12x1xf32> to vector<12x8xf32>
    %339 = arith.divf %335, %338 : vector<12x8xf32>
    %340 = vector.extract_strided_slice %277 {offsets = [0, 24], sizes = [8, 8], strides = [1, 1]} : vector<8x32xf32> to vector<8x8xf32>
    %cst_126 = arith.constant dense<0.000000e+00> : vector<12x8xf32>
    %341 = tpu.matmul %339, %340, %cst_126 {dimension_numbers = #tpu.dot_dimension_numbers<[1], [0], [0], [1], [0, 0, 1, 1], [], []>} : vector<12x8xf32>, vector<8x8xf32>, vector<12x8xf32> -> vector<12x8xf32>
    %342 = tpu.concatenate %293, %309, %325, %341 in 1 : vector<12x8xf32>, vector<12x8xf32>, vector<12x8xf32>, vector<12x8xf32> -> vector<12x32xf32>
    %343 = vector.extract_strided_slice %267 {offsets = [12, 0], sizes = [12, 32], strides = [1, 1]} : vector<24x32xf32> to vector<12x32xf32>
    %344 = vector.extract_strided_slice %273 {offsets = [8, 0], sizes = [8, 32], strides = [1, 1]} : vector<16x32xf32> to vector<8x32xf32>
    %345 = vector.extract_strided_slice %274 {offsets = [8, 0], sizes = [8, 32], strides = [1, 1]} : vector<16x32xf32> to vector<8x32xf32>
    %346 = vector.extract_strided_slice %343 {offsets = [0, 0], sizes = [12, 8], strides = [1, 1]} : vector<12x32xf32> to vector<12x8xf32>
    %347 = vector.extract_strided_slice %344 {offsets = [0, 0], sizes = [8, 8], strides = [1, 1]} : vector<8x32xf32> to vector<8x8xf32>
    %cst_127 = arith.constant dense<0.000000e+00> : vector<12x8xf32>
    %348 = tpu.matmul %346, %347, %cst_127 {dimension_numbers = #tpu.dot_dimension_numbers<[1], [1], [0], [0], [0, 0, 1, 0], [], []>} : vector<12x8xf32>, vector<8x8xf32>, vector<12x8xf32> -> vector<12x8xf32>
    %cst_128 = arith.constant 0.353553385 : f32
    %349 = vector.broadcast %cst_128 : f32 to vector<12x8xf32>
    %350 = arith.mulf %348, %349 : vector<12x8xf32>
    %cst_129 = arith.constant dense<0xFF800000> : vector<12xf32>
    %351 = vector.multi_reduction <maximumf>, %350, %cst_129 [1] : vector<12x8xf32> to vector<12xf32>
    %352 = vector.shape_cast %351 : vector<12xf32> to vector<12x1xf32>
    %353 = vector.broadcast %352 : vector<12x1xf32> to vector<12x8xf32>
    %354 = arith.subf %350, %353 : vector<12x8xf32>
    %355 = math.exp %354 : vector<12x8xf32>
    %cst_130 = arith.constant dense<0.000000e+00> : vector<12xf32>
    %356 = vector.multi_reduction <add>, %355, %cst_130 [1] : vector<12x8xf32> to vector<12xf32>
    %357 = vector.shape_cast %356 : vector<12xf32> to vector<12x1xf32>
    %358 = vector.broadcast %357 : vector<12x1xf32> to vector<12x8xf32>
    %359 = arith.divf %355, %358 : vector<12x8xf32>
    %360 = vector.extract_strided_slice %345 {offsets = [0, 0], sizes = [8, 8], strides = [1, 1]} : vector<8x32xf32> to vector<8x8xf32>
    %cst_131 = arith.constant dense<0.000000e+00> : vector<12x8xf32>
    %361 = tpu.matmul %359, %360, %cst_131 {dimension_numbers = #tpu.dot_dimension_numbers<[1], [0], [0], [1], [0, 0, 1, 1], [], []>} : vector<12x8xf32>, vector<8x8xf32>, vector<12x8xf32> -> vector<12x8xf32>
    %362 = vector.extract_strided_slice %343 {offsets = [0, 8], sizes = [12, 8], strides = [1, 1]} : vector<12x32xf32> to vector<12x8xf32>
    %363 = vector.extract_strided_slice %344 {offsets = [0, 8], sizes = [8, 8], strides = [1, 1]} : vector<8x32xf32> to vector<8x8xf32>
    %cst_132 = arith.constant dense<0.000000e+00> : vector<12x8xf32>
    %364 = tpu.matmul %362, %363, %cst_132 {dimension_numbers = #tpu.dot_dimension_numbers<[1], [1], [0], [0], [0, 0, 1, 0], [], []>} : vector<12x8xf32>, vector<8x8xf32>, vector<12x8xf32> -> vector<12x8xf32>
    %cst_133 = arith.constant 0.353553385 : f32
    %365 = vector.broadcast %cst_133 : f32 to vector<12x8xf32>
    %366 = arith.mulf %364, %365 : vector<12x8xf32>
    %cst_134 = arith.constant dense<0xFF800000> : vector<12xf32>
    %367 = vector.multi_reduction <maximumf>, %366, %cst_134 [1] : vector<12x8xf32> to vector<12xf32>
    %368 = vector.shape_cast %367 : vector<12xf32> to vector<12x1xf32>
    %369 = vector.broadcast %368 : vector<12x1xf32> to vector<12x8xf32>
    %370 = arith.subf %366, %369 : vector<12x8xf32>
    %371 = math.exp %370 : vector<12x8xf32>
    %cst_135 = arith.constant dense<0.000000e+00> : vector<12xf32>
    %372 = vector.multi_reduction <add>, %371, %cst_135 [1] : vector<12x8xf32> to vector<12xf32>
    %373 = vector.shape_cast %372 : vector<12xf32> to vector<12x1xf32>
    %374 = vector.broadcast %373 : vector<12x1xf32> to vector<12x8xf32>
    %375 = arith.divf %371, %374 : vector<12x8xf32>
    %376 = vector.extract_strided_slice %345 {offsets = [0, 8], sizes = [8, 8], strides = [1, 1]} : vector<8x32xf32> to vector<8x8xf32>
    %cst_136 = arith.constant dense<0.000000e+00> : vector<12x8xf32>
    %377 = tpu.matmul %375, %376, %cst_136 {dimension_numbers = #tpu.dot_dimension_numbers<[1], [0], [0], [1], [0, 0, 1, 1], [], []>} : vector<12x8xf32>, vector<8x8xf32>, vector<12x8xf32> -> vector<12x8xf32>
    %378 = vector.extract_strided_slice %343 {offsets = [0, 16], sizes = [12, 8], strides = [1, 1]} : vector<12x32xf32> to vector<12x8xf32>
    %379 = vector.extract_strided_slice %344 {offsets = [0, 16], sizes = [8, 8], strides = [1, 1]} : vector<8x32xf32> to vector<8x8xf32>
    %cst_137 = arith.constant dense<0.000000e+00> : vector<12x8xf32>
    %380 = tpu.matmul %378, %379, %cst_137 {dimension_numbers = #tpu.dot_dimension_numbers<[1], [1], [0], [0], [0, 0, 1, 0], [], []>} : vector<12x8xf32>, vector<8x8xf32>, vector<12x8xf32> -> vector<12x8xf32>
    %cst_138 = arith.constant 0.353553385 : f32
    %381 = vector.broadcast %cst_138 : f32 to vector<12x8xf32>
    %382 = arith.mulf %380, %381 : vector<12x8xf32>
    %cst_139 = arith.constant dense<0xFF800000> : vector<12xf32>
    %383 = vector.multi_reduction <maximumf>, %382, %cst_139 [1] : vector<12x8xf32> to vector<12xf32>
    %384 = vector.shape_cast %383 : vector<12xf32> to vector<12x1xf32>
    %385 = vector.broadcast %384 : vector<12x1xf32> to vector<12x8xf32>
    %386 = arith.subf %382, %385 : vector<12x8xf32>
    %387 = math.exp %386 : vector<12x8xf32>
    %cst_140 = arith.constant dense<0.000000e+00> : vector<12xf32>
    %388 = vector.multi_reduction <add>, %387, %cst_140 [1] : vector<12x8xf32> to vector<12xf32>
    %389 = vector.shape_cast %388 : vector<12xf32> to vector<12x1xf32>
    %390 = vector.broadcast %389 : vector<12x1xf32> to vector<12x8xf32>
    %391 = arith.divf %387, %390 : vector<12x8xf32>
    %392 = vector.extract_strided_slice %345 {offsets = [0, 16], sizes = [8, 8], strides = [1, 1]} : vector<8x32xf32> to vector<8x8xf32>
    %cst_141 = arith.constant dense<0.000000e+00> : vector<12x8xf32>
    %393 = tpu.matmul %391, %392, %cst_141 {dimension_numbers = #tpu.dot_dimension_numbers<[1], [0], [0], [1], [0, 0, 1, 1], [], []>} : vector<12x8xf32>, vector<8x8xf32>, vector<12x8xf32> -> vector<12x8xf32>
    %394 = vector.extract_strided_slice %343 {offsets = [0, 24], sizes = [12, 8], strides = [1, 1]} : vector<12x32xf32> to vector<12x8xf32>
    %395 = vector.extract_strided_slice %344 {offsets = [0, 24], sizes = [8, 8], strides = [1, 1]} : vector<8x32xf32> to vector<8x8xf32>
    %cst_142 = arith.constant dense<0.000000e+00> : vector<12x8xf32>
    %396 = tpu.matmul %394, %395, %cst_142 {dimension_numbers = #tpu.dot_dimension_numbers<[1], [1], [0], [0], [0, 0, 1, 0], [], []>} : vector<12x8xf32>, vector<8x8xf32>, vector<12x8xf32> -> vector<12x8xf32>
    %cst_143 = arith.constant 0.353553385 : f32
    %397 = vector.broadcast %cst_143 : f32 to vector<12x8xf32>
    %398 = arith.mulf %396, %397 : vector<12x8xf32>
    %cst_144 = arith.constant dense<0xFF800000> : vector<12xf32>
    %399 = vector.multi_reduction <maximumf>, %398, %cst_144 [1] : vector<12x8xf32> to vector<12xf32>
    %400 = vector.shape_cast %399 : vector<12xf32> to vector<12x1xf32>
    %401 = vector.broadcast %400 : vector<12x1xf32> to vector<12x8xf32>
    %402 = arith.subf %398, %401 : vector<12x8xf32>
    %403 = math.exp %402 : vector<12x8xf32>
    %cst_145 = arith.constant dense<0.000000e+00> : vector<12xf32>
    %404 = vector.multi_reduction <add>, %403, %cst_145 [1] : vector<12x8xf32> to vector<12xf32>
    %405 = vector.shape_cast %404 : vector<12xf32> to vector<12x1xf32>
    %406 = vector.broadcast %405 : vector<12x1xf32> to vector<12x8xf32>
    %407 = arith.divf %403, %406 : vector<12x8xf32>
    %408 = vector.extract_strided_slice %345 {offsets = [0, 24], sizes = [8, 8], strides = [1, 1]} : vector<8x32xf32> to vector<8x8xf32>
    %cst_146 = arith.constant dense<0.000000e+00> : vector<12x8xf32>
    %409 = tpu.matmul %407, %408, %cst_146 {dimension_numbers = #tpu.dot_dimension_numbers<[1], [0], [0], [1], [0, 0, 1, 1], [], []>} : vector<12x8xf32>, vector<8x8xf32>, vector<12x8xf32> -> vector<12x8xf32>
    %410 = tpu.concatenate %361, %377, %393, %409 in 1 : vector<12x8xf32>, vector<12x8xf32>, vector<12x8xf32>, vector<12x8xf32> -> vector<12x32xf32>
    %411 = tpu.concatenate %342, %410 in 0 : vector<12x32xf32>, vector<12x32xf32> -> vector<24x32xf32>
    %cst_147 = arith.constant dense<0.000000e+00> : vector<24x32xf32>
    %412 = tpu.matmul %411, %71, %cst_147 {dimension_numbers = #tpu.dot_dimension_numbers<[1], [0], [0], [1], [0, 0, 1, 1], [], []>} : vector<24x32xf32>, vector<32x32xf32>, vector<24x32xf32> -> vector<24x32xf32>
    %413 = vector.broadcast %72 : vector<1x32xf32> to vector<24x32xf32>
    %414 = arith.addf %412, %413 : vector<24x32xf32>
    %415 = arith.addf %262, %414 : vector<24x32xf32>
    %416 = vector.extract_strided_slice %77 {offsets = [2, 0], sizes = [1, 32], strides = [1, 1]} : vector<6x32xf32> to vector<1x32xf32>
    %417 = vector.extract_strided_slice %77 {offsets = [3, 0], sizes = [1, 32], strides = [1, 1]} : vector<6x32xf32> to vector<1x32xf32>
    %cst_148 = arith.constant dense<0.000000e+00> : vector<24xf32>
    %418 = vector.multi_reduction <add>, %415, %cst_148 [1] : vector<24x32xf32> to vector<24xf32>
    %419 = vector.shape_cast %418 : vector<24xf32> to vector<24x1xf32>
    %cst_149 = arith.constant 3.200000e+01 : f32
    %420 = vector.broadcast %cst_149 : f32 to vector<24x1xf32>
    %421 = arith.divf %419, %420 : vector<24x1xf32>
    %422 = vector.broadcast %421 : vector<24x1xf32> to vector<24x32xf32>
    %423 = arith.subf %415, %422 : vector<24x32xf32>
    %424 = arith.mulf %423, %423 : vector<24x32xf32>
    %cst_150 = arith.constant dense<0.000000e+00> : vector<24xf32>
    %425 = vector.multi_reduction <add>, %424, %cst_150 [1] : vector<24x32xf32> to vector<24xf32>
    %426 = vector.shape_cast %425 : vector<24xf32> to vector<24x1xf32>
    %cst_151 = arith.constant 3.200000e+01 : f32
    %427 = vector.broadcast %cst_151 : f32 to vector<24x1xf32>
    %428 = arith.divf %426, %427 : vector<24x1xf32>
    %cst_152 = arith.constant 9.99999974E-6 : f32
    %429 = vector.broadcast %cst_152 : f32 to vector<24x1xf32>
    %430 = arith.addf %428, %429 : vector<24x1xf32>
    %431 = math.rsqrt %430 : vector<24x1xf32>
    %432 = vector.broadcast %431 : vector<24x1xf32> to vector<24x32xf32>
    %433 = arith.mulf %423, %432 : vector<24x32xf32>
    %434 = vector.broadcast %416 : vector<1x32xf32> to vector<24x32xf32>
    %435 = arith.mulf %433, %434 : vector<24x32xf32>
    %436 = vector.broadcast %417 : vector<1x32xf32> to vector<24x32xf32>
    %437 = arith.addf %435, %436 : vector<24x32xf32>
    %cst_153 = arith.constant dense<0.000000e+00> : vector<24x64xf32>
    %438 = tpu.matmul %437, %73, %cst_153 {dimension_numbers = #tpu.dot_dimension_numbers<[1], [0], [0], [1], [0, 0, 1, 1], [], []>} : vector<24x32xf32>, vector<32x64xf32>, vector<24x64xf32> -> vector<24x64xf32>
    %439 = vector.broadcast %74 : vector<1x64xf32> to vector<24x64xf32>
    %440 = arith.addf %438, %439 : vector<24x64xf32>
    %cst_154 = arith.constant 0.000000e+00 : f32
    %441 = vector.broadcast %cst_154 : f32 to vector<24x64xf32>
    %442 = arith.maximumf %440, %441 : vector<24x64xf32>
    %cst_155 = arith.constant dense<0.000000e+00> : vector<24x32xf32>
    %443 = tpu.matmul %442, %75, %cst_155 {dimension_numbers = #tpu.dot_dimension_numbers<[1], [0], [0], [1], [0, 0, 1, 1], [], []>} : vector<24x64xf32>, vector<64x32xf32>, vector<24x32xf32> -> vector<24x32xf32>
    %444 = vector.broadcast %76 : vector<1x32xf32> to vector<24x32xf32>
    %445 = arith.addf %443, %444 : vector<24x32xf32>
    %446 = arith.addf %437, %445 : vector<24x32xf32>
    %447 = vector.extract_strided_slice %77 {offsets = [4, 0], sizes = [1, 32], strides = [1, 1]} : vector<6x32xf32> to vector<1x32xf32>
    %448 = vector.extract_strided_slice %77 {offsets = [5, 0], sizes = [1, 32], strides = [1, 1]} : vector<6x32xf32> to vector<1x32xf32>
    %cst_156 = arith.constant dense<0.000000e+00> : vector<24xf32>
    %449 = vector.multi_reduction <add>, %446, %cst_156 [1] : vector<24x32xf32> to vector<24xf32>
    %450 = vector.shape_cast %449 : vector<24xf32> to vector<24x1xf32>
    %cst_157 = arith.constant 3.200000e+01 : f32
    %451 = vector.broadcast %cst_157 : f32 to vector<24x1xf32>
    %452 = arith.divf %450, %451 : vector<24x1xf32>
    %453 = vector.broadcast %452 : vector<24x1xf32> to vector<24x32xf32>
    %454 = arith.subf %446, %453 : vector<24x32xf32>
    %455 = arith.mulf %454, %454 : vector<24x32xf32>
    %cst_158 = arith.constant dense<0.000000e+00> : vector<24xf32>
    %456 = vector.multi_reduction <add>, %455, %cst_158 [1] : vector<24x32xf32> to vector<24xf32>
    %457 = vector.shape_cast %456 : vector<24xf32> to vector<24x1xf32>
    %cst_159 = arith.constant 3.200000e+01 : f32
    %458 = vector.broadcast %cst_159 : f32 to vector<24x1xf32>
    %459 = arith.divf %457, %458 : vector<24x1xf32>
    %cst_160 = arith.constant 9.99999974E-6 : f32
    %460 = vector.broadcast %cst_160 : f32 to vector<24x1xf32>
    %461 = arith.addf %459, %460 : vector<24x1xf32>
    %462 = math.rsqrt %461 : vector<24x1xf32>
    %463 = vector.broadcast %462 : vector<24x1xf32> to vector<24x32xf32>
    %464 = arith.mulf %454, %463 : vector<24x32xf32>
    %465 = vector.broadcast %447 : vector<1x32xf32> to vector<24x32xf32>
    %466 = arith.mulf %464, %465 : vector<24x32xf32>
    %467 = vector.broadcast %448 : vector<1x32xf32> to vector<24x32xf32>
    %468 = arith.addf %466, %467 : vector<24x32xf32>
    %c0_161 = arith.constant 0 : index
    %c0_162 = arith.constant 0 : index
    %469 = vector.load %arg24[%c0_161, %c0_162] : memref<2x32xf32, #tpu.memory_space<vmem>>, vector<2x32xf32>
    %470 = vector.extract_strided_slice %469 {offsets = [0, 0], sizes = [1, 32], strides = [1, 1]} : vector<2x32xf32> to vector<1x32xf32>
    %471 = vector.extract_strided_slice %469 {offsets = [1, 0], sizes = [1, 32], strides = [1, 1]} : vector<2x32xf32> to vector<1x32xf32>
    %cst_163 = arith.constant dense<0.000000e+00> : vector<24xf32>
    %472 = vector.multi_reduction <add>, %468, %cst_163 [1] : vector<24x32xf32> to vector<24xf32>
    %473 = vector.shape_cast %472 : vector<24xf32> to vector<24x1xf32>
    %cst_164 = arith.constant 3.200000e+01 : f32
    %474 = vector.broadcast %cst_164 : f32 to vector<24x1xf32>
    %475 = arith.divf %473, %474 : vector<24x1xf32>
    %476 = vector.broadcast %475 : vector<24x1xf32> to vector<24x32xf32>
    %477 = arith.subf %468, %476 : vector<24x32xf32>
    %478 = arith.mulf %477, %477 : vector<24x32xf32>
    %cst_165 = arith.constant dense<0.000000e+00> : vector<24xf32>
    %479 = vector.multi_reduction <add>, %478, %cst_165 [1] : vector<24x32xf32> to vector<24xf32>
    %480 = vector.shape_cast %479 : vector<24xf32> to vector<24x1xf32>
    %cst_166 = arith.constant 3.200000e+01 : f32
    %481 = vector.broadcast %cst_166 : f32 to vector<24x1xf32>
    %482 = arith.divf %480, %481 : vector<24x1xf32>
    %cst_167 = arith.constant 9.99999974E-6 : f32
    %483 = vector.broadcast %cst_167 : f32 to vector<24x1xf32>
    %484 = arith.addf %482, %483 : vector<24x1xf32>
    %485 = math.rsqrt %484 : vector<24x1xf32>
    %486 = vector.broadcast %485 : vector<24x1xf32> to vector<24x32xf32>
    %487 = arith.mulf %477, %486 : vector<24x32xf32>
    %488 = vector.broadcast %470 : vector<1x32xf32> to vector<24x32xf32>
    %489 = arith.mulf %487, %488 : vector<24x32xf32>
    %490 = vector.broadcast %471 : vector<1x32xf32> to vector<24x32xf32>
    %491 = arith.addf %489, %490 : vector<24x32xf32>
    %c0_168 = arith.constant 0 : index
    %c0_169 = arith.constant 0 : index
    %492 = vector.load %arg25[%c0_168, %c0_169] : memref<32x4xf32, #tpu.memory_space<vmem>>, vector<32x4xf32>
    %cst_170 = arith.constant dense<0.000000e+00> : vector<24x4xf32>
    %493 = tpu.matmul %491, %492, %cst_170 {dimension_numbers = #tpu.dot_dimension_numbers<[1], [0], [0], [1], [0, 0, 1, 1], [], []>} : vector<24x32xf32>, vector<32x4xf32>, vector<24x4xf32> -> vector<24x4xf32>
    %c0_171 = arith.constant 0 : index
    %c0_172 = arith.constant 0 : index
    %494 = vector.load %arg26[%c0_171, %c0_172] : memref<1x4xf32, #tpu.memory_space<vmem>>, vector<1x4xf32>
    %495 = vector.broadcast %494 : vector<1x4xf32> to vector<24x4xf32>
    %496 = arith.addf %493, %495 : vector<24x4xf32>
    %c0_173 = arith.constant 0 : index
    %c0_174 = arith.constant 0 : index
    %497 = vector.load %arg27[%c0_173, %c0_174] : memref<24x4xf32, #tpu.memory_space<vmem>>, vector<24x4xf32>
    tpu.vector_store %arg27[%c0_173, %c0_174], %496 {strides = array<i32>} : memref<24x4xf32, #tpu.memory_space<vmem>>, vector<24x4xf32>,
    return
  }
  func.func @transform_0(%arg0: i32) -> (i32, i32) {
    %c0_i32 = arith.constant 0 : i32
    %c0_i32_0 = arith.constant 0 : i32
    %c0_i32_1 = arith.constant 0 : i32
    return %c0_i32, %c0_i32_0 : i32, i32
  }
  func.func @transform_1(%arg0: i32) -> (i32, i32) {
    %c0_i32 = arith.constant 0 : i32
    %c0_i32_0 = arith.constant 0 : i32
    %c0_i32_1 = arith.constant 0 : i32
    return %c0_i32, %c0_i32_0 : i32, i32
  }
  func.func @transform_2(%arg0: i32) -> (i32, i32) {
    %c0_i32 = arith.constant 0 : i32
    %c0_i32_0 = arith.constant 0 : i32
    %c0_i32_1 = arith.constant 0 : i32
    return %c0_i32, %c0_i32_0 : i32, i32
  }
  func.func @transform_3(%arg0: i32) -> (i32, i32) {
    %c0_i32 = arith.constant 0 : i32
    %c0_i32_0 = arith.constant 0 : i32
    %c0_i32_1 = arith.constant 0 : i32
    return %c0_i32, %c0_i32_0 : i32, i32
  }
  func.func @transform_4(%arg0: i32) -> (i32, i32) {
    %c0_i32 = arith.constant 0 : i32
    %c0_i32_0 = arith.constant 0 : i32
    %c0_i32_1 = arith.constant 0 : i32
    return %c0_i32, %c0_i32_0 : i32, i32
  }
  func.func @transform_5(%arg0: i32) -> (i32, i32) {
    %c0_i32 = arith.constant 0 : i32
    %c0_i32_0 = arith.constant 0 : i32
    %c0_i32_1 = arith.constant 0 : i32
    return %c0_i32, %c0_i32_0 : i32, i32
  }
  func.func @transform_6(%arg0: i32) -> (i32, i32) {
    %c0_i32 = arith.constant 0 : i32
    %c0_i32_0 = arith.constant 0 : i32
    %c0_i32_1 = arith.constant 0 : i32
    return %c0_i32, %c0_i32_0 : i32, i32
  }
  func.func @transform_7(%arg0: i32) -> (i32, i32) {
    %c0_i32 = arith.constant 0 : i32
    %c0_i32_0 = arith.constant 0 : i32
    %c0_i32_1 = arith.constant 0 : i32
    return %c0_i32, %c0_i32_0 : i32, i32
  }
  func.func @transform_8(%arg0: i32) -> (i32, i32) {
    %c0_i32 = arith.constant 0 : i32
    %c0_i32_0 = arith.constant 0 : i32
    %c0_i32_1 = arith.constant 0 : i32
    return %c0_i32, %c0_i32_0 : i32, i32
  }
  func.func @transform_9(%arg0: i32) -> (i32, i32) {
    %c0_i32 = arith.constant 0 : i32
    %c0_i32_0 = arith.constant 0 : i32
    %c0_i32_1 = arith.constant 0 : i32
    return %c0_i32, %c0_i32_0 : i32, i32
  }
  func.func @transform_10(%arg0: i32) -> (i32, i32) {
    %c0_i32 = arith.constant 0 : i32
    %c0_i32_0 = arith.constant 0 : i32
    %c0_i32_1 = arith.constant 0 : i32
    return %c0_i32, %c0_i32_0 : i32, i32
  }
  func.func @transform_11(%arg0: i32) -> (i32, i32) {
    %c0_i32 = arith.constant 0 : i32
    %c0_i32_0 = arith.constant 0 : i32
    %c0_i32_1 = arith.constant 0 : i32
    return %c0_i32, %c0_i32_0 : i32, i32
  }
  func.func @transform_12(%arg0: i32) -> (i32, i32) {
    %c0_i32 = arith.constant 0 : i32
    %c0_i32_0 = arith.constant 0 : i32
    %c0_i32_1 = arith.constant 0 : i32
    return %c0_i32, %c0_i32_0 : i32, i32
  }
  func.func @transform_13(%arg0: i32) -> (i32, i32) {
    %c0_i32 = arith.constant 0 : i32
    %c0_i32_0 = arith.constant 0 : i32
    %c0_i32_1 = arith.constant 0 : i32
    return %c0_i32, %c0_i32_0 : i32, i32
  }
  func.func @transform_14(%arg0: i32) -> (i32, i32) {
    %c0_i32 = arith.constant 0 : i32
    %c0_i32_0 = arith.constant 0 : i32
    %c0_i32_1 = arith.constant 0 : i32
    return %c0_i32, %c0_i32_0 : i32, i32
  }
  func.func @transform_15(%arg0: i32) -> (i32, i32) {
    %c0_i32 = arith.constant 0 : i32
    %c0_i32_0 = arith.constant 0 : i32
    %c0_i32_1 = arith.constant 0 : i32
    return %c0_i32, %c0_i32_0 : i32, i32
  }
  func.func @transform_16(%arg0: i32) -> (i32, i32) {
    %c0_i32 = arith.constant 0 : i32
    %c0_i32_0 = arith.constant 0 : i32
    %c0_i32_1 = arith.constant 0 : i32
    return %c0_i32, %c0_i32_0 : i32, i32
  }
  func.func @transform_17(%arg0: i32) -> (i32, i32) {
    %c0_i32 = arith.constant 0 : i32
    %c0_i32_0 = arith.constant 0 : i32
    %c0_i32_1 = arith.constant 0 : i32
    return %c0_i32, %c0_i32_0 : i32, i32
  }
  func.func @transform_18(%arg0: i32) -> (i32, i32) {
    %c0_i32 = arith.constant 0 : i32
    %c0_i32_0 = arith.constant 0 : i32
    %c0_i32_1 = arith.constant 0 : i32
    return %c0_i32, %c0_i32_0 : i32, i32
  }
  func.func @transform_19(%arg0: i32) -> (i32, i32) {
    %c0_i32 = arith.constant 0 : i32
    %c0_i32_0 = arith.constant 0 : i32
    %c0_i32_1 = arith.constant 0 : i32
    return %c0_i32, %c0_i32_0 : i32, i32
  }
  func.func @transform_20(%arg0: i32) -> (i32, i32) {
    %c0_i32 = arith.constant 0 : i32
    %c0_i32_0 = arith.constant 0 : i32
    %c0_i32_1 = arith.constant 0 : i32
    return %c0_i32, %c0_i32_0 : i32, i32
  }
  func.func @transform_21(%arg0: i32) -> (i32, i32) {
    %c0_i32 = arith.constant 0 : i32
    %c0_i32_0 = arith.constant 0 : i32
    %c0_i32_1 = arith.constant 0 : i32
    return %c0_i32, %c0_i32_0 : i32, i32
  }
  func.func @transform_22(%arg0: i32) -> (i32, i32) {
    %c0_i32 = arith.constant 0 : i32
    %c0_i32_0 = arith.constant 0 : i32
    %c0_i32_1 = arith.constant 0 : i32
    return %c0_i32, %c0_i32_0 : i32, i32
  }
  func.func @transform_23(%arg0: i32) -> (i32, i32) {
    %c0_i32 = arith.constant 0 : i32
    %c0_i32_0 = arith.constant 0 : i32
    %c0_i32_1 = arith.constant 0 : i32
    return %c0_i32, %c0_i32_0 : i32, i32
  }
  func.func @transform_24(%arg0: i32) -> (i32, i32) {
    %c0_i32 = arith.constant 0 : i32
    %c0_i32_0 = arith.constant 0 : i32
    %c0_i32_1 = arith.constant 0 : i32
    return %c0_i32, %c0_i32_0 : i32, i32
  }
  func.func @transform_25(%arg0: i32) -> (i32, i32) {
    %c0_i32 = arith.constant 0 : i32
    %c0_i32_0 = arith.constant 0 : i32
    %c0_i32_1 = arith.constant 0 : i32
    return %c0_i32, %c0_i32_0 : i32, i32
  }
  func.func @transform_26(%arg0: i32) -> (i32, i32) {
    %c0_i32 = arith.constant 0 : i32
    %c0_i32_0 = arith.constant 0 : i32
    %c0_i32_1 = arith.constant 0 : i32
    return %c0_i32, %c0_i32_0 : i32, i32
  }
}

</mosaic_0001>

<bundles_post_ra>
// kernel: model_forward.1
= control target key start
LH: loop header
LB: loop body
LE: loop exit
PB: predicated region body
PF: predicated region fallthrough
CT: control target
= control target key end

     0   :  { %v6218_v0 = vmov 0.0|0.0   ;;  %vm6219_vm0 = vmmov 0   ;;  %v6220_v6 = vmov 0.0   ;;  %v6221_v9 = vmov 0   ;;  %s6223_s30 = smov 12   ;;  %s6229_s27 = smov 80   ;;  %s7442_s0 = inlined_call_operand.vmem [shape: f32[32,4], index: 0, kind: input, shape index: {}]   ;;  %s7443_s5 = inlined_call_operand.vmem [shape: f32[8,1], index: 5, kind: input, shape index: {}]   ;;  %s7444_s2 = inlined_call_operand.vmem [shape: f32[24,4], index: 2, kind: input, shape index: {}]   ;;  %s7445_s4 = inlined_call_operand.vmem [shape: f32[8,16], index: 4, kind: input, shape index: {}]   ;;  %s7446_s1 = inlined_call_operand.vmem [shape: f32[16,4], index: 1, kind: input, shape index: {}]   ;;  %s7447_s3 = inlined_call_operand.vmem [shape: f32[24,4], index: 3, kind: input, shape index: {}]   ;;  %s7448_s6 = inlined_call_operand.vmem [shape: f32[16,32], index: 6, kind: input, shape index: {}]   ;;  %s7449_s8 = inlined_call_operand.vmem [shape: f32[16,32], index: 8, kind: input, shape index: {}]   ;;  %s7450_s10 = inlined_call_operand.vmem [shape: f32[32,96], index: 10, kind: input, shape index: {}]   ;;  %s7451_s9 = inlined_call_operand.vmem [shape: f32[12,32], index: 9, kind: input, shape index: {}]   ;;  %s7452_s7 = inlined_call_operand.vmem [shape: f32[8,32], index: 7, kind: input, shape index: {}]   ;;  %s7453_s11 = inlined_call_operand.vmem [shape: f32[1,96], index: 11, kind: input, shape index: {}]   ;;  %s7454_s12 = inlined_call_operand.vmem [shape: f32[32,32], index: 12, kind: input, shape index: {}]   ;;  %s7455_s13 = inlined_call_operand.vmem [shape: f32[1,32], index: 13, kind: input, shape index: {}]   ;;  %s7456_s14 = inlined_call_operand.vmem [shape: f32[32,96], index: 14, kind: input, shape index: {}]   ;;  %s7457_s22 = inlined_call_operand.vmem [shape: f32[6,32], index: 22, kind: input, shape index: {}]   ;;  %s7458_s15 = inlined_call_operand.vmem [shape: f32[1,96], index: 15, kind: input, shape index: {}]   ;;  %s7459_s16 = inlined_call_operand.vmem [shape: f32[32,32], index: 16, kind: input, shape index: {}]   ;;  %s7460_s17 = inlined_call_operand.vmem [shape: f32[1,32], index: 17, kind: input, shape index: {}]   ;;  %s7461_s18 = inlined_call_operand.vmem [shape: f32[32,64], index: 18, kind: input, shape index: {}]   ;;  %s7462_s20 = inlined_call_operand.vmem [shape: f32[64,32], index: 20, kind: input, shape index: {}]   ;;  %s7463_s19 = inlined_call_operand.vmem [shape: f32[1,64], index: 19, kind: input, shape index: {}]   ;;  %s7464_s21 = inlined_call_operand.vmem [shape: f32[1,32], index: 21, kind: input, shape index: {}]   ;;  %s7465_s24 = inlined_call_operand.vmem [shape: f32[32,4], index: 24, kind: input, shape index: {}]   ;;  %s7466_s23 = inlined_call_operand.vmem [shape: f32[2,32], index: 23, kind: input, shape index: {}]   ;;  %s7467_s25 = inlined_call_operand.vmem [shape: f32[1,4], index: 25, kind: input, shape index: {}]   ;;  %s7468_s26 = inlined_call_operand.vmem [shape: f32[24,4], index: 26, kind: output, shape index: {}]  }
   0x1   :  { %7484 = sst [smem:[#allocation2_spill]] %s7442_s0  ;;  %5780 = vmatprep.subr.bf16.mxu0 %v6218_v0  ;;  %5783 = vmatprep.subr.bf16.mxu1 %v6218_v0  ;;  %vm94_vm1 = vcmask 130048   ;;  %vm250_vm2 = vcmask 1046528   ;;  %vm462_vm3 = vcmask 1042432   ;;  %vm586_vm4 = vcmask 1043456   ;;  %s6238_s29 = smov 24  }
   0x2   :  { %7485 = sst [smem:[#allocation3_spill]] %s7443_s5  ;;  %5412 = vmatprep.mubr.msk.f32.mxu0 %vm6219_vm0, %v6220_v6  ;;  %5419 = vmatprep.mubr.msk.f32.mxu1 %vm6219_vm0, %v6220_v6  ;;  %vm246_vm5 = vcmask 1040384   ;;  %vm263_vm6 = vcmask 31744   ;;  %vm575_vm7 = vcmask 1044480   ;;  %vm265_vm8 = vcmask 64512   ;;  %s6231_s5 = smov 112  }
   0x3   :  { %7486 = sst [smem:[#allocation4_spill]] %s7444_s2  ;;  %5973 = vset.pattern.permute.xlu0 %v6221_v9  ;;  %vm267_vm9 = vcmask 97280   ;;  %vm756_vm10 = vcmask 261120   ;;  %s7480_s2 = smov 88   ;;  %vm6590_vm11 = vmpackc.low %vm265_vm8, %vm265_vm8  ;;  %vm941_vm14 = vcmask 93184   ;;  %vm6232_vm15 = vmmov 1  }
   0x4   :  { %7487 = sst [smem:[#allocation5_spill]] %s7445_s4  ;;  %s7497_s4 = sld [smem:[#allocation4_spill]] }
   0x5   :  { %7488 = sst [smem:[#allocation6_spill]] %s7446_s1  ;;  %s7482_s1 = smov 72  }
   0x6   :  { %7489 = sst [smem:[#allocation7_spill]] %s7447_s3  ;;  %s7496_s3 = sld [smem:[#allocation3_spill]] }
   0x7   :  { %7490 = sst [smem:[#allocation8_spill]] %s7448_s6  ;;  %s7499_s0 = sld [smem:[#allocation6_spill]] }
   0x8   :  { %7491 = sst [smem:[#allocation9_spill]] %s7449_s8  ;;  %s7495_s8 = sld [smem:[#allocation2_spill]] }
   0x9   :  { %7492 = sst [smem:[#allocation10_spill]] %s7450_s10  ;;  %s6228_s6 = smov 56  }
   0xa   :  { %7493 = sst [smem:[#allocation11_spill]] %s7451_s9  ;;  %v6398_v10 = vld [vmem:[%s7497_s4] sm:$0xff]  ;;  %v6406_v12 = vld [vmem:[%s7497_s4 + $0x8] sm:$0xff]  ;;  %s6222_s9 = smov 4   ;;  %v6430_v19 = vld [vmem:[%s7497_s4 + $0x10] sm:$0xff] }
   0xb   :  { %7494 = sst [smem:[#allocation12_spill]] %s7452_s7  ;;  %v456_v13 = vrot.slane %v6398_v10, 1  ;;  %464 = vrot.lane.b32.xlu1 %v6398_v10, %s6222_s9  ;;  %v457_v15 = vrot.slane %v6406_v12, 1  ;;  %v460_v16 = vrot.slane %v6398_v10, 5  ;;  %s7478_s7 = smov 8   ;;  %v587_v21 = vrot.slane %v6406_v12, 4 }
   0xc   :  { %v88_v7 = vld [vmem:[%s7496_s3] sm:$0xff]  ;;  %v588_v22 = vrot.slane %v6430_v19, 4  ;;  %v581_v26 = vrot.slane %v6406_v12, 5  ;;  %v582_v27 = vrot.slane %v6430_v19, 5  ;;  %s7502_s4 = sld [smem:[#allocation9_spill]]  ;;  %v450_v58 = vrot.slane %v6398_v10, 7 }
   0xd   :  { %91 = vperm.xlu0 %5973, %v88_v7   ;;  %v238_v14 = vld [vmem:[%s7499_s0] sm:$0xff]  ;;  %v458_v17 = vsel %vm250_vm2, %v456_v13, %v457_v15  ;;  %v239_v18 = vld [vmem:[%s7499_s0 + $0x8] sm:$0xff]  ;;  %v463_v20 = vsel %vm462_vm3, %v457_v15, %v460_v16  ;;  %s7501_s0 = sld [smem:[#allocation8_spill]]  ;;  %v447_v59 = vrot.slane %v6406_v12, 3  ;;  %v451_v62 = vrot.slane %v6406_v12, 7  ;;  %s7504_s28 = sld [smem:[#allocation11_spill]]  ;;  %vm6645_vm2 = vmpackc.low %vm586_vm4, %vm6232_vm15 }
   0xe   :  { %v83_v1 = vld [vmem:[%s7495_s8] sm:$0xff]  ;;  %v84_v2 = vld [vmem:[%s7495_s8 + $0x8] sm:$0xff]  ;;  %v85_v3 = vld [vmem:[%s7495_s8 + $0x10] sm:$0xff]  ;;  %v589_v23 = vsel %vm586_vm4, %v587_v21, %v588_v22  ;;  %v583_v28 = vsel %vm462_vm3, %v581_v26, %v582_v27  ;;  %v585_v42 = vsel %vm462_vm3, %v582_v27, %v457_v15  ;;  %s6227_s3 = smov 120   ;;  %s6234_s10 = smov 104   ;;  %vm1692_vm3 = vcmask 195584  }
   0xf   :  { %v5781_v4 = vpack.c.bf16 %v84_v2, %v83_v1  ;;  %v86_v5 = vld [vmem:[%s7495_s8 + $0x18] sm:$0xff]  ;;  %s7498_s8 = sld [smem:[#allocation5_spill]]  ;;  %471 = vrot.lane.b32.xlu1 %v458_v17, %s7478_s7  ;;  %v455_v63 = vsel %vm246_vm5, %v447_v59, %v450_v58  ;;  %v576_v1 = vrot.slane %v6430_v19, 3 }
  0x10   :  { %v5784_v8 = vpack.c.bf16 %v86_v5, %v85_v3  ;;  %v452_v5 = vsel %vm246_vm5, %v450_v58, %v451_v62 }
  0x11   :  { %5782 = vmatpush3.bf16.msra.mxu0 %v5781_v4  ;;  %260 = vrot.lane.b32.xlu0 %v238_v14, %s6223_s30  ;;  %v577_v9 = vsel %vm575_vm7, %v447_v59, %v576_v1 }
  0x12   :  { %5785 = vmatpush3.bf16.msra.mxu1 %v5784_v8  ;;  %5786 = vmatprep.subr.bf16.mxu0 %v6218_v0  ;;  %v442_v32 = vld [vmem:[%s7502_s4] sm:$0xff]  ;;  %v443_v33 = vld [vmem:[%s7502_s4 + $0x8] sm:$0xff]  ;;  %v573_v8 = vrot.slane %v6430_v19, 7  ;;  %s6230_s4 = smov 64  }
  0x13   :  { %5789 = vmatprep.subr.bf16.mxu1 %v6218_v0  ;;  %473 = vrot.lane.b32.xlu1 %v463_v20, %s7478_s7  ;;  %v240_v29 = vld [vmem:[%s7501_s0] sm:$0xff]  ;;  %v241_v30 = vld [vmem:[%s7501_s0 + $0x8] sm:$0xff]  ;;  %v6468_v34 = vpack.c.bf16 %v443_v33, %v442_v32 }
  0x14   :  { %v5787_v31 = vpack.c.bf16 %v241_v30, %v240_v29  ;;  %v580_v17 = vsel %vm246_vm5, %v573_v8, %v577_v9  ;;  %vm2987_vm5 = vcmask 60416  }
  0x15   :  { %v87_v11 = vld [vmem:[%s7498_s8] sm:$0xff]  ;;  %357 = vrot.lane.b32.xlu0 %v239_v18, %s6223_s30  ;;  %s7500_s8 = sld [smem:[#allocation7_spill]] }
  0x16   :  { %5413 = vmatmul.mubr.msk.f32.vlgmr.msra.gmra.mrb[0].mxu0 %vm94_vm1, %v87_v11  ;;  %5420 = vmatmul.mubr.msk.f32.vlgmr.msra.gmra.mrb[0].mxu1 %vm94_vm1, %v87_v11 }
  0x17   :  { %5426 = vmatprep.mubr.msk.f32.mxu0 %vm6219_vm0, %v6220_v6  ;;  %5433 = vmatprep.mubr.msk.f32.mxu1 %vm6219_vm0, %v6220_v6 }
  0x18   :  { %592 = vrot.lane.b32.xlu1 %v588_v22, %s6222_s9  ;;  %5788 = vmatpush3.bf16.msra.mxu0 %v5787_v31 }
  0x19   :  { %466 = vrot.lane.b32.xlu0 %v6406_v12, %s6222_s9  ;;  %5791 = vmatpush3.bf16.msra.mxu1 %v5787_v31 }
  0x1a   :  { %5793 = vmatprep.subr.bf16.mxu0 %v6468_v34  ;;  %5797 = vmatprep.subr.bf16.mxu1 %v6468_v34 }
  0x1b   :  { %v440_v24 = vld [vmem:[%s7500_s8 + $0x8] sm:$0xff]  ;;  %v439_v25 = vld [vmem:[%s7500_s8] sm:$0xff]  ;;  %v441_v43 = vld [vmem:[%s7500_s8 + $0x10] sm:$0xff]  ;;  %s7503_s8 = sld [smem:[#allocation10_spill]] }
  0x1c   :  { %481 = vrot.lane.b32.xlu1 %v440_v24, %s6223_s30  ;;  %v605_v45 = vrot.slane %v441_v43, 4  ;;  %v604_v46 = vrot.slane %v440_v24, 4 }
  0x1d   :  { %590 = vrot.lane.b32.xlu0 %v589_v23, %s6222_s9 }
  0x1e   :  { %v606_v48 = vsel %vm586_vm4, %v604_v46, %v605_v45 }
  0x21   :  { %479 = vrot.lane.b32.xlu0 %v439_v25, %s6223_s30 }
  0x25   :  { %597 = vrot.lane.b32.xlu0 %v583_v28, %s7478_s7 }
  0x7d   :  { %v465_v50 = vpop.permute.xlu1 %464 }
  0x7e   :  { %v485_v4 = vsel %vm263_vm6, %v455_v63, %v465_v50  ;;  %v445_v50 = vld [vmem:[%s7504_s28 + $0x8] sm:$0xf] }
  0x81   :  { %v472_v52 = vpop.permute.xlu1 %471 }
  0x82   :  { %v487_v11 = vsel %vm265_vm8, %v485_v4, %v472_v52 }
  0x85   :  { %v474_v54 = vpop.permute.xlu1 %473 }
  0x8a   :  { %v593_v56 = vpop.permute.xlu1 %592 }
  0x8b   :  { %v614_v28 = vsel %vm263_vm6, %v576_v1, %v593_v56 }
  0x8c   :  { %v92_v35 = vpop.permute.xlu0 %91 }
  0x8e   :  { %v482_v61 = vpop.permute.xlu1 %481 }
  0x90   :  { %v261_v49 = vpop.permute.xlu0 %260 }
  0x94   :  { %v358_v51 = vpop.permute.xlu0 %357 }
  0x98   :  { %v467_v53 = vpop.permute.xlu0 %466 }
  0x99   :  { %v486_v10 = vsel %vm263_vm6, %v452_v5, %v467_v53 }
  0x9a   :  { %v488_v20 = vsel %vm265_vm8, %v486_v10, %v474_v54 }
  0x9b   :  { %v490_v25 = vsel %vm267_vm9, %v488_v20, %v482_v61 }
  0x9c   :  { %v591_v55 = vpop.permute.xlu0 %590 }
  0x9d   :  { %v613_v23 = vsel %vm263_vm6, %v580_v17, %v591_v55 }
  0xa0   :  { %v480_v57 = vpop.permute.xlu0 %479 }
  0xa1   :  { %v489_v19 = vsel %vm267_vm9, %v487_v11, %v480_v57 }
  0xa4   :  { %v598_v60 = vpop.permute.xlu0 %597 }
  0xa5   :  { %v615_v29 = vsel %vm265_vm8, %v613_v23, %v598_v60  ;;  %v5091_v60 = vld [vmem:[%s7453_s11] ss:$0 sm:$0xff]  ;;  %s6226_s11 = smov 96  }
  0xe9   :  { %v164_v36 = vpop.f32.mrb[0].mxu0  ;;  %v234_v38 = vpop.f32.mrb[0].mxu1 }
  0xea   :  { %v165_v37 = vadd.f32 %v164_v36, %v92_v35  ;;  %v5414_v39 = vpop.f32.mrb[1].mxu0  ;;  %v235_v40 = vadd.f32 %v234_v38, %v92_v35  ;;  %v5421_v41 = vpop.f32.mrb[1].mxu1  ;;  %v715_v35 = vld [vmem:[%s7503_s8] sm:$0xff]  ;;  %v718_v38 = vld [vmem:[%s7503_s8 + $0x18] sm:$0xff] }
  0xec   :  { %252 = vrot.lane.b32.xlu0 %v165_v37, %s6222_s9  ;;  %349 = vrot.lane.b32.xlu1 %v235_v40, %s6222_s9  ;;  %v248_v44 = vrot.slane %v165_v37, 1  ;;  %v346_v47 = vrot.slane %v235_v40, 1  ;;  %v244_v7 = vrot.slane %v165_v37, 7  ;;  %v343_v16 = vrot.slane %v235_v40, 7  ;;  %v717_v37 = vld [vmem:[%s7503_s8 + $0x10] sm:$0xff]  ;;  %s7505_s9 = sld [smem:[#allocation12_spill]] }
  0xed   :  { %v5804_v39 = vpack.c.bf16 %v718_v38, %v717_v37 }
  0xf0   :  { %599 = vrot.lane.b32.xlu0 %v585_v42, %s7478_s7  ;;  %256 = vrot.lane.b32.xlu1 %v248_v44, %s7478_s7  ;;  %v444_v42 = vld [vmem:[%s7504_s28] sm:$0xff]  ;;  %s6233_s28 = smov 48  }
  0xf2   :  { %v242_v43 = vld [vmem:[%s7505_s9] sm:$0xff] }
  0xf4   :  { %609 = vrot.lane.b32.xlu0 %v605_v45, %s6223_s30  ;;  %353 = vrot.lane.b32.xlu1 %v346_v47, %s7478_s7 }
  0xf8   :  { %607 = vrot.lane.b32.xlu1 %v606_v48, %s6223_s30  ;;  %s6236_s30 = smov 40  }
 0x15e   :  { %v253_v2 = vpop.permute.xlu0 %252  ;;  %v350_v3 = vpop.permute.xlu1 %349 }
 0x15f   :  { %v264_v12 = vsel %vm263_vm6, %v244_v7, %v253_v2  ;;  %v360_v21 = vsel %vm263_vm6, %v343_v16, %v350_v3 }
 0x162   :  { %v257_v13 = vpop.permute.xlu1 %256  ;;  %v600_v14 = vpop.permute.xlu0 %599 }
 0x163   :  { %v266_v15 = vsel %vm265_vm8, %v264_v12, %v257_v13  ;;  %v616_v31 = vsel %vm265_vm8, %v614_v28, %v600_v14 }
 0x164   :  { %v268_v18 = vsel %vm267_vm9, %v266_v15, %v261_v49 }
 0x165   :  { %5427 = vmatmul.mubr.msk.f32.vlgmr.msra.gmra.mrb[2].mxu0 %vm94_vm1, %v268_v18 }
 0x166   :  { %v354_v22 = vpop.permute.xlu1 %353  ;;  %5795 = vmatpush3.bf16.msra.mxu0 %v6468_v34  ;;  %5440 = vmatprep.mubr.msk.f32.mxu0 %vm94_vm1, %v489_v19  ;;  %v610_v27 = vpop.permute.xlu0 %609  ;;  %v708_v19 = vlaneseq }
 0x167   :  { %v361_v24 = vsel %vm265_vm8, %v360_v21, %v354_v22  ;;  %5800 = vmatprep.subr.bf16.mxu0 %v6218_v0  ;;  %v618_v33 = vsel %vm267_vm9, %v616_v31, %v610_v27 }
 0x168   :  { %v362_v26 = vsel %vm267_vm9, %v361_v24, %v358_v51  ;;  %v6606_v21 = vshrl.u32 %v708_v19, 7  ;;  %v712_v23 = vand.u32 127, %v708_v19 }
 0x169   :  { %5434 = vmatmul.mubr.msk.f32.vlgmr.msra.gmra.mrb[2].mxu1 %vm94_vm1, %v362_v26  ;;  %5441 = vmatmul.mubr.msk.f32.vlgmr.msra.gmra.mrb[4].mxu0 %vm94_vm1, %v490_v25 }
 0x16a   :  { %5799 = vmatpush3.bf16.msra.mxu1 %v6468_v34  ;;  %v608_v30 = vpop.permute.xlu1 %607  ;;  %5458 = vmatprep.mubr.msk.f32.mxu0 %vm6219_vm0, %v6220_v6  ;;  %v716_v34 = vld [vmem:[%s7503_s8 + $0x8] sm:$0xff]  ;;  %v710_v22 = vadd.s32 8, %v6606_v21  ;;  %vm6614_vm13 = vcmp.gt.s32.totalorder %v712_v23, %v6606_v21  ;;  %s6237_s8 = smov 16  }
 0x16b   :  { %v617_v32 = vsel %vm267_vm9, %v615_v29, %v608_v30  ;;  %v5801_v36 = vpack.c.bf16 %v716_v34, %v715_v35 }
 0x16c   :  { %5447 = vmatprep.mubr.msk.f32.mxu1 %vm94_vm1, %v617_v32  ;;  %vm6609_vm12 = vcmp.gt.s32.totalorder %v712_v23, %v710_v22 }
 0x16d   :  { %5448 = vmatmul.mubr.msk.f32.vlgmr.msra.gmra.mrb[4].mxu1 %vm94_vm1, %v618_v33  ;;  %5802 = vmatpush3.bf16.msra.mxu0 %v5801_v36 }
 0x16e   :  { %5803 = vmatprep.subr.bf16.mxu0 %v6218_v0 }
 0x171   :  { %5805 = vmatpush3.bf16.msra.mxu0 %v5804_v39 }
 0x238   :  { %v6534_v40 = vpop.f32.mrb[2].mxu0 }
 0x239   :  { %v5428_v41 = vpop.f32.mrb[3].mxu0 }
 0x23c   :  { %v432_v44 = vpop.f32.mrb[2].mxu1  ;;  %v5442_v45 = vpop.f32.mrb[4].mxu0 }
 0x23d   :  { %v6542_v46 = vadd.f32 %v432_v44, %v242_v43  ;;  %v5435_v47 = vpop.f32.mrb[3].mxu1  ;;  %v563_v48 = vpop.f32.mrb[5].mxu0  ;;  %v569_v56 = vadd.f32 %v5442_v45, %v445_v50 }
 0x23e   :  { %v6544_v49 = vadd.f32 %v563_v48, %v444_v42 }
 0x240   :  { %v5449_v51 = vpop.f32.mrb[4].mxu1  ;;  %5459 = vmatmul.mubr.msk.f32.vlgmr.msra.gmra.mrb[6].mxu0 %vm756_vm10, %v6544_v49 }
 0x241   :  { %v697_v52 = vadd.f32 %v5449_v51, %v445_v50  ;;  %v691_v53 = vpop.f32.mrb[5].mxu1  ;;  %5461 = vmatprep.mubr.msk.f32.mxu0 %vm6219_vm0, %v6220_v6 }
 0x242   :  { %v692_v54 = vadd.f32 %v691_v53, %v444_v42 }
 0x243   :  { %v703_v55 = vrot.slane %v697_v52, 4 }
 0x244   :  { %v702_v57 = vrot.slane %v692_v54, 4 }
 0x246   :  { %v6554_v58 = vsel %vm586_vm4, %v569_v56, %v702_v57  ;;  %v6557_v59 = vsel %vm586_vm4, %v702_v57, %v703_v55 }
 0x247   :  { %5462 = vmatmul.mubr.msk.f32.gmra.mrb[8].mxu0 %vm756_vm10, %v6554_v58 }
 0x248   :  { %5464 = vmatprep.mubr.msk.f32.mxu0 %vm6219_vm0, %v6220_v6 }
 0x24b   :  { %5465 = vmatmul.mubr.msk.f32.gmra.mrb[10].mxu0 %vm756_vm10, %v6557_v59 }
 0x313   :  { %v831_v61 = vpop.f32.mrb[6].mxu0 }
 0x314   :  { %v6568_v62 = vadd.f32 %v5091_v60, %v831_v61  ;;  %v5460_v63 = vpop.f32.mrb[7].mxu0 }
 0x316   :  { %5471 = vmatprep.mubr.msk.f32.mxu1 %vm265_vm8, %v6568_v62 }
 0x31a   :  { %v836_v1 = vpop.f32.mrb[8].mxu0 }
 0x31b   :  { %v6572_v2 = vadd.f32 %v5091_v60, %v836_v1  ;;  %v5463_v3 = vpop.f32.mrb[9].mxu0 }
 0x31d   :  { %v6576_v4 = vpack.i.bf16 %v6572_v2, %v6568_v62 }
 0x31e   :  { %v841_v5 = vpop.f32.mrb[10].mxu0 }
 0x31f   :  { %v6578_v7 = vadd.f32 %v5091_v60, %v841_v5  ;;  %5980 = vrot.lane.b32.xlu0 %v6576_v4, %s7480_s2  ;;  %5975 = vrot.lane.b32.xlu1 %v6576_v4, %s6226_s11  ;;  %v5466_v8 = vpop.f32.mrb[11].mxu0 }
 0x323   :  { %1051 = vrot.lane.b32.xlu0 %v6572_v2, %s6227_s3  ;;  %1049 = vrot.lane.b32.xlu1 %v6568_v62, %s6227_s3 }
 0x391   :  { %v5981_v9 = vpop.permute.xlu0 %5980  ;;  %v5976_v10 = vpop.permute.xlu1 %5975 }
 0x392   :  { %v5983_v11 = vunpack.i.h.bf16 %v5981_v9  ;;  %v5982_v12 = vunpack.i.l.bf16 %v5981_v9  ;;  %v5978_v13 = vunpack.i.h.bf16 %v5976_v10  ;;  %v5977_v14 = vunpack.i.l.bf16 %v5976_v10 }
 0x394   :  { %v5818_v16 = vpack.c.bf16 %v5983_v11, %v5982_v12  ;;  %v5806_v17 = vpack.c.bf16 %v5978_v13, %v5977_v14 }
 0x395   :  { %v1050_v18 = vpop.permute.xlu1 %1049  ;;  %v1052_v20 = vpop.permute.xlu0 %1051 }
 0x396   :  { %5808 = vmatprep.subr.msk.bf16.mxu1 %vm6590_vm11, %v5806_v17  ;;  %5820 = vmatprep.subr.msk.bf16.mxu0 %vm6590_vm11, %v5818_v16 }
 0x397   :  { %5485 = vmatprep.mubr.msk.f32.mxu0 %vm265_vm8, %v1050_v18  ;;  %5811 = vmatpush3.bf16.xpose.msk.msra.mxu1 %vm6590_vm11, %v5806_v17 }
 0x398   :  { %5823 = vmatpush3.bf16.xpose.msk.msra.mxu0 %vm6590_vm11, %v5818_v16 }
 0x39e   :  { %5472 = vmatmul.mubr.msk.f32.vlgmr.msra.gmra.mrb[6].mxu1 %vm265_vm8, %v6572_v2 }
 0x39f   :  { %5486 = vmatmul.mubr.msk.f32.vlgmr.msra.gmra.mrb[12].mxu0 %vm265_vm8, %v1052_v20 }
 0x471   :  { %v5473_v26 = vpop.f32.mrb[6].mxu1 }
 0x472   :  { %v935_v27 = vsel %vm6609_vm12, -inf, %v5473_v26  ;;  %v5487_v28 = vpop.f32.mrb[12].mxu0  ;;  %v925_v29 = vpop.f32.mrb[7].mxu1 }
 0x473   :  { %v937_v30 = vmul.f32 0.35355338, %v935_v27  ;;  %v1141_v31 = vsel %vm6609_vm12, -inf, %v5487_v28  ;;  %v934_v32 = vsel %vm6614_vm13, -inf, %v925_v29  ;;  %v1131_v33 = vpop.f32.mrb[13].mxu0 }
 0x474   :  { %v936_v35 = vmul.f32 0.35355338, %v934_v32  ;;  %v1140_v34 = vsel %vm6614_vm13, -inf, %v1131_v33  ;;  %v1143_v38 = vmul.f32 0.35355338, %v1141_v31 }
 0x475   :  { %v1142_v36 = vmul.f32 0.35355338, %v1140_v34  ;;  %v942_v37 = vsel %vm941_vm14, %v937_v30, -inf }
 0x476   :  { %943 = vmax.xlane.f32.xlu0 %v942_v37  ;;  %v938_v39 = vsel %vm267_vm9, %v936_v35, -inf  ;;  %v1147_v42 = vsel %vm941_vm14, %v1143_v38, -inf }
 0x477   :  { %939 = vmax.xlane.f32.xlu1 %v938_v39  ;;  %v1144_v41 = vsel %vm267_vm9, %v1142_v36, -inf }
 0x47a   :  { %1145 = vmax.xlane.f32.xlu0 %v1144_v41 }
 0x47b   :  { %1148 = vmax.xlane.f32.xlu1 %v1147_v42 }
 0x503   :  { %v944_v43 = vpop.xlane.xlu0 %943 }
 0x504   :  { %v946_v44 = vsub.f32 %v937_v30, %v944_v43  ;;  %v940_v45 = vpop.xlane.xlu1 %939 }
 0x505   :  { %v945_v47 = vsub.f32 %v936_v35, %v940_v45 }
 0x506   :  { %v949_v48 = vmul.f32 1.442695, %v946_v44 }
 0x507   :  { %v947_v50 = vmul.f32 1.442695, %v945_v47  ;;  %v1146_v51 = vpop.xlane.xlu0 %1145 }
 0x508   :  { %6064 = vpow2.f32 %v949_v48  ;;  %v1150_v52 = vsub.f32 %v1142_v36, %v1146_v51  ;;  %v1149_v53 = vpop.xlane.xlu1 %1148 }
 0x509   :  { %6066 = vpow2.f32 %v947_v50  ;;  %v1151_v54 = vsub.f32 %v1143_v38, %v1149_v53 }
 0x50a   :  { %v1152_v55 = vmul.f32 1.442695, %v1150_v52 }
 0x50b   :  { %v1154_v56 = vmul.f32 1.442695, %v1151_v54 }
 0x50c   :  { %6068 = vpow2.f32 %v1152_v55 }
 0x50d   :  { %6070 = vpow2.f32 %v1154_v56 }
 0x512   :  { %v6065_v57 = vpop.eup %6064 }
 0x513   :  { %v6067_v60 = vpop.eup %6066  ;;  %v954_v61 = vsel %vm941_vm14, %v6065_v57, 0.0 }
 0x514   :  { %955 = vadd.xlane.f32.xlu1 %v954_v61  ;;  %v951_v63 = vsel %vm267_vm9, %v6067_v60, 0.0 }
 0x515   :  { %952 = vadd.xlane.f32.xlu0 %v951_v63 }
 0x516   :  { %v6069_v1 = vpop.eup %6068 }
 0x517   :  { %v6071_v3 = vpop.eup %6070  ;;  %v1156_v5 = vsel %vm267_vm9, %v6069_v1, 0.0 }
 0x518   :  { %v1159_v8 = vsel %vm941_vm14, %v6071_v3, 0.0 }
 0x519   :  { %1160 = vadd.xlane.f32.xlu1 %v1159_v8  ;;  %1157 = vadd.xlane.f32.xlu0 %v1156_v5 }
 0x52a   :  { %5990 = vrot.lane.b32.xlu1 %v6576_v4, %s6228_s6 }
 0x52e   :  { %5995 = vrot.lane.b32.xlu1 %v6576_v4, %s6229_s27 }
 0x52f   :  { %5985 = vrot.lane.b32.xlu0 %v6576_v4, %s6230_s4 }
 0x532   :  { %1256 = vrot.lane.b32.xlu1 %v6572_v2, %s6231_s5 }
 0x533   :  { %1254 = vrot.lane.b32.xlu0 %v6568_v62, %s6231_s5 }
 0x5a1   :  { %v956_v9 = vpop.xlane.xlu1 %955 }
 0x5a2   :  { %v953_v10 = vpop.xlane.xlu0 %952 }
 0x5a3   :  { %6072 = vrcp.f32 %v953_v10 }
 0x5a4   :  { %6074 = vrcp.f32 %v956_v9 }
 0x5a6   :  { %v1161_v11 = vpop.xlane.xlu1 %1160  ;;  %v1158_v12 = vpop.xlane.xlu0 %1157 }
 0x5a7   :  { %6076 = vrcp.f32 %v1161_v11 }
 0x5a8   :  { %6078 = vrcp.f32 %v1158_v12 }
 0x5aa   :  { %v5991_v13 = vpop.permute.xlu1 %5990  ;;  %v5986_v14 = vpop.permute.xlu0 %5985 }
 0x5ab   :  { %v5993_v16 = vunpack.i.h.bf16 %v5991_v13  ;;  %v5992_v17 = vunpack.i.l.bf16 %v5991_v13  ;;  %v5988_v18 = vunpack.i.h.bf16 %v5986_v14  ;;  %v5987_v20 = vunpack.i.l.bf16 %v5986_v14 }
 0x5ad   :  { %v6073_v22 = vpop.eup %6072  ;;  %v5812_v23 = vpack.c.bf16 %v5988_v18, %v5987_v20  ;;  %v5824_v29 = vpack.c.bf16 %v5993_v16, %v5992_v17 }
 0x5ae   :  { %v6075_v26 = vpop.eup %6074  ;;  %v5996_v27 = vpop.permute.xlu1 %5995  ;;  %v958_v28 = vmul.f32 %v6073_v22, %v6067_v60 }
 0x5af   :  { %v5998_v30 = vunpack.i.h.bf16 %v5996_v27  ;;  %v5997_v31 = vunpack.i.l.bf16 %v5996_v27  ;;  %5814 = vmatprep.subr.msk.bf16.mxu1 %vm6645_vm2, %v5812_v23  ;;  %v960_v33 = vmul.f32 %v6075_v26, %v6065_v57  ;;  %v1255_v38 = vpop.permute.xlu0 %1254 }
 0x5b0   :  { %5817 = vmatpush3.bf16.msk.msra.mxu1 %vm6645_vm2, %v5812_v23  ;;  %5478 = vmatprep.mubr.msk.f32.mxu1 %vm267_vm9, %v958_v28 }
 0x5b1   :  { %v6077_v32 = vpop.eup %6076  ;;  %5826 = vmatprep.subr.msk.bf16.mxu1 %vm6645_vm2, %v5824_v29  ;;  %v5830_v34 = vpack.c.bf16 %v5998_v30, %v5997_v31 }
 0x5b2   :  { %v6079_v35 = vpop.eup %6078  ;;  %v1165_v37 = vmul.f32 %v6077_v32, %v6071_v3  ;;  %v1257_v39 = vpop.permute.xlu1 %1256 }
 0x5b3   :  { %5479 = vmatmul.mubr.msk.f32.vlgmr.msra.gmra.mrb[8].mxu1 %vm267_vm9, %v960_v33  ;;  %v1163_v36 = vmul.f32 %v6079_v35, %v6069_v1 }
 0x5b4   :  { %5829 = vmatpush3.bf16.msk.msra.mxu1 %vm6645_vm2, %v5824_v29 }
 0x5b5   :  { %5492 = vmatprep.mubr.msk.f32.mxu1 %vm267_vm9, %v1163_v36  ;;  %5832 = vmatprep.subr.msk.bf16.mxu1 %vm6590_vm11, %v5830_v34 }
 0x5b7   :  { %5493 = vmatmul.mubr.msk.f32.vlgmr.msra.gmra.mrb[10].mxu1 %vm267_vm9, %v1165_v37 }
 0x5b8   :  { %5499 = vmatprep.mubr.msk.f32.mxu1 %vm265_vm8, %v1255_v38 }
 0x5bd   :  { %5835 = vmatpush3.bf16.xpose.msk.msra.mxu1 %vm6590_vm11, %v5830_v34 }
 0x5c4   :  { %5500 = vmatmul.mubr.msk.f32.vlgmr.msra.gmra.mrb[12].mxu1 %vm265_vm8, %v1257_v39 }
 0x686   :  { %v6667_v41 = vpop.f32.mrb[8].mxu1 }
 0x687   :  { %v6669_v42 = vpop.f32.mrb[9].mxu1 }
 0x68a   :  { %v6671_v43 = vpop.f32.mrb[10].mxu1 }
 0x68b   :  { %v6673_v44 = vpop.f32.mrb[11].mxu1 }
 0x697   :  { %v5501_v45 = vpop.f32.mrb[12].mxu1 }
 0x698   :  { %v1346_v47 = vsel %vm6609_vm12, -inf, %v5501_v45  ;;  %v1336_v48 = vpop.f32.mrb[13].mxu1 }
 0x699   :  { %v1348_v50 = vmul.f32 0.35355338, %v1346_v47  ;;  %v1345_v51 = vsel %vm6614_vm13, -inf, %v1336_v48 }
 0x69a   :  { %v1347_v52 = vmul.f32 0.35355338, %v1345_v51 }
 0x69b   :  { %v1352_v53 = vsel %vm941_vm14, %v1348_v50, -inf }
 0x69c   :  { %1353 = vmax.xlane.f32.xlu1 %v1352_v53  ;;  %v1349_v54 = vsel %vm267_vm9, %v1347_v52, -inf }
 0x69d   :  { %1350 = vmax.xlane.f32.xlu0 %v1349_v54 }
 0x6ad   :  { %6000 = vrot.lane.b32.xlu1 %v6576_v4, %s6233_s28 }
 0x6b1   :  { %1459 = vrot.lane.b32.xlu1 %v6568_v62, %s6234_s10 }
 0x6b5   :  { %1461 = vrot.lane.b32.xlu1 %v6572_v2, %s6234_s10 }
 0x729   :  { %v1354_v55 = vpop.xlane.xlu1 %1353 }
 0x72a   :  { %v1356_v56 = vsub.f32 %v1348_v50, %v1354_v55  ;;  %v1351_v57 = vpop.xlane.xlu0 %1350 }
 0x72b   :  { %v1355_v60 = vsub.f32 %v1347_v52, %v1351_v57 }
 0x72c   :  { %v1359_v61 = vmul.f32 1.442695, %v1356_v56 }
 0x72d   :  { %v1357_v63 = vmul.f32 1.442695, %v1355_v60  ;;  %v6001_v1 = vpop.permute.xlu1 %6000 }
 0x72e   :  { %6080 = vpow2.f32 %v1359_v61  ;;  %v6003_v3 = vunpack.i.h.bf16 %v6001_v1  ;;  %v6002_v5 = vunpack.i.l.bf16 %v6001_v1  ;;  %v6722_v61 = vrot.slane %v6578_v7, 4 }
 0x72f   :  { %6082 = vpow2.f32 %v1357_v63  ;;  %v1696_v63 = vrot.slane %v6572_v2, 4 }
 0x730   :  { %v5836_v8 = vpack.c.bf16 %v6003_v3, %v6002_v5 }
 0x731   :  { %v1460_v27 = vpop.permute.xlu1 %1459  ;;  %v6727_v1 = vsel %vm586_vm4, %v1696_v63, %v6722_v61 }
 0x732   :  { %5838 = vmatprep.subr.msk.bf16.mxu0 %vm6645_vm2, %v5836_v8  ;;  %v6731_v3 = vpack.i.bf16 %v6722_v61, %v6727_v1 }
 0x733   :  { %5841 = vmatpush3.bf16.msk.msra.mxu0 %vm6645_vm2, %v5836_v8 }
 0x735   :  { %v1462_v28 = vpop.permute.xlu1 %1461 }
 0x738   :  { %v6081_v62 = vpop.eup %6080 }
 0x739   :  { %v1364_v9 = vsel %vm941_vm14, %v6081_v62, 0.0  ;;  %v6083_v10 = vpop.eup %6082 }
 0x73a   :  { %1365 = vadd.xlane.f32.xlu0 %v1364_v9  ;;  %v1361_v11 = vsel %vm267_vm9, %v6083_v10, 0.0 }
 0x73e   :  { %1362 = vadd.xlane.f32.xlu0 %v1361_v11 }
 0x754   :  { %6005 = vrot.lane.b32.xlu0 %v6576_v4, %s7482_s1 }
 0x7c7   :  { %v1366_v12 = vpop.xlane.xlu0 %1365 }
 0x7c8   :  { %6084 = vrcp.f32 %v1366_v12 }
 0x7cb   :  { %v1363_v13 = vpop.xlane.xlu0 %1362 }
 0x7cc   :  { %6086 = vrcp.f32 %v1363_v13 }
 0x7cf   :  { %v6006_v14 = vpop.permute.xlu0 %6005 }
 0x7d0   :  { %v6008_v16 = vunpack.i.h.bf16 %v6006_v14  ;;  %v6007_v17 = vunpack.i.l.bf16 %v6006_v14 }
 0x7d2   :  { %v5842_v18 = vpack.c.bf16 %v6008_v16, %v6007_v17  ;;  %v6085_v20 = vpop.eup %6084 }
 0x7d3   :  { %v1370_v26 = vmul.f32 %v6085_v20, %v6081_v62 }
 0x7d4   :  { %5844 = vmatprep.subr.msk.bf16.mxu0 %vm6590_vm11, %v5842_v18 }
 0x7d6   :  { %v6087_v22 = vpop.eup %6086 }
 0x7d7   :  { %v1368_v23 = vmul.f32 %v6087_v22, %v6083_v10 }
 0x7d9   :  { %5506 = vmatprep.mubr.msk.f32.mxu0 %vm267_vm9, %v1368_v23 }
 0x7da   :  { %5507 = vmatmul.mubr.msk.f32.vlgmr.msra.gmra.mrb[14].mxu0 %vm267_vm9, %v1370_v26 }
 0x7db   :  { %5847 = vmatpush3.bf16.xpose.msk.msra.mxu0 %vm6590_vm11, %v5842_v18  ;;  %5513 = vmatprep.mubr.msk.f32.mxu0 %vm265_vm8, %v1460_v27 }
 0x7e2   :  { %5514 = vmatmul.mubr.msk.f32.vlgmr.msra.gmra.mrb[16].mxu0 %vm265_vm8, %v1462_v28 }
 0x8ad   :  { %v6703_v29 = vpop.f32.mrb[14].mxu0 }
 0x8ae   :  { %v6705_v30 = vpop.f32.mrb[15].mxu0 }
 0x8b5   :  { %v5515_v31 = vpop.f32.mrb[16].mxu0 }
 0x8b6   :  { %v1551_v32 = vsel %vm6609_vm12, -inf, %v5515_v31  ;;  %v1541_v33 = vpop.f32.mrb[17].mxu0 }
 0x8b7   :  { %v1553_v35 = vmul.f32 0.35355338, %v1551_v32  ;;  %v1550_v34 = vsel %vm6614_vm13, -inf, %v1541_v33 }
 0x8b8   :  { %v1552_v36 = vmul.f32 0.35355338, %v1550_v34 }
 0x8b9   :  { %v1557_v37 = vsel %vm941_vm14, %v1553_v35, -inf }
 0x8ba   :  { %1558 = vmax.xlane.f32.xlu1 %v1557_v37  ;;  %v1554_v38 = vsel %vm267_vm9, %v1552_v36, -inf }
 0x8bb   :  { %1555 = vmax.xlane.f32.xlu0 %v1554_v38 }
 0x8cb   :  { %6010 = vrot.lane.b32.xlu1 %v6576_v4, %s6236_s30 }
 0x947   :  { %v1559_v39 = vpop.xlane.xlu1 %1558 }
 0x948   :  { %v1561_v45 = vsub.f32 %v1553_v35, %v1559_v39  ;;  %v1556_v47 = vpop.xlane.xlu0 %1555 }
 0x949   :  { %v1560_v48 = vsub.f32 %v1552_v36, %v1556_v47 }
 0x94a   :  { %v1564_v50 = vmul.f32 1.442695, %v1561_v45 }
 0x94b   :  { %v1562_v51 = vmul.f32 1.442695, %v1560_v48  ;;  %v6011_v52 = vpop.permute.xlu1 %6010 }
 0x94c   :  { %6088 = vpow2.f32 %v1564_v50  ;;  %v6013_v53 = vunpack.i.h.bf16 %v6011_v52  ;;  %v6012_v54 = vunpack.i.l.bf16 %v6011_v52 }
 0x94d   :  { %6090 = vpow2.f32 %v1562_v51 }
 0x94e   :  { %v5848_v55 = vpack.c.bf16 %v6013_v53, %v6012_v54 }
 0x950   :  { %5850 = vmatprep.subr.msk.bf16.mxu1 %vm6645_vm2, %v5848_v55 }
 0x951   :  { %5853 = vmatpush3.bf16.msk.msra.mxu1 %vm6645_vm2, %v5848_v55 }
 0x956   :  { %v6089_v56 = vpop.eup %6088 }
 0x957   :  { %v1569_v4 = vsel %vm941_vm14, %v6089_v56, 0.0  ;;  %v6091_v57 = vpop.eup %6090 }
 0x958   :  { %1570 = vadd.xlane.f32.xlu0 %v1569_v4  ;;  %v1566_v60 = vsel %vm267_vm9, %v6091_v57, 0.0 }
 0x95c   :  { %1567 = vadd.xlane.f32.xlu0 %v1566_v60 }
 0x972   :  { %6015 = vrot.lane.b32.xlu0 %v6731_v3, %s6226_s11 }
 0x9e5   :  { %v1571_v5 = vpop.xlane.xlu0 %1570 }
 0x9e6   :  { %6092 = vrcp.f32 %v1571_v5 }
 0x9e9   :  { %v1568_v8 = vpop.xlane.xlu0 %1567 }
 0x9ea   :  { %6094 = vrcp.f32 %v1568_v8 }
 0x9ed   :  { %v6016_v62 = vpop.permute.xlu0 %6015 }
 0x9ee   :  { %v6018_v7 = vunpack.i.h.bf16 %v6016_v62  ;;  %v6017_v9 = vunpack.i.l.bf16 %v6016_v62 }
 0x9f0   :  { %v5854_v10 = vpack.c.bf16 %v6018_v7, %v6017_v9  ;;  %v6093_v2 = vpop.eup %6092 }
 0x9f1   :  { %v1575_v13 = vmul.f32 %v6093_v2, %v6089_v56 }
 0x9f2   :  { %5856 = vmatprep.subr.msk.bf16.mxu1 %vm6590_vm11, %v5854_v10 }
 0x9f4   :  { %v6095_v11 = vpop.eup %6094 }
 0x9f5   :  { %v1573_v12 = vmul.f32 %v6095_v11, %v6091_v57 }
 0x9f7   :  { %5520 = vmatprep.mubr.msk.f32.mxu1 %vm267_vm9, %v1573_v12 }
 0x9f8   :  { %5521 = vmatmul.mubr.msk.f32.vlgmr.msra.gmra.mrb[14].mxu1 %vm267_vm9, %v1575_v13 }
 0x9f9   :  { %5859 = vmatpush3.bf16.xpose.msk.msra.mxu1 %vm6590_vm11, %v5854_v10  ;;  %5527 = vmatprep.mubr.msk.f32.mxu1 %vm265_vm8, %v6727_v1 }
 0xa00   :  { %5528 = vmatmul.mubr.msk.f32.vlgmr.msra.gmra.mrb[16].mxu1 %vm265_vm8, %v6722_v61 }
 0xacb   :  { %v6745_v14 = vpop.f32.mrb[14].mxu1 }
 0xacc   :  { %v6747_v16 = vpop.f32.mrb[15].mxu1 }
 0xad3   :  { %v5529_v17 = vpop.f32.mrb[16].mxu1 }
 0xad4   :  { %v1787_v18 = vsel %vm6609_vm12, -inf, %v5529_v17  ;;  %v1777_v20 = vpop.f32.mrb[17].mxu1 }
 0xad5   :  { %v1789_v22 = vmul.f32 0.35355338, %v1787_v18  ;;  %v1786_v23 = vsel %vm6614_vm13, -inf, %v1777_v20 }
 0xad6   :  { %v1788_v26 = vmul.f32 0.35355338, %v1786_v23 }
 0xad7   :  { %v1793_v27 = vsel %vm941_vm14, %v1789_v22, -inf }
 0xad8   :  { %1794 = vmax.xlane.f32.xlu0 %v1793_v27  ;;  %v1790_v28 = vsel %vm267_vm9, %v1788_v26, -inf }
 0xad9   :  { %1791 = vmax.xlane.f32.xlu1 %v1790_v28 }
 0xaea   :  { %6020 = vrot.lane.b32.xlu1 %v6731_v3, %s6230_s4  ;;  %s7516_s4 = smov 8  }
 0xaee   :  { %1900 = vrot.lane.b32.xlu1 %v6727_v1, %s6227_s3 }
 0xb65   :  { %v1795_v31 = vpop.xlane.xlu0 %1794 }
 0xb66   :  { %v1797_v32 = vsub.f32 %v1789_v22, %v1795_v31  ;;  %v1792_v33 = vpop.xlane.xlu1 %1791 }
 0xb67   :  { %v1796_v35 = vsub.f32 %v1788_v26, %v1792_v33 }
 0xb68   :  { %v1800_v34 = vmul.f32 1.442695, %v1797_v32 }
 0xb69   :  { %v1798_v36 = vmul.f32 1.442695, %v1796_v35 }
 0xb6a   :  { %6096 = vpow2.f32 %v1800_v34  ;;  %v6021_v37 = vpop.permute.xlu1 %6020 }
 0xb6b   :  { %6098 = vpow2.f32 %v1798_v36  ;;  %v6023_v38 = vunpack.i.h.bf16 %v6021_v37  ;;  %v6022_v39 = vunpack.i.l.bf16 %v6021_v37 }
 0xb6d   :  { %v5860_v45 = vpack.c.bf16 %v6023_v38, %v6022_v39 }
 0xb6e   :  { %v1901_v52 = vpop.permute.xlu1 %1900 }
 0xb6f   :  { %5862 = vmatprep.subr.msk.bf16.mxu0 %vm6645_vm2, %v5860_v45 }
 0xb70   :  { %5865 = vmatpush3.bf16.msk.msra.mxu0 %vm6645_vm2, %v5860_v45 }
 0xb74   :  { %v6097_v47 = vpop.eup %6096 }
 0xb75   :  { %v6099_v48 = vpop.eup %6098  ;;  %v1805_v50 = vsel %vm941_vm14, %v6097_v47, 0.0 }
 0xb76   :  { %1806 = vadd.xlane.f32.xlu0 %v1805_v50  ;;  %v1802_v51 = vsel %vm267_vm9, %v6099_v48, 0.0 }
 0xb77   :  { %1803 = vadd.xlane.f32.xlu1 %v1802_v51 }
 0xb88   :  { %1902 = vrot.lane.b32.xlu1 %v6722_v61, %s6227_s3 }
 0xb8c   :  { %6025 = vrot.lane.b32.xlu0 %v6731_v3, %s7480_s2 }
 0xc03   :  { %v1807_v53 = vpop.xlane.xlu0 %1806 }
 0xc04   :  { %6100 = vrcp.f32 %v1807_v53  ;;  %v1804_v54 = vpop.xlane.xlu1 %1803 }
 0xc05   :  { %6102 = vrcp.f32 %v1804_v54 }
 0xc07   :  { %v6026_v55 = vpop.permute.xlu0 %6025 }
 0xc08   :  { %v6028_v56 = vunpack.i.h.bf16 %v6026_v55  ;;  %v6027_v4 = vunpack.i.l.bf16 %v6026_v55  ;;  %v1903_v62 = vpop.permute.xlu1 %1902 }
 0xc0a   :  { %v5866_v57 = vpack.c.bf16 %v6028_v56, %v6027_v4 }
 0xc0c   :  { %5868 = vmatprep.subr.msk.bf16.mxu0 %vm6590_vm11, %v5866_v57 }
 0xc0e   :  { %v6101_v60 = vpop.eup %6100 }
 0xc0f   :  { %v6103_v63 = vpop.eup %6102  ;;  %v1811_v8 = vmul.f32 %v6101_v60, %v6097_v47 }
 0xc10   :  { %v1809_v5 = vmul.f32 %v6103_v63, %v6099_v48 }
 0xc12   :  { %5534 = vmatprep.mubr.msk.f32.mxu0 %vm267_vm9, %v1809_v5 }
 0xc13   :  { %5535 = vmatmul.mubr.msk.f32.vlgmr.msra.gmra.mrb[18].mxu0 %vm267_vm9, %v1811_v8 }
 0xc14   :  { %5871 = vmatpush3.bf16.xpose.msk.msra.mxu0 %vm6590_vm11, %v5866_v57  ;;  %5541 = vmatprep.mubr.msk.f32.mxu0 %vm265_vm8, %v1901_v52 }
 0xc1b   :  { %5542 = vmatmul.mubr.msk.f32.vlgmr.msra.gmra.mrb[20].mxu0 %vm265_vm8, %v1903_v62 }
 0xce6   :  { %v6777_v7 = vpop.f32.mrb[18].mxu0 }
 0xce7   :  { %v6779_v9 = vpop.f32.mrb[19].mxu0 }
 0xcee   :  { %v5543_v10 = vpop.f32.mrb[20].mxu0 }
 0xcef   :  { %v1992_v2 = vsel %vm6609_vm12, -inf, %v5543_v10  ;;  %v1982_v11 = vpop.f32.mrb[21].mxu0 }
 0xcf0   :  { %v1994_v12 = vmul.f32 0.35355338, %v1992_v2  ;;  %v1991_v13 = vsel %vm6614_vm13, -inf, %v1982_v11 }
 0xcf1   :  { %v1993_v17 = vmul.f32 0.35355338, %v1991_v13 }
 0xcf2   :  { %v1998_v18 = vsel %vm941_vm14, %v1994_v12, -inf }
 0xcf3   :  { %1999 = vmax.xlane.f32.xlu1 %v1998_v18  ;;  %v1995_v20 = vsel %vm267_vm9, %v1993_v17, -inf }
 0xcf4   :  { %1996 = vmax.xlane.f32.xlu0 %v1995_v20 }
 0xd04   :  { %6030 = vrot.lane.b32.xlu1 %v6731_v3, %s6228_s6 }
 0xd08   :  { %2105 = vrot.lane.b32.xlu1 %v6727_v1, %s6231_s5 }
 0xd0c   :  { %2107 = vrot.lane.b32.xlu1 %v6722_v61, %s6231_s5 }
 0xd80   :  { %v2000_v22 = vpop.xlane.xlu1 %1999 }
 0xd81   :  { %v2002_v23 = vsub.f32 %v1994_v12, %v2000_v22  ;;  %v1997_v26 = vpop.xlane.xlu0 %1996 }
 0xd82   :  { %v2001_v27 = vsub.f32 %v1993_v17, %v1997_v26 }
 0xd83   :  { %v2005_v28 = vmul.f32 1.442695, %v2002_v23 }
 0xd84   :  { %v2003_v31 = vmul.f32 1.442695, %v2001_v27  ;;  %v6031_v32 = vpop.permute.xlu1 %6030 }
 0xd85   :  { %6104 = vpow2.f32 %v2005_v28  ;;  %v6033_v33 = vunpack.i.h.bf16 %v6031_v32  ;;  %v6032_v35 = vunpack.i.l.bf16 %v6031_v32 }
 0xd86   :  { %6106 = vpow2.f32 %v2003_v31 }
 0xd87   :  { %v5872_v34 = vpack.c.bf16 %v6033_v33, %v6032_v35 }
 0xd88   :  { %v2106_v4 = vpop.permute.xlu1 %2105 }
 0xd89   :  { %5874 = vmatprep.subr.msk.bf16.mxu1 %vm6645_vm2, %v5872_v34 }
 0xd8a   :  { %5877 = vmatpush3.bf16.msk.msra.mxu1 %vm6645_vm2, %v5872_v34 }
 0xd8c   :  { %v2108_v57 = vpop.permute.xlu1 %2107 }
 0xd8f   :  { %v6105_v36 = vpop.eup %6104 }
 0xd90   :  { %v2010_v37 = vsel %vm941_vm14, %v6105_v36, 0.0  ;;  %v6107_v38 = vpop.eup %6106 }
 0xd91   :  { %2011 = vadd.xlane.f32.xlu0 %v2010_v37  ;;  %v2007_v39 = vsel %vm267_vm9, %v6107_v38, 0.0 }
 0xd95   :  { %2008 = vadd.xlane.f32.xlu0 %v2007_v39 }
 0xdab   :  { %6035 = vrot.lane.b32.xlu0 %v6731_v3, %s6229_s27 }
 0xe1e   :  { %v2012_v45 = vpop.xlane.xlu0 %2011 }
 0xe1f   :  { %6108 = vrcp.f32 %v2012_v45 }
 0xe22   :  { %v2009_v47 = vpop.xlane.xlu0 %2008 }
 0xe23   :  { %6110 = vrcp.f32 %v2009_v47 }
 0xe26   :  { %v6036_v48 = vpop.permute.xlu0 %6035 }
 0xe27   :  { %v6038_v50 = vunpack.i.h.bf16 %v6036_v48  ;;  %v6037_v51 = vunpack.i.l.bf16 %v6036_v48 }
 0xe29   :  { %v5878_v52 = vpack.c.bf16 %v6038_v50, %v6037_v51  ;;  %v6109_v53 = vpop.eup %6108 }
 0xe2a   :  { %v2016_v56 = vmul.f32 %v6109_v53, %v6105_v36 }
 0xe2b   :  { %5880 = vmatprep.subr.msk.bf16.mxu1 %vm6590_vm11, %v5878_v52 }
 0xe2d   :  { %v6111_v54 = vpop.eup %6110 }
 0xe2e   :  { %v2014_v55 = vmul.f32 %v6111_v54, %v6107_v38 }
 0xe30   :  { %5548 = vmatprep.mubr.msk.f32.mxu1 %vm267_vm9, %v2014_v55 }
 0xe31   :  { %5549 = vmatmul.mubr.msk.f32.vlgmr.msra.gmra.mrb[18].mxu1 %vm267_vm9, %v2016_v56 }
 0xe32   :  { %5883 = vmatpush3.bf16.xpose.msk.msra.mxu1 %vm6590_vm11, %v5878_v52  ;;  %5555 = vmatprep.mubr.msk.f32.mxu1 %vm265_vm8, %v2106_v4 }
 0xe39   :  { %5556 = vmatmul.mubr.msk.f32.vlgmr.msra.gmra.mrb[20].mxu1 %vm265_vm8, %v2108_v57 }
 0xf04   :  { %v6809_v60 = vpop.f32.mrb[18].mxu1 }
 0xf05   :  { %v6811_v63 = vpop.f32.mrb[19].mxu1 }
 0xf0c   :  { %v5557_v5 = vpop.f32.mrb[20].mxu1 }
 0xf0d   :  { %v2197_v8 = vsel %vm6609_vm12, -inf, %v5557_v5  ;;  %v2187_v62 = vpop.f32.mrb[21].mxu1 }
 0xf0e   :  { %v2199_v10 = vmul.f32 0.35355338, %v2197_v8  ;;  %v2196_v2 = vsel %vm6614_vm13, -inf, %v2187_v62 }
 0xf0f   :  { %v2198_v11 = vmul.f32 0.35355338, %v2196_v2 }
 0xf10   :  { %v2203_v12 = vsel %vm941_vm14, %v2199_v10, -inf }
 0xf11   :  { %2204 = vmax.xlane.f32.xlu1 %v2203_v12  ;;  %v2200_v13 = vsel %vm267_vm9, %v2198_v11, -inf }
 0xf12   :  { %2201 = vmax.xlane.f32.xlu0 %v2200_v13 }
 0xf22   :  { %6040 = vrot.lane.b32.xlu1 %v6731_v3, %s6233_s28 }
 0xf26   :  { %2310 = vrot.lane.b32.xlu1 %v6727_v1, %s6234_s10 }
 0xf2a   :  { %2312 = vrot.lane.b32.xlu1 %v6722_v61, %s6234_s10 }
 0xf9e   :  { %v2205_v17 = vpop.xlane.xlu1 %2204 }
 0xf9f   :  { %v2207_v18 = vsub.f32 %v2199_v10, %v2205_v17  ;;  %v2202_v20 = vpop.xlane.xlu0 %2201 }
 0xfa0   :  { %v2206_v22 = vsub.f32 %v2198_v11, %v2202_v20 }
 0xfa1   :  { %v2210_v23 = vmul.f32 1.442695, %v2207_v18 }
 0xfa2   :  { %v2208_v26 = vmul.f32 1.442695, %v2206_v22  ;;  %v6041_v27 = vpop.permute.xlu1 %6040 }
 0xfa3   :  { %6112 = vpow2.f32 %v2210_v23  ;;  %v6043_v28 = vunpack.i.h.bf16 %v6041_v27  ;;  %v6042_v31 = vunpack.i.l.bf16 %v6041_v27 }
 0xfa4   :  { %6114 = vpow2.f32 %v2208_v26 }
 0xfa5   :  { %v5884_v32 = vpack.c.bf16 %v6043_v28, %v6042_v31 }
 0xfa6   :  { %v2311_v52 = vpop.permute.xlu1 %2310 }
 0xfa7   :  { %5886 = vmatprep.subr.msk.bf16.mxu0 %vm6645_vm2, %v5884_v32 }
 0xfa8   :  { %5889 = vmatpush3.bf16.msk.msra.mxu0 %vm6645_vm2, %v5884_v32  ;;  %v722_v32 = vld [vmem:[%s7454_s12 + $0x10] sm:$0xff] }
 0xfaa   :  { %v2313_v53 = vpop.permute.xlu1 %2312 }
 0xfad   :  { %v6113_v1 = vpop.eup %6112 }
 0xfae   :  { %v2215_v61 = vsel %vm941_vm14, %v6113_v1, 0.0  ;;  %v6115_v33 = vpop.eup %6114 }
 0xfaf   :  { %2216 = vadd.xlane.f32.xlu0 %v2215_v61  ;;  %v2212_v35 = vsel %vm267_vm9, %v6115_v33, 0.0 }
 0xfb3   :  { %2213 = vadd.xlane.f32.xlu0 %v2212_v35 }
 0xfc9   :  { %6045 = vrot.lane.b32.xlu0 %v6731_v3, %s7482_s1 }
0x103c   :  { %v2217_v34 = vpop.xlane.xlu0 %2216 }
0x103d   :  { %6116 = vrcp.f32 %v2217_v34 }
0x1040   :  { %v2214_v36 = vpop.xlane.xlu0 %2213 }
0x1041   :  { %6118 = vrcp.f32 %v2214_v36 }
0x1044   :  { %v6046_v37 = vpop.permute.xlu0 %6045 }
0x1045   :  { %v6048_v38 = vunpack.i.h.bf16 %v6046_v37  ;;  %v6047_v39 = vunpack.i.l.bf16 %v6046_v37 }
0x1047   :  { %v5890_v45 = vpack.c.bf16 %v6048_v38, %v6047_v39  ;;  %v6117_v47 = vpop.eup %6116 }
0x1048   :  { %v2221_v51 = vmul.f32 %v6117_v47, %v6113_v1  ;;  %v723_v1 = vld [vmem:[%s7454_s12 + $0x18] sm:$0xff]  ;;  %v5151_v47 = vld [vmem:[%s7455_s13] ss:$0 sm:$0xff] }
0x1049   :  { %5892 = vmatprep.subr.msk.bf16.mxu0 %vm6590_vm11, %v5890_v45  ;;  %v5906_v61 = vpack.c.bf16 %v723_v1, %v722_v32 }
0x104b   :  { %v6119_v48 = vpop.eup %6118 }
0x104c   :  { %v2219_v50 = vmul.f32 %v6119_v48, %v6115_v33 }
0x104e   :  { %5562 = vmatprep.mubr.msk.f32.mxu0 %vm267_vm9, %v2219_v50 }
0x104f   :  { %5563 = vmatmul.mubr.msk.f32.vlgmr.msra.gmra.mrb[22].mxu0 %vm267_vm9, %v2221_v51 }
0x1050   :  { %5895 = vmatpush3.bf16.xpose.msk.msra.mxu0 %vm6590_vm11, %v5890_v45  ;;  %5569 = vmatprep.mubr.msk.f32.mxu0 %vm265_vm8, %v2311_v52 }
0x1051   :  { %5908 = vmatprep.subr.bf16.mxu0 %v6218_v0 }
0x1057   :  { %5570 = vmatmul.mubr.msk.f32.vlgmr.msra.gmra.mrb[24].mxu0 %vm265_vm8, %v2313_v53 }
0x1058   :  { %5604 = vmatprep.mubr.msk.f32.mxu0 %vm6219_vm0, %v6220_v6 }
0x1122   :  { %v6844_v54 = vpop.f32.mrb[22].mxu0 }
0x1123   :  { %v2301_v55 = vpop.f32.mrb[23].mxu0 }
0x112a   :  { %v5571_v56 = vpop.f32.mrb[24].mxu0 }
0x112b   :  { %v2402_v4 = vsel %vm6609_vm12, -inf, %v5571_v56  ;;  %v2392_v57 = vpop.f32.mrb[25].mxu0 }
0x112c   :  { %v2404_v15 = vmul.f32 0.35355338, %v2402_v4  ;;  %v2401_v5 = vsel %vm6614_vm13, -inf, %v2392_v57 }
0x112d   :  { %v2403_v8 = vmul.f32 0.35355338, %v2401_v5 }
0x112e   :  { %v2408_v62 = vsel %vm941_vm14, %v2404_v15, -inf }
0x112f   :  { %2409 = vmax.xlane.f32.xlu1 %v2408_v62  ;;  %v2405_v10 = vsel %vm267_vm9, %v2403_v8, -inf }
0x1130   :  { %2406 = vmax.xlane.f32.xlu0 %v2405_v10 }
0x1140   :  { %6050 = vrot.lane.b32.xlu1 %v6731_v3, %s6236_s30 }
0x1144   :  { %1674 = vrot.lane.b32.xlu1 %v6705_v30, %s6237_s8 }
0x1148   :  { %2517 = vrot.lane.b32.xlu1 %v6811_v63, %s7478_s7 }
0x114c   :  { %2525 = vrot.lane.b32.xlu1 %v2301_v55, %s6237_s8 }
0x11bc   :  { %v2410_v24 = vpop.xlane.xlu1 %2409 }
0x11bd   :  { %v2412_v25 = vsub.f32 %v2404_v15, %v2410_v24  ;;  %v2407_v2 = vpop.xlane.xlu0 %2406 }
0x11be   :  { %v2411_v11 = vsub.f32 %v2403_v8, %v2407_v2 }
0x11bf   :  { %v2415_v12 = vmul.f32 1.442695, %v2412_v25 }
0x11c0   :  { %v2413_v13 = vmul.f32 1.442695, %v2411_v11  ;;  %v6051_v17 = vpop.permute.xlu1 %6050 }
0x11c1   :  { %v6053_v18 = vunpack.i.h.bf16 %v6051_v17  ;;  %v6052_v20 = vunpack.i.l.bf16 %v6051_v17 }
0x11c2   :  { %6120 = vpow2.f32 %v2413_v13  ;;  %v6216_v13 = vld [vmem:[%s7505_s9] sm:$0xff] }
0x11c3   :  { %v5896_v3 = vpack.c.bf16 %v6053_v18, %v6052_v20  ;;  %6122 = vpow2.f32 %v2415_v12  ;;  %v339_v17 = vadd.f32 %v6216_v13, %v6534_v40  ;;  %v726_v40 = vld [vmem:[%s7456_s14 + $0x8] sm:$0xff] }
0x11c4   :  { %v1675_v34 = vpop.permute.xlu1 %1674 }
0x11c5   :  { %5898 = vmatprep.subr.msk.bf16.mxu1 %vm6645_vm2, %v5896_v3 }
0x11c6   :  { %5901 = vmatpush3.bf16.msk.msra.mxu1 %vm6645_vm2, %v5896_v3 }
0x11c7   :  { %5902 = vmatprep.subr.bf16.mxu1 %v6218_v0 }
0x11c8   :  { %v2518_v52 = vpop.permute.xlu1 %2517 }
0x11cc   :  { %v6121_v30 = vpop.eup %6120  ;;  %v2526_v55 = vpop.permute.xlu1 %2525 }
0x11cd   :  { %v2417_v63 = vsel %vm267_vm9, %v6121_v30, 0.0  ;;  %v6123_v22 = vpop.eup %6122 }
0x11ce   :  { %2418 = vadd.xlane.f32.xlu0 %v2417_v63  ;;  %v2420_v23 = vsel %vm941_vm14, %v6123_v22, 0.0 }
0x11d2   :  { %2421 = vadd.xlane.f32.xlu0 %v2420_v23 }
0x11e8   :  { %1666 = vrot.lane.b32.xlu0 %v6673_v44, %s7478_s7  ;;  %v720_v44 = vld [vmem:[%s7454_s12] sm:$0xff] }
0x11ec   :  { %1682 = vrot.lane.b32.xlu0 %v6747_v16, %s6238_s29 }
0x11f0   :  { %1668 = vrot.lane.b32.xlu0 %v6671_v43, %s7478_s7  ;;  %v721_v43 = vld [vmem:[%s7454_s12 + $0x8] sm:$0xff] }
0x11f1   :  { %v5903_v16 = vpack.c.bf16 %v721_v43, %v720_v44 }
0x11f4   :  { %1676 = vrot.lane.b32.xlu0 %v6703_v29, %s6237_s8 }
0x11f8   :  { %2519 = vrot.lane.b32.xlu0 %v6809_v60, %s7478_s7 }
0x125b   :  { %v2419_v19 = vpop.xlane.xlu0 %2418 }
0x125c   :  { %6124 = vrcp.f32 %v2419_v19  ;;  %v727_v19 = vld [vmem:[%s7456_s14 + $0x10] sm:$0xff] }
0x125f   :  { %v2422_v26 = vpop.xlane.xlu0 %2421 }
0x1260   :  { %6126 = vrcp.f32 %v2422_v26  ;;  %v728_v26 = vld [vmem:[%s7456_s14 + $0x18] sm:$0xff] }
0x1263   :  { %v1667_v31 = vpop.permute.xlu0 %1666 }
0x1264   :  { %v1688_v33 = vsel %vm265_vm8, %v6669_v42, %v1667_v31 }
0x1265   :  { %v1690_v36 = vsel %vm94_vm1, %v1688_v33, %v1675_v34 }
0x1266   :  { %v6125_v27 = vpop.eup %6124 }
0x1267   :  { %v2424_v28 = vmul.f32 %v6125_v27, %v6121_v30  ;;  %v1683_v35 = vpop.permute.xlu0 %1682  ;;  %v5912_v27 = vpack.c.bf16 %v728_v26, %v727_v19 }
0x1268   :  { %v1693_v37 = vsel %vm1692_vm3, %v1690_v36, %v1683_v35  ;;  %v2691_v36 = vsub.s32 0, %v6606_v21 }
0x1269   :  { %5576 = vmatprep.mubr.msk.f32.mxu1 %vm267_vm9, %v2424_v28 }
0x126a   :  { %v6127_v29 = vpop.eup %6126 }
0x126b   :  { %v2426_v60 = vmul.f32 %v6127_v29, %v6123_v22  ;;  %v1669_v53 = vpop.permute.xlu0 %1668  ;;  %v725_v22 = vld [vmem:[%s7456_s14] sm:$0xff] }
0x126c   :  { %v1689_v15 = vsel %vm265_vm8, %v6667_v41, %v1669_v53  ;;  %v5909_v23 = vpack.c.bf16 %v726_v40, %v725_v22 }
0x126d   :  { %5577 = vmatmul.mubr.msk.f32.vlgmr.msra.gmra.mrb[22].mxu1 %vm267_vm9, %v2426_v60 }
0x126e   :  { %5904 = vmatpush3.bf16.msra.mxu1 %v5903_v16  ;;  %5587 = vmatprep.mubr.msk.f32.mxu1 %vm6219_vm0, %v6220_v6 }
0x126f   :  { %5905 = vmatprep.subr.bf16.mxu1 %v6218_v0  ;;  %v1677_v56 = vpop.permute.xlu0 %1676  ;;  %5910 = vmatpush3.bf16.msra.mxu0 %v5909_v23 }
0x1270   :  { %5911 = vmatprep.subr.bf16.mxu0 %v6218_v0 }
0x1272   :  { %5907 = vmatpush3.bf16.msra.mxu1 %v5906_v61 }
0x1273   :  { %v2520_v62 = vpop.permute.xlu0 %2519  ;;  %5913 = vmatpush3.bf16.msra.mxu0 %v5912_v27 }
0x1275   :  { %5588 = vmatmul.mubr.msk.f32.vlgmr.msra.gmra.mrb[24].mxu1 %vm756_vm10, %v1693_v37  ;;  %v749_v37 = vld [vmem:[%s7457_s22] sm:$0x3f] }
0x1276   :  { %5590 = vmatprep.mubr.msk.f32.mxu1 %vm6219_vm0, %v6220_v6 }
0x1340   :  { %v5578_v38 = vpop.f32.mrb[22].mxu1 }
0x1341   :  { %2535 = vrot.lane.b32.xlu0 %v5578_v38, %s6238_s29  ;;  %v2506_v39 = vpop.f32.mrb[23].mxu1  ;;  %v2692_v38 = vrot.slane %v749_v37, %v2691_v36 }
0x1342   :  { %2533 = vrot.lane.b32.xlu1 %v2506_v39, %s6238_s29 }
0x1346   :  { %1684 = vrot.lane.b32.xlu1 %v6745_v14, %s6238_s29  ;;  %v2539_v14 = vsel %vm265_vm8, %v6779_v9, %v2518_v52  ;;  %v2540_v9 = vsel %vm265_vm8, %v6777_v7, %v2520_v62 }
0x1347   :  { %v2541_v4 = vsel %vm94_vm1, %v2539_v14, %v2526_v55 }
0x1348   :  { %v2632_v42 = vpop.f32.mrb[24].mxu1 }
0x1349   :  { %v5589_v45 = vpop.f32.mrb[25].mxu1  ;;  %v2633_v48 = vadd.f32 %v5151_v47, %v2632_v42 }
0x134a   :  { %2527 = vrot.lane.b32.xlu1 %v6844_v54, %s6237_s8 }
0x134b   :  { %v2646_v50 = vadd.f32 %v2633_v48, %v6544_v49  ;;  %v1691_v49 = vsel %vm94_vm1, %v1689_v15, %v1677_v56  ;;  %v6059_v15 = vpack.i.bf16 %v728_v26, %v727_v19 }
0x134d   :  { %v2649_v51 = vsel %vm756_vm10, %v2646_v50, 0.0 }
0x136e   :  { %2650 = vadd.xlane.f32.xlu1 %v2649_v51 }
0x13b3   :  { %v2536_v2 = vpop.permute.xlu0 %2535 }
0x13b4   :  { %v2534_v54 = vpop.permute.xlu1 %2533 }
0x13b5   :  { %v2543_v57 = vsel %vm1692_vm3, %v2541_v4, %v2534_v54 }
0x13b6   :  { %v2547_v5 = vrot.slane %v2543_v57, 4  ;;  %v6054_v57 = vpack.i.bf16 %v726_v40, %v725_v22 }
0x13b8   :  { %v1685_v8 = vpop.permute.xlu1 %1684 }
0x13b9   :  { %v1694_v10 = vsel %vm1692_vm3, %v1691_v49, %v1685_v8  ;;  %v5155_v49 = vld [vmem:[%s7458_s15] ss:$0 sm:$0xff]  ;;  %s7514_s15 = smov 72  }
0x13ba   :  { %v2551_v24 = vsel %vm586_vm4, %v1694_v10, %v2547_v5 }
0x13bb   :  { %5591 = vmatmul.mubr.msk.f32.gmra.mrb[26].mxu1 %vm756_vm10, %v2551_v24 }
0x13bc   :  { %v2528_v25 = vpop.permute.xlu1 %2527  ;;  %5593 = vmatprep.mubr.msk.f32.mxu1 %vm6219_vm0, %v6220_v6 }
0x13bd   :  { %v2542_v41 = vsel %vm94_vm1, %v2540_v9, %v2528_v25 }
0x13be   :  { %v2544_v11 = vsel %vm1692_vm3, %v2542_v41, %v2536_v2 }
0x13bf   :  { %v2548_v12 = vrot.slane %v2544_v11, 4 }
0x13c1   :  { %v2549_v18 = vsel %vm586_vm4, %v2547_v5, %v2548_v12 }
0x13c2   :  { %5594 = vmatmul.mubr.msk.f32.gmra.mrb[28].mxu1 %vm756_vm10, %v2549_v18 }
0x13c3   :  { %5621 = vmatprep.mubr.msk.f32.mxu1 %vm756_vm10, %v339_v17 }
0x13fb   :  { %v2651_v7 = vpop.xlane.xlu1 %2650 }
0x13fc   :  { %v2659_v20 = vmul.f32 0.03125, %v2651_v7 }
0x13fe   :  { %v2662_v3 = vsub.f32 %v2646_v50, %v2659_v20 }
0x1400   :  { %v2665_v30 = vmul.f32 %v2662_v3, %v2662_v3 }
0x1402   :  { %v2668_v63 = vsel %vm756_vm10, %v2665_v30, 0.0 }
0x1403   :  { %2669 = vadd.xlane.f32.xlu1 %v2668_v63 }
0x148e   :  { %v2637_v28 = vpop.f32.mrb[26].mxu1 }
0x148f   :  { %v2638_v44 = vadd.f32 %v5151_v47, %v2637_v28  ;;  %v5592_v43 = vpop.f32.mrb[27].mxu1 }
0x1490   :  { %v2670_v29 = vpop.xlane.xlu1 %2669 }
0x1491   :  { %v2677_v16 = vmul.f32 0.03125, %v2670_v29  ;;  %v2647_v31 = vadd.f32 %v2638_v44, %v6554_v58  ;;  %v2698_v58 = vsub.s32 1, %v6606_v21 }
0x1493   :  { %v2680_v60 = vadd.f32 1e-05, %v2677_v16  ;;  %v2652_v32 = vsel %vm756_vm10, %v2647_v31, 0.0  ;;  %v2699_v45 = vrot.slane %v749_v37, %v2698_v58 }
0x1494   :  { %2653 = vadd.xlane.f32.xlu0 %v2652_v32 }
0x1495   :  { %6128 = vrsqrt.f32 %v2680_v60  ;;  %v2642_v1 = vpop.f32.mrb[28].mxu1 }
0x1496   :  { %v2643_v61 = vadd.f32 %v5151_v47, %v2642_v1  ;;  %v5595_v33 = vpop.f32.mrb[29].mxu1 }
0x1498   :  { %v2648_v35 = vadd.f32 %v2643_v61, %v6557_v59 }
0x149a   :  { %v2655_v34 = vsel %vm756_vm10, %v2648_v35, 0.0 }
0x149b   :  { %2656 = vadd.xlane.f32.xlu0 %v2655_v34 }
0x149f   :  { %v6129_v39 = vpop.eup %6128 }
0x14a0   :  { %v2686_v42 = vmul.f32 %v6129_v39, %v2662_v3 }
0x14a2   :  { %v2693_v59 = vmul.f32 %v2692_v38, %v2686_v42 }
0x14a4   :  { %v6961_v47 = vadd.f32 %v2699_v45, %v2693_v59 }
0x14a6   :  { %5605 = vmatmul.mubr.msk.f32.vlgmr.msra.gmra.mrb[26].mxu0 %vm756_vm10, %v6961_v47 }
0x14a7   :  { %5607 = vmatprep.mubr.msk.f32.mxu0 %vm6219_vm0, %v6220_v6 }
0x1521   :  { %v2654_v48 = vpop.xlane.xlu0 %2653 }
0x1522   :  { %v2660_v50 = vmul.f32 0.03125, %v2654_v48 }
0x1524   :  { %v2663_v51 = vsub.f32 %v2647_v31, %v2660_v50 }
0x1526   :  { %v2666_v52 = vmul.f32 %v2663_v51, %v2663_v51 }
0x1528   :  { %v2657_v53 = vpop.xlane.xlu0 %2656  ;;  %v2671_v55 = vsel %vm756_vm10, %v2666_v52, 0.0 }
0x1529   :  { %v2661_v14 = vmul.f32 0.03125, %v2657_v53  ;;  %2672 = vadd.xlane.f32.xlu0 %v2671_v55 }
0x152b   :  { %v2664_v56 = vsub.f32 %v2648_v35, %v2661_v14 }
0x152d   :  { %v2667_v4 = vmul.f32 %v2664_v56, %v2664_v56 }
0x152f   :  { %v2674_v54 = vsel %vm756_vm10, %v2667_v4, 0.0 }
0x1530   :  { %2675 = vadd.xlane.f32.xlu1 %v2674_v54 }
0x153f   :  { %6055 = vrot.lane.b32.xlu0 %v6054_v57, %s6226_s11 }
0x1541   :  { %6060 = vrot.lane.b32.xlu1 %v6059_v15, %s6226_s11 }
0x1545   :  { %2814 = vrot.lane.b32.xlu1 %v5155_v49, %s6226_s11 }
0x1579   :  { %v2784_v5 = vpop.f32.mrb[26].mxu0 }
0x157a   :  { %v5606_v8 = vpop.f32.mrb[27].mxu0  ;;  %v2785_v27 = vadd.f32 %v5155_v49, %v2784_v5 }
0x15b6   :  { %v2673_v62 = vpop.xlane.xlu0 %2672 }
0x15b7   :  { %v2678_v10 = vmul.f32 0.03125, %v2673_v62 }
0x15b9   :  { %v2681_v24 = vadd.f32 1e-05, %v2678_v10 }
0x15ba   :  { %v6056_v9 = vpop.permute.xlu0 %6055 }
0x15bb   :  { %6130 = vrsqrt.f32 %v2681_v24  ;;  %v6058_v25 = vunpack.i.h.bf16 %v6056_v9  ;;  %v6057_v2 = vunpack.i.l.bf16 %v6056_v9 }
0x15bd   :  { %v5914_v41 = vpack.c.bf16 %v6058_v25, %v6057_v2  ;;  %v2676_v11 = vpop.xlane.xlu1 %2675 }
0x15be   :  { %v2679_v12 = vmul.f32 0.03125, %v2676_v11 }
0x15bf   :  { %5915 = vmatprep.subr.bf16.mxu1 %v5914_v41 }
0x15c0   :  { %v2682_v13 = vadd.f32 1e-05, %v2679_v12  ;;  %5917 = vmatpush3.bf16.msra.mxu1 %v5914_v41 }
0x15c1   :  { %v6061_v17 = vpop.permute.xlu1 %6060 }
0x15c2   :  { %6132 = vrsqrt.f32 %v2682_v13  ;;  %v6063_v18 = vunpack.i.h.bf16 %v6061_v17  ;;  %v6062_v7 = vunpack.i.l.bf16 %v6061_v17 }
0x15c4   :  { %v5918_v20 = vpack.c.bf16 %v6063_v18, %v6062_v7 }
0x15c5   :  { %v6131_v3 = vpop.eup %6130 }
0x15c6   :  { %5919 = vmatprep.subr.bf16.mxu1 %v5918_v20  ;;  %v2687_v30 = vmul.f32 %v6131_v3, %v2663_v51 }
0x15c7   :  { %5921 = vmatpush3.bf16.msra.mxu1 %v5918_v20 }
0x15c8   :  { %v2694_v63 = vmul.f32 %v2692_v38, %v2687_v30 }
0x15ca   :  { %5622 = vmatmul.mubr.msk.f32.vlgmr.msra.gmra.mrb[30].mxu1 %vm756_vm10, %v6542_v46  ;;  %v6977_v22 = vadd.f32 %v2699_v45, %v2694_v63  ;;  %v2815_v46 = vpop.permute.xlu1 %2814 }
0x15cc   :  { %v6133_v40 = vpop.eup %6132  ;;  %5608 = vmatmul.mubr.msk.f32.gmra.mrb[28].mxu0 %vm756_vm10, %v6977_v22 }
0x15cd   :  { %5610 = vmatprep.mubr.msk.f32.mxu0 %vm6219_vm0, %v6220_v6  ;;  %v2688_v23 = vmul.f32 %v6133_v40, %v2664_v56 }
0x15cf   :  { %v2695_v19 = vmul.f32 %v2692_v38, %v2688_v23 }
0x15d1   :  { %v6983_v26 = vadd.f32 %v2699_v45, %v2695_v19 }
0x15d3   :  { %5611 = vmatmul.mubr.msk.f32.gmra.mrb[30].mxu0 %vm756_vm10, %v6983_v26 }
0x15d4   :  { %5626 = vmatprep.mubr.msk.f32.mxu0 %vm265_vm8, %v2785_v27 }
0x169d   :  { %v5623_v28 = vpop.f32.mrb[30].mxu1 }
0x169e   :  { %v2889_v44 = vpop.f32.mrb[31].mxu1  ;;  %v7006_v1 = vadd.f32 %v5623_v28, %v2815_v46 }
0x169f   :  { %v6988_v43 = vadd.f32 %v2889_v44, %v2815_v46  ;;  %v2789_v29 = vpop.f32.mrb[28].mxu0 }
0x16a0   :  { %v5609_v16 = vpop.f32.mrb[29].mxu0  ;;  %v2790_v31 = vadd.f32 %v5155_v49, %v2789_v29 }
0x16a1   :  { %3290 = vrot.lane.b32.xlu1 %v6988_v43, %s6231_s5  ;;  %3095 = vrot.lane.b32.xlu0 %v6988_v43, %s6227_s3 }
0x16a2   :  { %5624 = vmatprep.subr.msk.mxu0 %vm265_vm8, %v6988_v43  ;;  %v3707_v35 = vrot.slane %v2790_v31, 4 }
0x16a3   :  { %5625 = vmatpush3.xpose.msk.msra.mxu0 %vm265_vm8, %v6988_v43 }
0x16a5   :  { %3091 = vrot.lane.b32.xlu1 %v2785_v27, %s6227_s3  ;;  %3286 = vrot.lane.b32.xlu0 %v2785_v27, %s6231_s5 }
0x16a6   :  { %5627 = vmatmul.mubr.msk.f32.vlgmr.msra.gmra.mrb[32].mxu0 %vm265_vm8, %v2790_v31  ;;  %v2794_v60 = vpop.f32.mrb[30].mxu0 }
0x16a7   :  { %v5612_v32 = vpop.f32.mrb[31].mxu0  ;;  %v2795_v61 = vadd.f32 %v5155_v49, %v2794_v60 }
0x16a9   :  { %3481 = vrot.lane.b32.xlu1 %v2785_v27, %s6234_s10  ;;  %3093 = vrot.lane.b32.xlu0 %v2790_v31, %s6227_s3  ;;  %v3708_v33 = vrot.slane %v2795_v61, 4 }
0x16ab   :  { %v3709_v34 = vsel %vm586_vm4, %v3707_v35, %v3708_v33 }
0x16ad   :  { %3288 = vrot.lane.b32.xlu1 %v2790_v31, %s6231_s5  ;;  %3485 = vrot.lane.b32.xlu0 %v6988_v43, %s6234_s10 }
0x16b1   :  { %3904 = vrot.lane.b32.xlu1 %v7006_v1, %s6227_s3  ;;  %3483 = vrot.lane.b32.xlu0 %v2790_v31, %s6234_s10 }
0x16b5   :  { %3902 = vrot.lane.b32.xlu1 %v3708_v33, %s6227_s3  ;;  %4099 = vrot.lane.b32.xlu0 %v7006_v1, %s6231_s5 }
0x16b9   :  { %4095 = vrot.lane.b32.xlu1 %v3709_v34, %s6231_s5  ;;  %3900 = vrot.lane.b32.xlu0 %v3709_v34, %s6227_s3  ;;  %s7515_s3 = smov 88  }
0x16bd   :  { %4294 = vrot.lane.b32.xlu1 %v7006_v1, %s6234_s10  ;;  %4097 = vrot.lane.b32.xlu0 %v3708_v33, %s6231_s5 }
0x16c1   :  { %4292 = vrot.lane.b32.xlu1 %v3708_v33, %s6234_s10  ;;  %4290 = vrot.lane.b32.xlu0 %v3709_v34, %s6234_s10 }
0x16c5   :  { %3007 = vrot.lane.b32.xlu1 %v6988_v43, %s6226_s11 }
0x1713   :  { %v3291_v37 = vpop.permute.xlu1 %3290  ;;  %v3096_v38 = vpop.permute.xlu0 %3095 }
0x1714   :  { %5634 = vmatprep.subr.msk.mxu0 %vm265_vm8, %v3096_v38 }
0x1715   :  { %5635 = vmatpush3.xpose.msk.msra.mxu0 %vm265_vm8, %v3096_v38 }
0x1716   :  { %5644 = vmatprep.subr.msk.mxu0 %vm265_vm8, %v3291_v37 }
0x1717   :  { %v3092_v39 = vpop.permute.xlu1 %3091  ;;  %v3287_v42 = vpop.permute.xlu0 %3286 }
0x1718   :  { %5636 = vmatprep.mubr.msk.f32.mxu0 %vm265_vm8, %v3092_v39 }
0x171b   :  { %v3482_v45 = vpop.permute.xlu1 %3481  ;;  %v3094_v59 = vpop.permute.xlu0 %3093 }
0x171c   :  { %5637 = vmatmul.mubr.msk.f32.vlgmr.msra.gmra.mrb[34].mxu0 %vm265_vm8, %v3094_v59 }
0x171d   :  { %5645 = vmatpush3.xpose.msk.msra.mxu0 %vm265_vm8, %v3291_v37  ;;  %5646 = vmatprep.mubr.msk.f32.mxu0 %vm265_vm8, %v3287_v42 }
0x171f   :  { %v3289_v48 = vpop.permute.xlu1 %3288  ;;  %v3486_v50 = vpop.permute.xlu0 %3485 }
0x1720   :  { %5647 = vmatmul.mubr.msk.f32.vlgmr.msra.gmra.mrb[36].mxu0 %vm265_vm8, %v3289_v48  ;;  %5654 = vmatprep.subr.msk.mxu0 %vm265_vm8, %v3486_v50 }
0x1721   :  { %5655 = vmatpush3.xpose.msk.msra.mxu0 %vm265_vm8, %v3486_v50  ;;  %5656 = vmatprep.mubr.msk.f32.mxu0 %vm265_vm8, %v3482_v45 }
0x1722   :  { %5664 = vmatprep.subr.msk.mxu0 %vm265_vm8, %v7006_v1 }
0x1723   :  { %v3905_v51 = vpop.permute.xlu1 %3904  ;;  %v3484_v52 = vpop.permute.xlu0 %3483 }
0x1724   :  { %5657 = vmatmul.mubr.msk.f32.vlgmr.msra.gmra.mrb[38].mxu0 %vm265_vm8, %v3484_v52 }
0x1725   :  { %5665 = vmatpush3.xpose.msk.msra.mxu0 %vm265_vm8, %v7006_v1  ;;  %5666 = vmatprep.mubr.msk.f32.mxu0 %vm265_vm8, %v3709_v34 }
0x1726   :  { %5674 = vmatprep.subr.msk.mxu0 %vm265_vm8, %v3905_v51 }
0x1727   :  { %v3903_v53 = vpop.permute.xlu1 %3902  ;;  %v4100_v55 = vpop.permute.xlu0 %4099 }
0x1728   :  { %5667 = vmatmul.mubr.msk.f32.vlgmr.msra.gmra.mrb[40].mxu0 %vm265_vm8, %v3708_v33 }
0x1729   :  { %5675 = vmatpush3.xpose.msk.msra.mxu0 %vm265_vm8, %v3905_v51 }
0x172a   :  { %5684 = vmatprep.subr.msk.mxu0 %vm265_vm8, %v4100_v55 }
0x172b   :  { %v4096_v14 = vpop.permute.xlu1 %4095  ;;  %v3901_v56 = vpop.permute.xlu0 %3900 }
0x172c   :  { %5676 = vmatprep.mubr.msk.f32.mxu0 %vm265_vm8, %v3901_v56 }
0x172d   :  { %5677 = vmatmul.mubr.msk.f32.vlgmr.msra.gmra.mrb[42].mxu0 %vm265_vm8, %v3903_v53 }
0x172e   :  { %5685 = vmatpush3.xpose.msk.msra.mxu0 %vm265_vm8, %v4100_v55  ;;  %5686 = vmatprep.mubr.msk.f32.mxu0 %vm265_vm8, %v4096_v14 }
0x172f   :  { %v4295_v4 = vpop.permute.xlu1 %4294  ;;  %v4098_v54 = vpop.permute.xlu0 %4097 }
0x1730   :  { %5694 = vmatprep.subr.msk.mxu0 %vm265_vm8, %v4295_v4 }
0x1731   :  { %5687 = vmatmul.mubr.msk.f32.vlgmr.msra.gmra.mrb[44].mxu0 %vm265_vm8, %v4098_v54 }
0x1732   :  { %5695 = vmatpush3.xpose.msk.msra.mxu0 %vm265_vm8, %v4295_v4 }
0x1733   :  { %v4293_v57 = vpop.permute.xlu1 %4292  ;;  %v4291_v15 = vpop.permute.xlu0 %4290  ;;  %5922 = vmatprep.subr.bf16.mxu0 %v6218_v0 }
0x1734   :  { %5696 = vmatprep.mubr.msk.f32.mxu0 %vm265_vm8, %v4291_v15 }
0x1735   :  { %5697 = vmatmul.mubr.msk.f32.vlgmr.msra.gmra.mrb[46].mxu0 %vm265_vm8, %v4293_v57 }
0x1736   :  { %5712 = vmatprep.mubr.msk.f32.mxu0 %vm6219_vm0, %v6220_v6 }
0x1737   :  { %v3008_v49 = vpop.permute.xlu1 %3007 }
0x1738   :  { %5629 = vmatprep.subr.mxu1 %v3008_v49 }
0x1739   :  { %5630 = vmatpush3.msra.mxu1 %v3008_v49 }
0x1779   :  { %v5628_v5 = vpop.f32.mrb[32].mxu0 }
0x177a   :  { %v7057_v8 = vmul.f32 0.35355338, %v5628_v5  ;;  %v2973_v62 = vpop.f32.mrb[33].mxu0 }
0x177b   :  { %v7059_v10 = vmul.f32 0.35355338, %v2973_v62 }
0x177c   :  { %v2988_v24 = vsel %vm2987_vm5, %v7057_v8, -inf }
0x177d   :  { %2989 = vmax.xlane.f32.xlu1 %v2988_v24  ;;  %v2984_v9 = vsel %vm265_vm8, %v7059_v10, -inf }
0x177e   :  { %2985 = vmax.xlane.f32.xlu0 %v2984_v9 }
0x17ef   :  { %v5638_v25 = vpop.f32.mrb[34].mxu0 }
0x17f0   :  { %v7065_v2 = vmul.f32 0.35355338, %v5638_v25  ;;  %v3169_v41 = vpop.f32.mrb[35].mxu0 }
0x17f1   :  { %v7067_v11 = vmul.f32 0.35355338, %v3169_v41 }
0x17f2   :  { %v3183_v12 = vsel %vm2987_vm5, %v7065_v2, -inf }
0x17f3   :  { %v5648_v13 = vpop.f32.mrb[36].mxu0  ;;  %3184 = vmax.xlane.f32.xlu0 %v3183_v12  ;;  %v3180_v20 = vsel %vm265_vm8, %v7067_v11, -inf }
0x17f4   :  { %v3364_v17 = vpop.f32.mrb[37].mxu0  ;;  %v7073_v7 = vmul.f32 0.35355338, %v5648_v13 }
0x17f5   :  { %v7071_v18 = vmul.f32 0.35355338, %v3364_v17 }
0x17f6   :  { %v3378_v19 = vsel %vm2987_vm5, %v7073_v7, -inf }
0x17f7   :  { %v5658_v3 = vpop.f32.mrb[38].mxu0  ;;  %3181 = vmax.xlane.f32.xlu0 %v3180_v20  ;;  %v3375_v30 = vsel %vm265_vm8, %v7071_v18, -inf }
0x17f8   :  { %v3559_v63 = vpop.f32.mrb[39].mxu0  ;;  %3376 = vmax.xlane.f32.xlu1 %v3375_v30  ;;  %v7081_v23 = vmul.f32 0.35355338, %v5658_v3 }
0x17f9   :  { %v7079_v40 = vmul.f32 0.35355338, %v3559_v63 }
0x17fa   :  { %v3573_v16 = vsel %vm2987_vm5, %v7081_v23, -inf }
0x17fb   :  { %v5668_v27 = vpop.f32.mrb[40].mxu0  ;;  %3379 = vmax.xlane.f32.xlu0 %v3378_v19  ;;  %v3570_v46 = vsel %vm265_vm8, %v7079_v40, -inf }
0x17fc   :  { %v3783_v28 = vpop.f32.mrb[41].mxu0  ;;  %3571 = vmax.xlane.f32.xlu1 %v3570_v46  ;;  %v7089_v29 = vmul.f32 0.35355338, %v5668_v27 }
0x17fd   :  { %v7087_v44 = vmul.f32 0.35355338, %v3783_v28 }
0x17fe   :  { %v3797_v35 = vsel %vm2987_vm5, %v7089_v29, -inf }
0x17ff   :  { %3574 = vmax.xlane.f32.xlu0 %v3573_v16  ;;  %v3794_v31 = vsel %vm265_vm8, %v7087_v44, -inf }
0x1800   :  { %v5678_v60 = vpop.f32.mrb[42].mxu0  ;;  %3795 = vmax.xlane.f32.xlu1 %v3794_v31 }
0x1801   :  { %v3978_v32 = vpop.f32.mrb[43].mxu0  ;;  %v7095_v61 = vmul.f32 0.35355338, %v5678_v60 }
0x1802   :  { %v7097_v33 = vmul.f32 0.35355338, %v3978_v32 }
0x1803   :  { %3798 = vmax.xlane.f32.xlu0 %v3797_v35  ;;  %v3992_v45 = vsel %vm2987_vm5, %v7095_v61, -inf }
0x1804   :  { %v5688_v34 = vpop.f32.mrb[44].mxu0  ;;  %v3989_v37 = vsel %vm265_vm8, %v7097_v33, -inf }
0x1805   :  { %v4173_v38 = vpop.f32.mrb[45].mxu0  ;;  %3990 = vmax.xlane.f32.xlu1 %v3989_v37  ;;  %v7103_v39 = vmul.f32 0.35355338, %v5688_v34 }
0x1806   :  { %v7105_v42 = vmul.f32 0.35355338, %v4173_v38 }
0x1807   :  { %3993 = vmax.xlane.f32.xlu0 %v3992_v45  ;;  %v4187_v52 = vsel %vm2987_vm5, %v7103_v39, -inf }
0x1808   :  { %v5698_v59 = vpop.f32.mrb[46].mxu0  ;;  %v4184_v48 = vsel %vm265_vm8, %v7105_v42, -inf }
0x1809   :  { %v4368_v50 = vpop.f32.mrb[47].mxu0  ;;  %4185 = vmax.xlane.f32.xlu1 %v4184_v48  ;;  %v7111_v51 = vmul.f32 0.35355338, %v5698_v59 }
0x180a   :  { %v2990_v55 = vpop.xlane.xlu1 %2989  ;;  %v7124_v4 = vmul.f32 0.35355338, %v4368_v50 }
0x180b   :  { %4188 = vmax.xlane.f32.xlu0 %v4187_v52  ;;  %v4382_v53 = vsel %vm2987_vm5, %v7111_v51, -inf  ;;  %v2992_v14 = vsub.f32 %v7057_v8, %v2990_v55 }
0x180c   :  { %v4379_v57 = vsel %vm265_vm8, %v7124_v4, -inf }
0x180d   :  { %v2995_v56 = vmul.f32 1.442695, %v2992_v14 }
0x180f   :  { %4383 = vmax.xlane.f32.xlu0 %v4382_v53  ;;  %6134 = vpow2.f32 %v2995_v56 }
0x1819   :  { %v7126_v54 = vpop.eup %6134 }
0x181a   :  { %3397 = vrot.lane.b32.xlu1 %v6988_v43, %s6229_s27  ;;  %v3000_v15 = vsel %vm2987_vm5, %v7126_v54, 0.0 }
0x181e   :  { %3592 = vrot.lane.b32.xlu1 %v6988_v43, %s7514_s15 }
0x1825   :  { %3202 = vrot.lane.b32.xlu0 %v6988_v43, %s7515_s3  ;;  %v2986_v43 = vpop.xlane.xlu0 %2985 }
0x1826   :  { %v2991_v49 = vsub.f32 %v7059_v10, %v2986_v43 }
0x1828   :  { %v2993_v5 = vmul.f32 1.442695, %v2991_v49 }
0x182a   :  { %6136 = vpow2.f32 %v2993_v5 }
0x1834   :  { %v7137_v8 = vpop.eup %6136 }
0x1835   :  { %v2997_v62 = vsel %vm265_vm8, %v7137_v8, 0.0 }
0x1842   :  { %4380 = vmax.xlane.f32.xlu1 %v4379_v57 }
0x1844   :  { %3001 = vadd.xlane.f32.xlu0 %v3000_v15 }
0x1853   :  { %3816 = vrot.lane.b32.xlu1 %v7006_v1, %s6226_s11 }
0x1857   :  { %4011 = vrot.lane.b32.xlu1 %v7006_v1, %s7515_s3 }
0x187b   :  { %2998 = vadd.xlane.f32.xlu1 %v2997_v62 }
0x1880   :  { %v3185_v24 = vpop.xlane.xlu0 %3184 }
0x1881   :  { %v3187_v9 = vsub.f32 %v7065_v2, %v3185_v24 }
0x1883   :  { %v3190_v25 = vmul.f32 1.442695, %v3187_v9 }
0x1884   :  { %v3182_v41 = vpop.xlane.xlu0 %3181 }
0x1885   :  { %6138 = vpow2.f32 %v3190_v25  ;;  %v3186_v12 = vsub.f32 %v7067_v11, %v3182_v41  ;;  %v3377_v13 = vpop.xlane.xlu1 %3376 }
0x1886   :  { %v3381_v17 = vsub.f32 %v7071_v18, %v3377_v13 }
0x1887   :  { %v3188_v10 = vmul.f32 1.442695, %v3186_v12 }
0x1888   :  { %v3383_v20 = vmul.f32 1.442695, %v3381_v17  ;;  %v3380_v3 = vpop.xlane.xlu0 %3379 }
0x1889   :  { %6140 = vpow2.f32 %v3188_v10  ;;  %v3382_v30 = vsub.f32 %v7073_v7, %v3380_v3  ;;  %v3572_v63 = vpop.xlane.xlu1 %3571 }
0x188a   :  { %v3576_v19 = vsub.f32 %v7079_v40, %v3572_v63  ;;  %6142 = vpow2.f32 %v3383_v20 }
0x188b   :  { %v3385_v27 = vmul.f32 1.442695, %v3382_v30 }
0x188c   :  { %v3578_v2 = vmul.f32 1.442695, %v3576_v19  ;;  %v3575_v46 = vpop.xlane.xlu0 %3574 }
0x188d   :  { %6144 = vpow2.f32 %v3385_v27  ;;  %v3577_v28 = vsub.f32 %v7081_v23, %v3575_v46  ;;  %v3796_v11 = vpop.xlane.xlu1 %3795 }
0x188e   :  { %v3800_v16 = vsub.f32 %v7087_v44, %v3796_v11  ;;  %6146 = vpow2.f32 %v3578_v2 }
0x188f   :  { %v7148_v18 = vpop.eup %6138  ;;  %v3580_v31 = vmul.f32 1.442695, %v3577_v28 }
0x1890   :  { %v3802_v60 = vmul.f32 1.442695, %v3800_v16  ;;  %v3799_v32 = vpop.xlane.xlu0 %3798  ;;  %v3195_v7 = vsel %vm2987_vm5, %v7148_v18, 0.0 }
0x1891   :  { %6148 = vpow2.f32 %v3580_v31  ;;  %v3801_v40 = vsub.f32 %v7089_v29, %v3799_v32  ;;  %3196 = vadd.xlane.f32.xlu0 %v3195_v7 }
0x1892   :  { %v3991_v35 = vpop.xlane.xlu1 %3990  ;;  %6150 = vpow2.f32 %v3802_v60 }
0x1893   :  { %v7153_v34 = vpop.eup %6140  ;;  %v3804_v23 = vmul.f32 1.442695, %v3801_v40  ;;  %v3995_v44 = vsub.f32 %v7097_v33, %v3991_v35 }
0x1894   :  { %v3994_v37 = vpop.xlane.xlu0 %3993  ;;  %v3192_v38 = vsel %vm265_vm8, %v7153_v34, 0.0  ;;  %v7158_v45 = vpop.eup %6142 }
0x1895   :  { %6152 = vpow2.f32 %v3804_v23  ;;  %v3997_v59 = vmul.f32 1.442695, %v3995_v44  ;;  %v3996_v48 = vsub.f32 %v7095_v61, %v3994_v37  ;;  %3193 = vadd.xlane.f32.xlu1 %v3192_v38  ;;  %v3387_v33 = vsel %vm265_vm8, %v7158_v45, 0.0 }
0x1896   :  { %v4186_v29 = vpop.xlane.xlu1 %4185 }
0x1897   :  { %v7161_v50 = vpop.eup %6144  ;;  %6154 = vpow2.f32 %v3997_v59  ;;  %v3999_v52 = vmul.f32 1.442695, %v3996_v48  ;;  %v4190_v53 = vsub.f32 %v7105_v42, %v4186_v29 }
0x1898   :  { %v4189_v55 = vpop.xlane.xlu0 %4188  ;;  %v3390_v14 = vsel %vm2987_vm5, %v7161_v50, 0.0  ;;  %v7168_v56 = vpop.eup %6146 }
0x1899   :  { %6156 = vpow2.f32 %v3999_v52  ;;  %v4192_v57 = vmul.f32 1.442695, %v4190_v53  ;;  %v4191_v61 = vsub.f32 %v7103_v39, %v4189_v55  ;;  %3388 = vadd.xlane.f32.xlu1 %v3387_v33  ;;  %3391 = vadd.xlane.f32.xlu0 %v3390_v14  ;;  %v3582_v49 = vsel %vm265_vm8, %v7168_v56, 0.0 }
0x189a   :  { %v3398_v2 = vpop.permute.xlu1 %3397 }
0x189b   :  { %v7171_v15 = vpop.eup %6148  ;;  %6158 = vpow2.f32 %v4192_v57  ;;  %v4194_v43 = vmul.f32 1.442695, %v4191_v61 }
0x189c   :  { %v4384_v42 = vpop.xlane.xlu0 %4383  ;;  %v3585_v5 = vsel %vm2987_vm5, %v7171_v15, 0.0  ;;  %v7177_v62 = vpop.eup %6150 }
0x189d   :  { %6160 = vpow2.f32 %v4194_v43  ;;  %v4386_v24 = vsub.f32 %v7111_v51, %v4384_v42  ;;  %3583 = vadd.xlane.f32.xlu1 %v3582_v49  ;;  %3586 = vadd.xlane.f32.xlu0 %v3585_v5  ;;  %v3806_v41 = vsel %vm265_vm8, %v7177_v62, 0.0 }
0x189e   :  { %v3593_v46 = vpop.permute.xlu1 %3592 }
0x189f   :  { %v7180_v39 = vpop.eup %6152  ;;  %v4389_v9 = vmul.f32 1.442695, %v4386_v24 }
0x18a0   :  { %v3203_v25 = vpop.permute.xlu0 %3202  ;;  %v3809_v12 = vsel %vm2987_vm5, %v7180_v39, 0.0 }
0x18a1   :  { %v7186_v13 = vpop.eup %6154  ;;  %6162 = vpow2.f32 %v4389_v9  ;;  %3807 = vadd.xlane.f32.xlu1 %v3806_v41  ;;  %3810 = vadd.xlane.f32.xlu0 %v3809_v12 }
0x18a2   :  { %5639 = vmatprep.subr.mxu1 %v3203_v25  ;;  %v4001_v51 = vsel %vm265_vm8, %v7186_v13, 0.0 }
0x18a3   :  { %v7188_v17 = vpop.eup %6156 }
0x18a4   :  { %v4004_v10 = vsel %vm2987_vm5, %v7188_v17, 0.0 }
0x18a5   :  { %v7194_v20 = vpop.eup %6158  ;;  %4002 = vadd.xlane.f32.xlu1 %v4001_v51  ;;  %4005 = vadd.xlane.f32.xlu0 %v4004_v10 }
0x18a6   :  { %v4196_v30 = vsel %vm265_vm8, %v7194_v20, 0.0 }
0x18a7   :  { %v7196_v3 = vpop.eup %6160 }
0x18a8   :  { %v4199_v63 = vsel %vm2987_vm5, %v7196_v3, 0.0 }
0x18a9   :  { %4197 = vadd.xlane.f32.xlu1 %v4196_v30  ;;  %4200 = vadd.xlane.f32.xlu0 %v4199_v63 }
0x18ab   :  { %v7202_v19 = vpop.eup %6162 }
0x18ac   :  { %v4394_v27 = vsel %vm2987_vm5, %v7202_v19, 0.0 }
0x18ad   :  { %4395 = vadd.xlane.f32.xlu0 %v4394_v27 }
0x18ba   :  { %4401 = vrot.lane.b32.xlu1 %v7006_v1, %s7514_s15 }
0x18cf   :  { %v4381_v28 = vpop.xlane.xlu1 %4380 }
0x18d0   :  { %v4385_v11 = vsub.f32 %v7124_v4, %v4381_v28 }
0x18d1   :  { %v3002_v40 = vpop.xlane.xlu0 %3001 }
0x18d2   :  { %v4387_v16 = vmul.f32 1.442695, %v4385_v11 }
0x18d3   :  { %v3817_v32 = vpop.permute.xlu1 %3816 }
0x18d4   :  { %6164 = vpow2.f32 %v4387_v16 }
0x18d5   :  { %6166 = vrcp.f32 %v3002_v40  ;;  %v733_v40 = vld [vmem:[%s7459_s16 + $0x18] sm:$0xff] }
0x18d7   :  { %v7215_v7 = vpop.permute.xlu1 %4011 }
0x18de   :  { %v7209_v31 = vpop.eup %6164 }
0x18df   :  { %v4391_v60 = vsel %vm265_vm8, %v7209_v31, 0.0  ;;  %v6167_v23 = vpop.eup %6166 }
0x18e0   :  { %4392 = vadd.xlane.f32.xlu0 %v4391_v60  ;;  %v3006_v37 = vmul.f32 %v6167_v23, %v7126_v54 }
0x18f6   :  { %4206 = vrot.lane.b32.xlu0 %v7006_v1, %s6229_s27 }
0x1908   :  { %v2999_v35 = vpop.xlane.xlu1 %2998 }
0x1909   :  { %6168 = vrcp.f32 %v2999_v35 }
0x1913   :  { %v6169_v4 = vpop.eup %6168 }
0x1914   :  { %v3004_v44 = vmul.f32 %v6169_v4, %v7137_v8 }
0x1916   :  { %5631 = vmatprep.mubr.msk.f32.mxu1 %vm265_vm8, %v3004_v44 }
0x1917   :  { %5632 = vmatmul.mubr.msk.f32.vlgmr.msra.gmra.mrb[32].mxu1 %vm265_vm8, %v3006_v37 }
0x1918   :  { %5640 = vmatpush3.msra.mxu1 %v3203_v25 }
0x1919   :  { %5649 = vmatprep.subr.mxu1 %v3398_v2 }
0x191e   :  { %v3197_v1 = vpop.xlane.xlu0 %3196 }
0x191f   :  { %6170 = vrcp.f32 %v3197_v1 }
0x1922   :  { %v3194_v38 = vpop.xlane.xlu1 %3193 }
0x1923   :  { %6172 = vrcp.f32 %v3194_v38 }
0x1926   :  { %v3389_v59 = vpop.xlane.xlu1 %3388  ;;  %v3392_v48 = vpop.xlane.xlu0 %3391 }
0x1927   :  { %6174 = vrcp.f32 %v3389_v59 }
0x1928   :  { %6176 = vrcp.f32 %v3392_v48 }
0x1929   :  { %v6171_v8 = vpop.eup %6170 }
0x192a   :  { %v3584_v29 = vpop.xlane.xlu1 %3583  ;;  %v3587_v52 = vpop.xlane.xlu0 %3586  ;;  %v3201_v14 = vmul.f32 %v6171_v8, %v7148_v18 }
0x192b   :  { %6178 = vrcp.f32 %v3584_v29 }
0x192c   :  { %6180 = vrcp.f32 %v3587_v52 }
0x192d   :  { %v6173_v54 = vpop.eup %6172 }
0x192e   :  { %v3808_v53 = vpop.xlane.xlu1 %3807  ;;  %v3811_v55 = vpop.xlane.xlu0 %3810  ;;  %v3199_v33 = vmul.f32 %v6173_v54, %v7153_v34 }
0x192f   :  { %6182 = vrcp.f32 %v3808_v53 }
0x1930   :  { %6184 = vrcp.f32 %v3811_v55  ;;  %5641 = vmatprep.mubr.msk.f32.mxu1 %vm265_vm8, %v3199_v33 }
0x1931   :  { %v6175_v57 = vpop.eup %6174  ;;  %5642 = vmatmul.mubr.msk.f32.vlgmr.msra.gmra.mrb[34].mxu1 %vm265_vm8, %v3201_v14 }
0x1932   :  { %v6177_v61 = vpop.eup %6176  ;;  %5650 = vmatpush3.msra.mxu1 %v3398_v2  ;;  %v4003_v43 = vpop.xlane.xlu1 %4002  ;;  %v3394_v49 = vmul.f32 %v6175_v57, %v7158_v45 }
0x1933   :  { %v4006_v42 = vpop.xlane.xlu0 %4005  ;;  %v3396_v5 = vmul.f32 %v6177_v61, %v7161_v50  ;;  %6186 = vrcp.f32 %v4003_v43  ;;  %5659 = vmatprep.subr.mxu1 %v3593_v46 }
0x1934   :  { %6188 = vrcp.f32 %v4006_v42  ;;  %5651 = vmatprep.mubr.msk.f32.mxu1 %vm265_vm8, %v3394_v49 }
0x1935   :  { %v6179_v18 = vpop.eup %6178  ;;  %5652 = vmatmul.mubr.msk.f32.vlgmr.msra.gmra.mrb[36].mxu1 %vm265_vm8, %v3396_v5 }
0x1936   :  { %v6181_v34 = vpop.eup %6180  ;;  %5660 = vmatpush3.msra.mxu1 %v3593_v46  ;;  %v4198_v24 = vpop.xlane.xlu1 %4197  ;;  %v3589_v9 = vmul.f32 %v6179_v18, %v7168_v56 }
0x1937   :  { %v3591_v25 = vmul.f32 %v6181_v34, %v7171_v15  ;;  %6190 = vrcp.f32 %v4198_v24  ;;  %5669 = vmatprep.subr.mxu1 %v3817_v32 }
0x1938   :  { %5661 = vmatprep.mubr.msk.f32.mxu1 %vm265_vm8, %v3589_v9 }
0x1939   :  { %v6183_v45 = vpop.eup %6182  ;;  %5662 = vmatmul.mubr.msk.f32.vlgmr.msra.gmra.mrb[38].mxu1 %vm265_vm8, %v3591_v25 }
0x193a   :  { %v6185_v50 = vpop.eup %6184  ;;  %5670 = vmatpush3.msra.mxu1 %v3817_v32  ;;  %v3813_v41 = vmul.f32 %v6183_v45, %v7177_v62  ;;  %v730_v32 = vld [vmem:[%s7459_s16] sm:$0xff] }
0x193b   :  { %v3815_v12 = vmul.f32 %v6185_v50, %v7180_v39  ;;  %5679 = vmatprep.subr.mxu1 %v7215_v7  ;;  %v4201_v39 = vpop.xlane.xlu0 %4200 }
0x193c   :  { %5671 = vmatprep.mubr.msk.f32.mxu1 %vm265_vm8, %v3813_v41  ;;  %6192 = vrcp.f32 %v4201_v39 }
0x193d   :  { %v6187_v56 = vpop.eup %6186  ;;  %5672 = vmatmul.mubr.msk.f32.vlgmr.msra.gmra.mrb[40].mxu1 %vm265_vm8, %v3815_v12 }
0x193e   :  { %v6189_v15 = vpop.eup %6188  ;;  %5680 = vmatpush3.msra.mxu1 %v7215_v7  ;;  %v4008_v51 = vmul.f32 %v6187_v56, %v7186_v13  ;;  %v731_v7 = vld [vmem:[%s7459_s16 + $0x8] sm:$0xff] }
0x193f   :  { %v4010_v10 = vmul.f32 %v6189_v15, %v7188_v17  ;;  %v4396_v63 = vpop.xlane.xlu0 %4395  ;;  %v4402_v17 = vpop.permute.xlu1 %4401 }
0x1940   :  { %5681 = vmatprep.mubr.msk.f32.mxu1 %vm265_vm8, %v4008_v51  ;;  %6194 = vrcp.f32 %v4396_v63 }
0x1941   :  { %v6191_v30 = vpop.eup %6190  ;;  %5682 = vmatmul.mubr.msk.f32.vlgmr.msra.gmra.mrb[42].mxu1 %vm265_vm8, %v4010_v10 }
0x1942   :  { %v4203_v62 = vmul.f32 %v6191_v30, %v7194_v20 }
0x1944   :  { %5691 = vmatprep.mubr.msk.f32.mxu1 %vm265_vm8, %v4203_v62 }
0x1946   :  { %v6193_v2 = vpop.eup %6192 }
0x1947   :  { %v4205_v13 = vmul.f32 %v6193_v2, %v7196_v3 }
0x194a   :  { %v6195_v20 = vpop.eup %6194 }
0x194b   :  { %v4400_v16 = vmul.f32 %v6195_v20, %v7202_v19  ;;  %v732_v19 = vld [vmem:[%s7459_s16 + $0x10] sm:$0xff] }
0x194c   :  { %v5926_v35 = vpack.c.bf16 %v733_v40, %v732_v19 }
0x196d   :  { %v4393_v27 = vpop.xlane.xlu0 %4392 }
0x196e   :  { %6196 = vrcp.f32 %v4393_v27 }
0x1971   :  { %v4207_v46 = vpop.permute.xlu0 %4206 }
0x1972   :  { %5689 = vmatprep.subr.mxu1 %v4207_v46 }
0x1973   :  { %5690 = vmatpush3.msra.mxu1 %v4207_v46 }
0x1974   :  { %5692 = vmatmul.mubr.msk.f32.vlgmr.msra.gmra.mrb[44].mxu1 %vm265_vm8, %v4205_v13  ;;  %5699 = vmatprep.subr.mxu1 %v4402_v17  ;;  %v5201_v13 = vld [vmem:[%s7460_s17] ss:$0 sm:$0xff] }
0x1975   :  { %5700 = vmatpush3.msra.mxu1 %v4402_v17 }
0x1976   :  { %5928 = vmatprep.subr.bf16.mxu1 %v6218_v0 }
0x1978   :  { %v6197_v28 = vpop.eup %6196 }
0x1979   :  { %v4398_v11 = vmul.f32 %v6197_v28, %v7209_v31  ;;  %v5923_v31 = vpack.c.bf16 %v731_v7, %v730_v32 }
0x197b   :  { %5701 = vmatprep.mubr.msk.f32.mxu1 %vm265_vm8, %v4398_v11  ;;  %5924 = vmatpush3.bf16.msra.mxu0 %v5923_v31 }
0x197c   :  { %5702 = vmatmul.mubr.msk.f32.vlgmr.msra.gmra.mrb[46].mxu1 %vm265_vm8, %v4400_v16  ;;  %5925 = vmatprep.subr.bf16.mxu0 %v6218_v0 }
0x197d   :  { %5729 = vmatprep.mubr.msk.f32.mxu1 %vm6219_vm0, %v6220_v6 }
0x197f   :  { %5927 = vmatpush3.bf16.msra.mxu0 %v5926_v35 }
0x1980   :  { %5934 = vmatprep.subr.bf16.mxu0 %v6218_v0 }
0x19ea   :  { %v5633_v3 = vpop.f32.mrb[32].mxu1 }
0x19eb   :  { %v3082_v60 = vpop.f32.mrb[33].mxu1 }
0x1a04   :  { %v5643_v23 = vpop.f32.mrb[34].mxu1 }
0x1a05   :  { %3680 = vrot.lane.b32.xlu1 %v5643_v23, %s7516_s4  ;;  %v3277_v4 = vpop.f32.mrb[35].mxu1 }
0x1a06   :  { %3678 = vrot.lane.b32.xlu0 %v3277_v4, %s7516_s4 }
0x1a08   :  { %v5653_v44 = vpop.f32.mrb[36].mxu1 }
0x1a09   :  { %3688 = vrot.lane.b32.xlu1 %v5653_v44, %s6237_s8  ;;  %v3472_v37 = vpop.f32.mrb[37].mxu1 }
0x1a0c   :  { %v5663_v1 = vpop.f32.mrb[38].mxu1 }
0x1a0d   :  { %3686 = vrot.lane.b32.xlu1 %v3472_v37, %s6237_s8  ;;  %3696 = vrot.lane.b32.xlu0 %v5663_v1, %s6238_s29  ;;  %v3667_v38 = vpop.f32.mrb[39].mxu1 }
0x1a10   :  { %v5673_v59 = vpop.f32.mrb[40].mxu1 }
0x1a11   :  { %3694 = vrot.lane.b32.xlu1 %v3667_v38, %s6238_s29  ;;  %v3891_v48 = vpop.f32.mrb[41].mxu1 }
0x1a14   :  { %v5683_v29 = vpop.f32.mrb[42].mxu1 }
0x1a15   :  { %4489 = vrot.lane.b32.xlu1 %v5683_v29, %s7516_s4  ;;  %v4086_v52 = vpop.f32.mrb[43].mxu1  ;;  %v738_v29 = vld [vmem:[%s7461_s18 + $0x18] sm:$0xff] }
0x1a16   :  { %4487 = vrot.lane.b32.xlu0 %v4086_v52, %s7516_s4 }
0x1a47   :  { %v5693_v8 = vpop.f32.mrb[44].mxu1 }
0x1a48   :  { %v4281_v54 = vpop.f32.mrb[45].mxu1 }
0x1a49   :  { %4495 = vrot.lane.b32.xlu0 %v4281_v54, %s6237_s8 }
0x1a4f   :  { %v5703_v53 = vpop.f32.mrb[46].mxu1 }
0x1a50   :  { %4505 = vrot.lane.b32.xlu1 %v5703_v53, %s6238_s29  ;;  %v4476_v55 = vpop.f32.mrb[47].mxu1 }
0x1a51   :  { %4503 = vrot.lane.b32.xlu0 %v4476_v55, %s6238_s29 }
0x1a55   :  { %4497 = vrot.lane.b32.xlu0 %v5693_v8, %s6237_s8 }
0x1a77   :  { %v3681_v33 = vpop.permute.xlu1 %3680 }
0x1a78   :  { %v3701_v14 = vsel %vm265_vm8, %v5633_v3, %v3681_v33  ;;  %v3679_v43 = vpop.permute.xlu0 %3678 }
0x1a79   :  { %v3700_v49 = vsel %vm265_vm8, %v3082_v60, %v3679_v43 }
0x1a7b   :  { %v3689_v57 = vpop.permute.xlu1 %3688 }
0x1a7c   :  { %v3703_v61 = vsel %vm94_vm1, %v3701_v14, %v3689_v57 }
0x1a7f   :  { %v3687_v42 = vpop.permute.xlu1 %3686  ;;  %v3697_v24 = vpop.permute.xlu0 %3696 }
0x1a80   :  { %v3702_v5 = vsel %vm94_vm1, %v3700_v49, %v3687_v42  ;;  %v3705_v51 = vsel %vm1692_vm3, %v3703_v61, %v3697_v24  ;;  %v740_v49 = vld [vmem:[%s7462_s20] sm:$0xff]  ;;  %v743_v24 = vld [vmem:[%s7462_s20 + $0x18] sm:$0xff] }
0x1a83   :  { %v3695_v18 = vpop.permute.xlu1 %3694 }
0x1a84   :  { %v3704_v34 = vsel %vm1692_vm3, %v3702_v5, %v3695_v18  ;;  %v741_v5 = vld [vmem:[%s7462_s20 + $0x8] sm:$0xff]  ;;  %v742_v18 = vld [vmem:[%s7462_s20 + $0x10] sm:$0xff] }
0x1a85   :  { %5713 = vmatmul.mubr.msk.f32.vlgmr.msra.gmra.mrb[48].mxu0 %vm756_vm10, %v3704_v34  ;;  %v5935_v34 = vpack.c.bf16 %v741_v5, %v740_v49 }
0x1a86   :  { %5715 = vmatprep.mubr.msk.f32.mxu0 %vm6219_vm0, %v6220_v6 }
0x1a87   :  { %v4490_v12 = vpop.permute.xlu1 %4489  ;;  %5936 = vmatpush3.bf16.msra.mxu0 %v5935_v34 }
0x1a88   :  { %v4488_v9 = vpop.permute.xlu0 %4487  ;;  %v4510_v10 = vsel %vm265_vm8, %v5673_v59, %v4490_v12  ;;  %v736_v59 = vld [vmem:[%s7461_s18 + $0x8] sm:$0xff]  ;;  %5937 = vmatprep.subr.bf16.mxu0 %v6218_v0 }
0x1a89   :  { %v4509_v45 = vsel %vm265_vm8, %v3891_v48, %v4488_v9  ;;  %v5938_v9 = vpack.c.bf16 %v743_v24, %v742_v18 }
0x1a8b   :  { %5939 = vmatpush3.bf16.msra.mxu0 %v5938_v9 }
0x1a8c   :  { %5940 = vmatprep.subr.bf16.mxu0 %v6218_v0 }
0x1abb   :  { %v4496_v25 = vpop.permute.xlu0 %4495 }
0x1abc   :  { %v4511_v50 = vsel %vm94_vm1, %v4509_v45, %v4496_v25  ;;  %v744_v25 = vld [vmem:[%s7462_s20 + $0x20] sm:$0xff]  ;;  %v745_v45 = vld [vmem:[%s7462_s20 + $0x28] sm:$0xff] }
0x1ac2   :  { %v4506_v39 = vpop.permute.xlu1 %4505 }
0x1ac3   :  { %v4504_v41 = vpop.permute.xlu0 %4503 }
0x1ac4   :  { %v4513_v56 = vsel %vm1692_vm3, %v4511_v50, %v4504_v41  ;;  %v5941_v50 = vpack.c.bf16 %v745_v45, %v744_v25 }
0x1ac5   :  { %v4517_v15 = vrot.slane %v4513_v56, 4 }
0x1ac6   :  { %5942 = vmatpush3.bf16.msra.mxu0 %v5941_v50 }
0x1ac7   :  { %v4498_v30 = vpop.permute.xlu0 %4497  ;;  %v4521_v62 = vsel %vm586_vm4, %v3705_v51, %v4517_v15  ;;  %5943 = vmatprep.subr.bf16.mxu0 %v6218_v0  ;;  %v4667_v51 = vsub.s32 3, %v6606_v21 }
0x1ac8   :  { %v4512_v63 = vsel %vm94_vm1, %v4510_v10, %v4498_v30  ;;  %5716 = vmatmul.mubr.msk.f32.gmra.mrb[50].mxu0 %vm756_vm10, %v4521_v62  ;;  %v7355_v10 = vld [vmem:[%s7457_s22] sm:$0x3f]  ;;  %vm4776_vm1 = vcmask 523264  }
0x1ac9   :  { %v4514_v27 = vsel %vm1692_vm3, %v4512_v63, %v4506_v39  ;;  %5718 = vmatprep.mubr.msk.f32.mxu0 %vm6219_vm0, %v6220_v6  ;;  %v4668_v63 = vrot.slane %v7355_v10, %v4667_v51 }
0x1aca   :  { %v4518_v2 = vrot.slane %v4514_v27, 4 }
0x1acc   :  { %v4519_v46 = vsel %vm586_vm4, %v4517_v15, %v4518_v2  ;;  %v4660_v15 = vsub.s32 2, %v6606_v21 }
0x1acd   :  { %5719 = vmatmul.mubr.msk.f32.gmra.mrb[52].mxu0 %vm756_vm10, %v4519_v46 }
0x1ace   :  { %5754 = vmatprep.mubr.msk.f32.mxu0 %vm6219_vm0, %v6220_v6  ;;  %v4661_v30 = vrot.slane %v7355_v10, %v4660_v15 }
0x1b58   :  { %v4602_v17 = vpop.f32.mrb[48].mxu0 }
0x1b59   :  { %v4603_v20 = vadd.f32 %v5201_v13, %v4602_v17  ;;  %v5714_v28 = vpop.f32.mrb[49].mxu0 }
0x1b5b   :  { %v4616_v11 = vadd.f32 %v4603_v20, %v6961_v47 }
0x1b5d   :  { %v4619_v16 = vsel %vm756_vm10, %v4616_v11, 0.0 }
0x1b5e   :  { %4620 = vadd.xlane.f32.xlu0 %v4619_v16 }
0x1b9b   :  { %v4607_v3 = vpop.f32.mrb[50].mxu0 }
0x1b9c   :  { %v4608_v60 = vadd.f32 %v5201_v13, %v4607_v3  ;;  %v5717_v32 = vpop.f32.mrb[51].mxu0 }
0x1b9e   :  { %v4617_v7 = vadd.f32 %v4608_v60, %v6977_v22  ;;  %v735_v22 = vld [vmem:[%s7461_s18] sm:$0xff] }
0x1b9f   :  { %v5929_v48 = vpack.c.bf16 %v736_v59, %v735_v22 }
0x1ba0   :  { %v4612_v31 = vpop.f32.mrb[52].mxu0  ;;  %v4622_v19 = vsel %vm756_vm10, %v4617_v7, 0.0 }
0x1ba1   :  { %v4613_v40 = vadd.f32 %v5201_v13, %v4612_v31  ;;  %4623 = vadd.xlane.f32.xlu1 %v4622_v19  ;;  %v5720_v35 = vpop.f32.mrb[53].mxu0  ;;  %5930 = vmatpush3.bf16.msra.mxu1 %v5929_v48 }
0x1ba2   :  { %5931 = vmatprep.subr.bf16.mxu1 %v6218_v0  ;;  %v746_v35 = vld [vmem:[%s7462_s20 + $0x30] sm:$0xff] }
0x1ba3   :  { %v4618_v23 = vadd.f32 %v4613_v40, %v6983_v26  ;;  %v737_v26 = vld [vmem:[%s7461_s18 + $0x10] sm:$0xff] }
0x1ba4   :  { %v5932_v52 = vpack.c.bf16 %v738_v29, %v737_v26 }
0x1ba5   :  { %v4625_v4 = vsel %vm756_vm10, %v4618_v23, 0.0 }
0x1ba6   :  { %4626 = vadd.xlane.f32.xlu0 %v4625_v4  ;;  %5933 = vmatpush3.bf16.msra.mxu1 %v5932_v52 }
0x1ba7   :  { %5946 = vmatprep.subr.bf16.mxu1 %v6218_v0 }
0x1beb   :  { %v4621_v47 = vpop.xlane.xlu0 %4620 }
0x1bec   :  { %v4628_v44 = vmul.f32 0.03125, %v4621_v47  ;;  %v5205_v47 = vld [vmem:[%s7463_s19] ss:$0 sm:$0xff] }
0x1bee   :  { %v4631_v37 = vsub.f32 %v4616_v11, %v4628_v44 }
0x1bf0   :  { %v4634_v1 = vmul.f32 %v4631_v37, %v4631_v37 }
0x1bf2   :  { %v4637_v38 = vsel %vm756_vm10, %v4634_v1, 0.0 }
0x1bf3   :  { %4638 = vadd.xlane.f32.xlu0 %v4637_v38 }
0x1c2e   :  { %v4624_v8 = vpop.xlane.xlu1 %4623 }
0x1c2f   :  { %v4629_v54 = vmul.f32 0.03125, %v4624_v8 }
0x1c31   :  { %v4632_v53 = vsub.f32 %v4617_v7, %v4629_v54 }
0x1c33   :  { %v4627_v55 = vpop.xlane.xlu0 %4626  ;;  %v4635_v33 = vmul.f32 %v4632_v53, %v4632_v53 }
0x1c34   :  { %v4630_v14 = vmul.f32 0.03125, %v4627_v55 }
0x1c35   :  { %v4640_v57 = vsel %vm756_vm10, %v4635_v33, 0.0 }
0x1c36   :  { %v4633_v61 = vsub.f32 %v4618_v23, %v4630_v14  ;;  %4641 = vadd.xlane.f32.xlu1 %v4640_v57  ;;  %v747_v23 = vld [vmem:[%s7462_s20 + $0x38] sm:$0xff] }
0x1c37   :  { %v5944_v4 = vpack.c.bf16 %v747_v23, %v746_v35 }
0x1c38   :  { %v4636_v43 = vmul.f32 %v4633_v61, %v4633_v61 }
0x1c39   :  { %5945 = vmatpush3.bf16.msra.mxu0 %v5944_v4 }
0x1c3a   :  { %v4643_v42 = vsel %vm756_vm10, %v4636_v43, 0.0 }
0x1c3b   :  { %4644 = vadd.xlane.f32.xlu0 %v4643_v42 }
0x1c80   :  { %v4639_v41 = vpop.xlane.xlu0 %4638 }
0x1c81   :  { %v4646_v12 = vmul.f32 0.03125, %v4639_v41 }
0x1c83   :  { %v4649_v56 = vadd.f32 1e-05, %v4646_v12 }
0x1c85   :  { %6198 = vrsqrt.f32 %v4649_v56 }
0x1c8f   :  { %v6199_v62 = vpop.eup %6198 }
0x1c90   :  { %v4655_v39 = vmul.f32 %v6199_v62, %v4631_v37 }
0x1c92   :  { %v4662_v27 = vmul.f32 %v4661_v30, %v4655_v39 }
0x1c94   :  { %v4669_v2 = vadd.f32 %v4668_v63, %v4662_v27 }
0x1c96   :  { %5730 = vmatmul.mubr.msk.f32.vlgmr.msra.gmra.mrb[48].mxu1 %vm756_vm10, %v4669_v2 }
0x1c97   :  { %5732 = vmatprep.mubr.msk.f32.mxu1 %vm6219_vm0, %v6220_v6 }
0x1cc3   :  { %v4642_v46 = vpop.xlane.xlu1 %4641 }
0x1cc4   :  { %v4647_v13 = vmul.f32 0.03125, %v4642_v46 }
0x1cc6   :  { %v4650_v17 = vadd.f32 1e-05, %v4647_v13 }
0x1cc8   :  { %6200 = vrsqrt.f32 %v4650_v17  ;;  %v4645_v20 = vpop.xlane.xlu0 %4644 }
0x1cc9   :  { %v4648_v28 = vmul.f32 0.03125, %v4645_v20 }
0x1ccb   :  { %v4651_v11 = vadd.f32 1e-05, %v4648_v28 }
0x1ccd   :  { %6202 = vrsqrt.f32 %v4651_v11 }
0x1cd2   :  { %v6201_v16 = vpop.eup %6200 }
0x1cd3   :  { %v4656_v3 = vmul.f32 %v6201_v16, %v4632_v53  ;;  %v5209_v53 = vld [vmem:[%s7464_s21] ss:$0 sm:$0xff]  ;;  %v4910_v16 = vsub.s32 4, %v6606_v21 }
0x1cd5   :  { %v4663_v60 = vmul.f32 %v4661_v30, %v4656_v3  ;;  %v4917_v3 = vsub.s32 5, %v6606_v21 }
0x1cd7   :  { %v6203_v32 = vpop.eup %6202  ;;  %v4670_v7 = vadd.f32 %v4668_v63, %v4663_v60  ;;  %v4911_v60 = vrot.slane %v7355_v10, %v4910_v16 }
0x1cd8   :  { %v4657_v31 = vmul.f32 %v6203_v32, %v4633_v61 }
0x1cd9   :  { %5733 = vmatmul.mubr.msk.f32.gmra.mrb[50].mxu1 %vm756_vm10, %v4670_v7 }
0x1cda   :  { %5735 = vmatprep.mubr.msk.f32.mxu1 %vm6219_vm0, %v6220_v6  ;;  %v4664_v19 = vmul.f32 %v4661_v30, %v4657_v31  ;;  %v4918_v31 = vrot.slane %v7355_v10, %v4917_v3 }
0x1cdc   :  { %v4671_v40 = vadd.f32 %v4668_v63, %v4664_v19 }
0x1cde   :  { %5736 = vmatmul.mubr.msk.f32.gmra.mrb[52].mxu1 %vm756_vm10, %v4671_v40 }
0x1cdf   :  { %5771 = vmatprep.mubr.msk.f32.mxu1 %vm6219_vm0, %v6220_v6 }
0x1d69   :  { %v4753_v44 = vpop.f32.mrb[48].mxu1 }
0x1d6a   :  { %v4754_v37 = vadd.f32 %v5205_v47, %v4753_v44  ;;  %v5731_v1 = vpop.f32.mrb[49].mxu1 }
0x1d6c   :  { %v4767_v38 = vmax.f32 %v4754_v37, 0.0 }
0x1d6e   :  { %5755 = vmatmul.mubr.msk.f32.vlgmr.msra.gmra.mrb[54].mxu0 %vm4776_vm1, %v4767_v38 }
0x1d6f   :  { %5757 = vmatprep.mubr.msk.f32.mxu0 %vm6219_vm0, %v6220_v6 }
0x1dac   :  { %v4758_v22 = vpop.f32.mrb[50].mxu1 }
0x1dad   :  { %v4759_v59 = vadd.f32 %v5205_v47, %v4758_v22  ;;  %v5734_v48 = vpop.f32.mrb[51].mxu1 }
0x1daf   :  { %v4768_v26 = vmax.f32 %v4759_v59, 0.0 }
0x1db1   :  { %v4763_v29 = vpop.f32.mrb[52].mxu1  ;;  %5758 = vmatmul.mubr.msk.f32.gmra.mrb[56].mxu0 %vm4776_vm1, %v4768_v26 }
0x1db2   :  { %v4764_v52 = vadd.f32 %v5205_v47, %v4763_v29  ;;  %v5737_v8 = vpop.f32.mrb[53].mxu1  ;;  %5760 = vmatprep.mubr.msk.f32.mxu0 %vm6219_vm0, %v6220_v6 }
0x1db4   :  { %v4769_v54 = vmax.f32 %v4764_v52, 0.0 }
0x1db6   :  { %5761 = vmatmul.mubr.msk.f32.gmra.mrb[58].mxu0 %vm4776_vm1, %v4769_v54 }
0x1e41   :  { %v4852_v55 = vpop.f32.mrb[54].mxu0 }
0x1e42   :  { %v4853_v33 = vadd.f32 %v5209_v53, %v4852_v55  ;;  %v5756_v14 = vpop.f32.mrb[55].mxu0 }
0x1e44   :  { %v4866_v57 = vadd.f32 %v4853_v33, %v4669_v2 }
0x1e46   :  { %v4869_v61 = vsel %vm756_vm10, %v4866_v57, 0.0 }
0x1e47   :  { %4870 = vadd.xlane.f32.xlu1 %v4869_v61  ;;  %v4976_v61 = vld [vmem:[%s7465_s24] sm:$0xff] }
0x1e84   :  { %v4857_v43 = vpop.f32.mrb[56].mxu0 }
0x1e85   :  { %v4858_v42 = vadd.f32 %v5209_v53, %v4857_v43  ;;  %v5759_v49 = vpop.f32.mrb[57].mxu0  ;;  %v4977_v43 = vld [vmem:[%s7465_s24 + $0x8] sm:$0xff] }
0x1e86   :  { %v4978_v49 = vld [vmem:[%s7465_s24 + $0x10] sm:$0xff] }
0x1e87   :  { %v4867_v5 = vadd.f32 %v4858_v42, %v4670_v7  ;;  %v5947_v42 = vpack.c.bf16 %v4977_v43, %v4976_v61 }
0x1e89   :  { %v4862_v18 = vpop.f32.mrb[58].mxu0  ;;  %v4872_v34 = vsel %vm756_vm10, %v4867_v5, 0.0  ;;  %5948 = vmatpush3.bf16.msra.mxu1 %v5947_v42 }
0x1e8a   :  { %v4863_v24 = vadd.f32 %v5209_v53, %v4862_v18  ;;  %4873 = vadd.xlane.f32.xlu0 %v4872_v34  ;;  %v5762_v9 = vpop.f32.mrb[59].mxu0  ;;  %5949 = vmatprep.subr.bf16.mxu1 %v6218_v0 }
0x1e8c   :  { %v4868_v25 = vadd.f32 %v4863_v24, %v4671_v40 }
0x1e8e   :  { %v4875_v45 = vsel %vm756_vm10, %v4868_v25, 0.0 }
0x1e8f   :  { %4876 = vadd.xlane.f32.xlu1 %v4875_v45 }
0x1ed4   :  { %v4871_v50 = vpop.xlane.xlu1 %4870 }
0x1ed5   :  { %v4878_v41 = vmul.f32 0.03125, %v4871_v50 }
0x1ed7   :  { %v4881_v12 = vsub.f32 %v4866_v57, %v4878_v41 }
0x1ed9   :  { %v4884_v56 = vmul.f32 %v4881_v12, %v4881_v12 }
0x1edb   :  { %v4887_v15 = vsel %vm756_vm10, %v4884_v56, 0.0 }
0x1edc   :  { %4888 = vadd.xlane.f32.xlu0 %v4887_v15 }
0x1f17   :  { %v4874_v51 = vpop.xlane.xlu0 %4873 }
0x1f18   :  { %v4879_v30 = vmul.f32 0.03125, %v4874_v51 }
0x1f1a   :  { %v4882_v62 = vsub.f32 %v4867_v5, %v4879_v30  ;;  %v4979_v5 = vld [vmem:[%s7465_s24 + $0x18] sm:$0xff] }
0x1f1b   :  { %v5950_v18 = vpack.c.bf16 %v4979_v5, %v4978_v49 }
0x1f1c   :  { %v4877_v39 = vpop.xlane.xlu1 %4876  ;;  %v4885_v63 = vmul.f32 %v4882_v62, %v4882_v62 }
0x1f1d   :  { %v4880_v27 = vmul.f32 0.03125, %v4877_v39  ;;  %5951 = vmatpush3.bf16.msra.mxu1 %v5950_v18 }
0x1f1e   :  { %v4890_v2 = vsel %vm756_vm10, %v4885_v63, 0.0 }
0x1f1f   :  { %v4883_v46 = vsub.f32 %v4868_v25, %v4880_v27  ;;  %4891 = vadd.xlane.f32.xlu1 %v4890_v2 }
0x1f21   :  { %v4886_v13 = vmul.f32 %v4883_v46, %v4883_v46 }
0x1f23   :  { %v4893_v17 = vsel %vm756_vm10, %v4886_v13, 0.0 }
0x1f24   :  { %4894 = vadd.xlane.f32.xlu0 %v4893_v17 }
0x1f69   :  { %v4889_v20 = vpop.xlane.xlu0 %4888 }
0x1f6a   :  { %v4896_v28 = vmul.f32 0.03125, %v4889_v20 }
0x1f6c   :  { %v4899_v11 = vadd.f32 1e-05, %v4896_v28 }
0x1f6e   :  { %6204 = vrsqrt.f32 %v4899_v11 }
0x1f78   :  { %v6205_v32 = vpop.eup %6204 }
0x1f79   :  { %v4905_v7 = vmul.f32 %v6205_v32, %v4881_v12 }
0x1f7b   :  { %v4912_v19 = vmul.f32 %v4911_v60, %v4905_v7 }
0x1f7d   :  { %v4919_v40 = vadd.f32 %v4918_v31, %v4912_v19 }
0x1f7f   :  { %v4923_v35 = vsel %vm756_vm10, %v4919_v40, 0.0 }
0x1f80   :  { %4924 = vadd.xlane.f32.xlu1 %v4923_v35 }
0x1fac   :  { %v4892_v23 = vpop.xlane.xlu1 %4891 }
0x1fad   :  { %v4897_v4 = vmul.f32 0.03125, %v4892_v23 }
0x1faf   :  { %v4900_v47 = vadd.f32 1e-05, %v4897_v4 }
0x1fb1   :  { %6206 = vrsqrt.f32 %v4900_v47  ;;  %v4895_v44 = vpop.xlane.xlu0 %4894 }
0x1fb2   :  { %v4898_v37 = vmul.f32 0.03125, %v4895_v44 }
0x1fb4   :  { %v4901_v1 = vadd.f32 1e-05, %v4898_v37 }
0x1fb6   :  { %6208 = vrsqrt.f32 %v4901_v1 }
0x1fbb   :  { %v6207_v38 = vpop.eup %6206 }
0x1fbc   :  { %v4906_v22 = vmul.f32 %v6207_v38, %v4882_v62  ;;  %v4922_v62 = vld [vmem:[%s7466_s23] sm:$0x3] }
0x1fbd   :  { %v4965_v39 = vrot.slane %v4922_v62, %v2691_v36  ;;  %v4972_v27 = vrot.slane %v4922_v62, %v2698_v58 }
0x1fbe   :  { %v4913_v59 = vmul.f32 %v4911_v60, %v4906_v22 }
0x1fc0   :  { %v6209_v48 = vpop.eup %6208  ;;  %v4920_v26 = vadd.f32 %v4918_v31, %v4913_v59 }
0x1fc1   :  { %v4907_v29 = vmul.f32 %v6209_v48, %v4883_v46 }
0x1fc2   :  { %v4926_v10 = vsel %vm756_vm10, %v4920_v26, 0.0 }
0x1fc3   :  { %4927 = vadd.xlane.f32.xlu0 %v4926_v10  ;;  %v4914_v52 = vmul.f32 %v4911_v60, %v4907_v29 }
0x1fc5   :  { %v4921_v8 = vadd.f32 %v4918_v31, %v4914_v52 }
0x1fc7   :  { %v4929_v54 = vsel %vm756_vm10, %v4921_v8, 0.0 }
0x1fc8   :  { %4930 = vadd.xlane.f32.xlu1 %v4929_v54 }
0x200d   :  { %v4925_v53 = vpop.xlane.xlu1 %4924 }
0x200e   :  { %v4932_v55 = vmul.f32 0.03125, %v4925_v53 }
0x2010   :  { %v4935_v33 = vsub.f32 %v4919_v40, %v4932_v55  ;;  %v5213_v40 = vld [vmem:[%s7467_s25] ss:$0 sm:$0xff] }
0x2012   :  { %v4938_v14 = vmul.f32 %v4935_v33, %v4935_v33 }
0x2014   :  { %v4941_v57 = vsel %vm756_vm10, %v4938_v14, 0.0 }
0x2015   :  { %4942 = vadd.xlane.f32.xlu0 %v4941_v57 }
0x2050   :  { %v4928_v34 = vpop.xlane.xlu0 %4927 }
0x2051   :  { %v4933_v24 = vmul.f32 0.03125, %v4928_v34 }
0x2053   :  { %v4936_v9 = vsub.f32 %v4920_v26, %v4933_v24 }
0x2055   :  { %v4931_v25 = vpop.xlane.xlu1 %4930  ;;  %v4939_v45 = vmul.f32 %v4936_v9, %v4936_v9 }
0x2056   :  { %v4934_v50 = vmul.f32 0.03125, %v4931_v25 }
0x2057   :  { %v4944_v41 = vsel %vm756_vm10, %v4939_v45, 0.0 }
0x2058   :  { %v4937_v12 = vsub.f32 %v4921_v8, %v4934_v50  ;;  %4945 = vadd.xlane.f32.xlu1 %v4944_v41 }
0x205a   :  { %v4940_v0 = vmul.f32 %v4937_v12, %v4937_v12 }
0x205c   :  { %v4947_v56 = vsel %vm756_vm10, %v4940_v0, 0.0 }
0x205d   :  { %4948 = vadd.xlane.f32.xlu0 %v4947_v56 }
0x20a2   :  { %v4943_v15 = vpop.xlane.xlu0 %4942 }
0x20a3   :  { %v4950_v51 = vmul.f32 0.03125, %v4943_v15 }
0x20a5   :  { %v4953_v30 = vadd.f32 1e-05, %v4950_v51 }
0x20a7   :  { %6210 = vrsqrt.f32 %v4953_v30 }
0x20b1   :  { %v6211_v63 = vpop.eup %6210 }
0x20b2   :  { %v4959_v2 = vmul.f32 %v6211_v63, %v4935_v33 }
0x20b4   :  { %v4966_v46 = vmul.f32 %v4965_v39, %v4959_v2 }
0x20b6   :  { %v4973_v13 = vadd.f32 %v4972_v27, %v4966_v46 }
0x20b8   :  { %5772 = vmatmul.mubr.msk.f32.vlgmr.msra.gmra.mrb[54].mxu1 %vm756_vm10, %v4973_v13 }
0x20b9   :  { %5774 = vmatprep.mubr.msk.f32.mxu1 %vm6219_vm0, %v6220_v6 }
0x20e5   :  { %v4946_v17 = vpop.xlane.xlu1 %4945 }
0x20e6   :  { %v4951_v20 = vmul.f32 0.03125, %v4946_v17 }
0x20e8   :  { %v4954_v28 = vadd.f32 1e-05, %v4951_v20 }
0x20ea   :  { %6212 = vrsqrt.f32 %v4954_v28  ;;  %v4949_v11 = vpop.xlane.xlu0 %4948 }
0x20eb   :  { %v4952_v16 = vmul.f32 0.03125, %v4949_v11 }
0x20ed   :  { %v4955_v3 = vadd.f32 1e-05, %v4952_v16 }
0x20ef   :  { %6214 = vrsqrt.f32 %v4955_v3 }
0x20f4   :  { %v6213_v36 = vpop.eup %6212 }
0x20f5   :  { %v4960_v60 = vmul.f32 %v6213_v36, %v4936_v9 }
0x20f7   :  { %v4967_v21 = vmul.f32 %v4965_v39, %v4960_v60 }
0x20f9   :  { %v6215_v58 = vpop.eup %6214  ;;  %v4974_v32 = vadd.f32 %v4972_v27, %v4967_v21 }
0x20fa   :  { %v4961_v7 = vmul.f32 %v6215_v58, %v4937_v12 }
0x20fb   :  { %5775 = vmatmul.mubr.msk.f32.gmra.mrb[56].mxu1 %vm756_vm10, %v4974_v32 }
0x20fc   :  { %5777 = vmatprep.mubr.msk.f32.mxu1 %vm6219_vm0, %v6220_v6  ;;  %v4968_v31 = vmul.f32 %v4965_v39, %v4961_v7 }
0x20fe   :  { %v4975_v19 = vadd.f32 %v4972_v27, %v4968_v31 }
0x2100   :  { %5778 = vmatmul.mubr.msk.f32.gmra.mrb[58].mxu1 %vm756_vm10, %v4975_v19 }
0x218b   :  { %v5062_v35 = vpop.f32.mrb[54].mxu1 }
0x218c   :  { %v5063_v23 = vadd.f32 %v5213_v40, %v5062_v35  ;;  %v5773_v4 = vpop.f32.mrb[55].mxu1 }
0x218e   :  { %5076 = vst.msk [vmem:[%s7468_s26] sm:$0xff] %vm263_vm6, %v5063_v23 }
0x21ce   :  { %v5067_v47 = vpop.f32.mrb[56].mxu1 }
0x21cf   :  { %v5068_v44 = vadd.f32 %v5213_v40, %v5067_v47  ;;  %v5776_v37 = vpop.f32.mrb[57].mxu1 }
0x21d1   :  { %5077 = vst.msk [vmem:[%s7468_s26 + $0x8] sm:$0xff] %vm263_vm6, %v5068_v44 }
0x21d3   :  { %v5072_v6 = vpop.f32.mrb[58].mxu1 }
0x21d4   :  { %v5073_v1 = vadd.f32 %v5213_v40, %v5072_v6  ;;  %v5779_v38 = vpop.f32.mrb[59].mxu1 }
0x21d6   :  { %5078 = vst.msk [vmem:[%s7468_s26 + $0x10] sm:$0xff] %vm263_vm6, %v5073_v1 }

</bundles_post_ra>
